<compile_context>
chip_gen: v7x
topology: tpu7x:2x2x1
jax: 0.10.0
libtpu: 0.0.40
codegen_flags: <defaults>
</compile_context>

<pallas_src>
import functools

import jax
import jax.numpy as jnp
from jax import lax
from jax.experimental import pallas as pl
from jax.experimental.pallas import tpu as pltpu

DELTA = 1e-3
PAD_B = 8        # pad batch to a full sublane tile

ANCHOR_LIST = [
    # more global component
    [1. / 4, 1. / 2], [2. / 4, 1. / 2], [3. / 4, 1. / 2],
    [1. / 6, 1. / 3], [3. / 6, 1. / 3], [5. / 6, 1. / 3],
    # localize component
    [1. / 16, 1. / 8], [3. / 16, 1. / 8], [5. / 16, 1. / 8], [7. / 16, 1. / 8],
    [9. / 16, 1. / 8], [11. / 16, 1. / 8], [13. / 16, 1. / 8], [15. / 16, 1. / 8],
    [1. / 2, 1.0],
]


# ---------------------------------------------------------------------------
# Fused kernel: text RNN + video RNN (+in-kernel gather) + mixer + heads
# ---------------------------------------------------------------------------
def _localizer_kernel(n_anchor,
                      scale_ref,
                      sx_ref, slen_ref, smask_ref,
                      vx_ref, vlen_ref, vmask_ref, gidx_ref,
                      wx_t_ref, wh_t_ref, b_t_ref,
                      wx_v_ref, wh_v_ref, b_v_ref, wres_v_ref,
                      we_t_ref, be_t_ref, we_v_ref, be_v_ref,
                      wt_h_ref, vt_ref, wv_h_ref, vv_ref,
                      bn_t_ref, bn_v_ref,
                      wfc_t_ref, wfc_v_ref, bfc_ref,
                      wc1_a_ref, wc1_b_ref, wc1_c_ref, bc1_ref,
                      wc2_ref, bc2_ref, whead_ref, bhead_ref,
                      out_ref,
                      s_feat_ref, vg_feat_ref):
    Ls, B, H = s_feat_ref.shape
    Lv = vg_feat_ref.shape[0]
    scale = scale_ref[0, 0]

    def bdot(a, b):
        # bf16 operands, f32 accumulation (MXU-native on v5e/v6e/v7x).
        return jnp.dot(a.astype(jnp.bfloat16), b.astype(jnp.bfloat16),
                       preferred_element_type=jnp.float32)

    # ----- in-kernel gather matrix: onehot[s, v] = (sent_gather_idx[s] == v) --
    gidx = gidx_ref[...]                                        # (B, 1) int32
    vid_iota = lax.broadcasted_iota(jnp.int32, (B, B), 1)
    onehot = (vid_iota == gidx).astype(jnp.float32)             # (Bs_pad, Bv_pad)

    # ----- text encoder (no residual): hoisted input projection --------------
    xw_s = bdot(sx_ref[...], wx_t_ref[...]) + b_t_ref[...]      # (Ls*B, H)
    wh_t = wh_t_ref[...]
    lens_s = slen_ref[...]                                      # (B, 1)
    h = jnp.zeros((B, H), jnp.float32)
    s_last = jnp.zeros((B, H), jnp.float32)
    # NOTE: the recurrence runs through padded timesteps; this is correct
    # because the last hidden state is captured at t+1 == length and padded
    # positions are masked out of the attention below.
    for t in range(Ls):
        h = jnp.tanh(xw_s[t * B:(t + 1) * B, :]
                     + jnp.dot(h, wh_t, preferred_element_type=jnp.float32))
        s_feat_ref[t] = h
        s_last = jnp.where(lens_s == (t + 1), h, s_last)
    s_feat = s_feat_ref[...]                                    # (Ls, B, H)
    s_proj = (bdot(s_feat.reshape(Ls * B, H), we_t_ref[...])
              + be_t_ref[...]).reshape(Ls, B, H)                # hoisted proj

    # ----- video encoder (residual) with per-step in-kernel gather -----------
    vx = vx_ref[...]                                            # (Lv*B, Dv)
    xw_v = bdot(vx, wx_v_ref[...]) + b_v_ref[...]               # (Lv*B, H)
    xres_v = bdot(vx, wres_v_ref[...])                          # (Lv*B, H)
    wh_v = wh_v_ref[...]
    lens_v = vlen_ref[...]
    h = jnp.zeros((B, H), jnp.float32)
    v_last = jnp.zeros((B, H), jnp.float32)
    for t in range(Lv):
        h = jnp.tanh(xw_v[t * B:(t + 1) * B, :]
                     + jnp.dot(h, wh_v, preferred_element_type=jnp.float32))
        feat_t = h + xres_v[t * B:(t + 1) * B, :]
        # gather: duplicate per-sentence video rows (exact f32 one-hot matmul)
        vg_feat_ref[t] = jnp.dot(onehot, feat_t,
                                 preferred_element_type=jnp.float32)
        v_last = jnp.where(lens_v == (t + 1), h, v_last)
    v_last_g = jnp.dot(onehot, v_last, preferred_element_type=jnp.float32)
    vg_feat = vg_feat_ref[...]                                  # (Lv, B, H)
    vg_proj = (bdot(vg_feat.reshape(Lv * B, H), we_v_ref[...])
               + be_v_ref[...]).reshape(Lv, B, H)

    # ----- additive attention (masked softmax over the time axis) ------------
    def attention(enc, proj, hid, mask_t, w_h, v):
        hidp = jnp.dot(hid, w_h, preferred_element_type=jnp.float32)  # (B, H)
        e = jnp.tanh(proj + hidp[None, :, :])                         # (L, B, H)
        scores = jnp.sum(e * v[None, :, :], axis=-1)                  # (L, B)
        scores = jnp.where(mask_t > 0.5, scores, -1e30)
        scores = scores - jnp.max(scores, axis=0, keepdims=True)
        w = jnp.exp(scores)
        w = w * pl.reciprocal(jnp.sum(w, axis=0, keepdims=True), approx=True)
        return jnp.sum(w[:, :, None] * enc, axis=0)                   # (B, H)

    t_ctx = attention(s_feat, s_proj, v_last_g, smask_ref[...],
                      wt_h_ref[...], vt_ref[...])
    v_ctx = attention(vg_feat, vg_proj, s_last, vmask_ref[...],
                      wv_h_ref[...], vv_ref[...])

    # eval-mode BatchNorm folded to scale/shift
    bn_t = bn_t_ref[...]
    bn_v = bn_v_ref[...]
    t_ctx = t_ctx * bn_t[0:1, :] + bn_t[1:2, :]
    v_ctx = v_ctx * bn_v[0:1, :] + bn_v[1:2, :]

    # fc(cat([t, v])) and combiner block 1 with concats replaced by
    # split-weight accumulation (concat-free).
    fc_out = (bdot(t_ctx, wfc_t_ref[...]) + bdot(v_ctx, wfc_v_ref[...])
              + bfc_ref[...])
    h1 = (bdot(fc_out, wc1_a_ref[...])
          + bdot(t_ctx * v_ctx, wc1_b_ref[...])
          + bdot(t_ctx + v_ctx, wc1_c_ref[...]) + bc1_ref[...])
    h1 = jnp.maximum(h1, 0.0)
    # Dropout (eval) -> identity
    h2 = jnp.maximum(bdot(h1, wc2_ref[...]) + bc2_ref[...], 0.0)      # (B, 3H)

    # fused predictor|refiner head; output padded to a lane-dense width.
    head = bdot(h2, whead_ref[...]) + bhead_ref[...]                  # (B, Wpad)
    col = lax.broadcasted_iota(jnp.int32, head.shape, 1)
    refined = jax.nn.sigmoid(head) * scale
    out_ref[...] = jnp.where(col < n_anchor, head, refined)


# ---------------------------------------------------------------------------
# JAX wrapper: layout plumbing, pallas_call, anchor resolution
# ---------------------------------------------------------------------------
def _pad_rows(x, n):
    return jnp.pad(x, [(0, n - x.shape[0])] + [(0, 0)] * (x.ndim - 1))


def _full_spec(shape):
    nd = len(shape)
    return pl.BlockSpec(shape, lambda i, nd=nd: (0,) * nd)


def sentence_localizer_forward(params, video_feat, video_length, video_mask,
                               sent, sent_length, sent_mask, sent_gather_idx,
                               scale):
    Bv, Lv, Dv = video_feat.shape
    Bs, Ls = sent.shape
    H = params['weights'][1].shape[0]          # wh_t is (H, H)
    A = params['anchor'].shape[0]
    wpad = params['weights'][-1].shape[1]      # lane-padded head width
    B = PAD_B

    # Embedding lookup stays in XLA (tiny gather).  The pads / transposes below
    # are layout plumbing presenting sublane/lane-dense 2-D slabs to the kernel.
    sent_emb = jnp.take(params['embedding'], sent, axis=0)          # (Bs,Ls,De)
    De = sent_emb.shape[-1]
    sx2d = jnp.swapaxes(_pad_rows(sent_emb, B), 0, 1).reshape(Ls * B, De)
    slen = _pad_rows(sent_length.reshape(Bs, 1).astype(jnp.int32), B)
    smask_t = jnp.swapaxes(_pad_rows(sent_mask, B), 0, 1)           # (Ls, B)

    vx2d = jnp.swapaxes(_pad_rows(video_feat, B), 0, 1).reshape(Lv * B, Dv)
    vlen = _pad_rows(video_length[:, 0:1].astype(jnp.int32), B)     # (B, 1)
    g = sent_gather_idx
    vmask_t = jnp.swapaxes(_pad_rows(video_mask[g][:, :, 0], B), 0, 1)  # (Lv, B)
    gidx = _pad_rows(g.reshape(Bs, 1).astype(jnp.int32), B)         # (B, 1)

    scale_arr = jnp.full((1, 1), scale, jnp.float32)
    args = (sx2d, slen, smask_t, vx2d, vlen, vmask_t, gidx) + params['weights']

    in_specs = ([pl.BlockSpec(memory_space=pltpu.MemorySpace.SMEM)]
                + [_full_spec(a.shape) for a in args])

    head_p = pl.pallas_call(
        functools.partial(_localizer_kernel, A),
        out_shape=jax.ShapeDtypeStruct((B, wpad), jnp.float32),
        grid=(1,),
        in_specs=in_specs,
        out_specs=_full_spec((B, wpad)),
        scratch_shapes=[pltpu.VMEM((Ls, B, H), jnp.float32),
                        pltpu.VMEM((Lv, B, H), jnp.float32)],
        compiler_params=pltpu.CompilerParams(
            dimension_semantics=("arbitrary",)),
    )(scale_arr, *args)

    head = head_p[:Bs, :3 * A]
    score = head[:, :A]
    refining = head[:, A:].reshape(Bs, A, 2)   # sigmoid * scale already applied

    video_time_len = video_length[g][:, 1:2]                        # (Bs, 1)
    delta_c = refining[:, :, 0] - scale / 2.0
    delta_w = refining[:, :, 1]
    pred = jnp.argmax(score, axis=1)
    anchor_sel = params['anchor'][pred]                             # (Bs, 2)
    anchor_c, anchor_w = anchor_sel[:, 0:1], anchor_sel[:, 1:2]
    dc = jnp.take_along_axis(delta_c, pred[:, None], axis=1)
    dw = jnp.take_along_axis(delta_w, pred[:, None], axis=1)
    final_c = anchor_c + dc
    final_w = anchor_w + dw
    # segment_resolver
    s = jnp.maximum(final_c - final_w / 2.0, 0.0)
    e = jnp.minimum(final_c + final_w / 2.0, 1.0 - DELTA)
    final_prediction_time = jnp.concatenate([s, e], axis=1) * video_time_len
    return score, refining, final_prediction_time


# ---------------------------------------------------------------------------
# Deterministic parameter init (+ one-time BN folding / weight pre-splitting)
# ---------------------------------------------------------------------------
def _fold_bn(gamma, beta, mean, var, eps=1e-5):
    sc = gamma * lax.rsqrt(var + eps)
    return sc, beta - mean * sc


def init_params(key, H, Dv, De, vocab, A):
    keys = iter(jax.random.split(key, 64))

    def rn(shape, s=0.1):
        return (s * jax.random.normal(next(keys), shape)).astype(jnp.float32)

    def bn_raw(C):
        return (1.0 + rn((C,)), rn((C,)), rn((C,)), jnp.ones((C,), jnp.float32))

    params = {}
    params['embedding'] = rn((vocab, De), 0.2)

    # RNN encoders (single-layer tanh-RNN stand-ins; text has no residual).
    wx_v, wh_v, b_v, wres_v = rn((Dv, H)), rn((H, H)), rn((1, H)), rn((Dv, H))
    wx_t, wh_t, b_t = rn((De, H)), rn((H, H)), rn((1, H))

    # additive attention (AttentionType0 stand-in): enc-projection parts feed
    # the encoder sections, hidden-projection parts feed the mixer.
    we_t, wt_h, be_t, vt = rn((H, H)), rn((H, H)), rn((1, H)), rn((1, H))
    we_v, wv_h, be_v, vv = rn((H, H)), rn((H, H)), rn((1, H)), rn((1, H))

    bn_t, bn_v = bn_raw(H), bn_raw(H)
    wfc, bfc = rn((2 * H, H)), rn((1, H))
    wc1, bn_c1 = rn((3 * H, 3 * H)), bn_raw(3 * H)
    wc2, bn_c2 = rn((3 * H, 3 * H)), bn_raw(3 * H)
    wp, bp = rn((3 * H, A)), rn((1, A))
    wr, br = rn((3 * H, 2 * A)), rn((1, 2 * A))

    # ---- one-time kernel-friendly preparation ----
    bn_t_ss = jnp.stack(_fold_bn(*bn_t), axis=0)                    # (2, H)
    bn_v_ss = jnp.stack(_fold_bn(*bn_v), axis=0)
    wfc_t, wfc_v = jnp.split(wfc, 2, axis=0)                        # (H, H) x2
    s1, sh1 = _fold_bn(*bn_c1)
    wc1_a, wc1_b, wc1_c = jnp.split(wc1 * s1[None, :], 3, axis=0)   # (H, 3H) x3
    bc1 = sh1[None, :]
    s2, sh2 = _fold_bn(*bn_c2)
    wc2f = wc2 * s2[None, :]
    bc2 = sh2[None, :]
    whead = jnp.concatenate([wp, wr], axis=1)                       # (3H, 3A)
    bhead = jnp.concatenate([bp, br], axis=1)                       # (1, 3A)
    wpad = ((3 * A + 127) // 128) * 128                             # lane-dense
    whead = jnp.pad(whead, ((0, 0), (0, wpad - 3 * A)))
    bhead = jnp.pad(bhead, ((0, 0), (0, wpad - 3 * A)))

    params['weights'] = (wx_t, wh_t, b_t,
                         wx_v, wh_v, b_v, wres_v,
                         we_t, be_t, we_v, be_v,
                         wt_h, vt, wv_h, vv,
                         bn_t_ss, bn_v_ss,
                         wfc_t, wfc_v, bfc,
                         wc1_a, wc1_b, wc1_c, bc1, wc2f, bc2,
                         whead, bhead)
    params['anchor'] = jnp.array(ANCHOR_LIST, jnp.float32)
    return params


# ---------------------------------------------------------------------------
if __name__ == "__main__":
    H, Dv, De, vocab = 32, 32, 32, 50
    Bv, Lv = 3, 16
    Bs, Ls = 4, 8
    scale = 0.3
    A = len(ANCHOR_LIST)

    key = jax.random.PRNGKey(0)
    kp, kv, ks = jax.random.split(key, 3)

    params = init_params(kp, H, Dv, De, vocab, A)

    video_feat = (0.5 * jax.random.normal(kv, (Bv, Lv, Dv))).astype(jnp.float32)
    video_seq_len = jnp.array([16, 12, 10], jnp.int32)
    video_time_len = jnp.array([30.0, 24.5, 18.0], jnp.float32)
    video_length = jnp.stack(
        [video_seq_len.astype(jnp.float32), video_time_len], axis=1)   # (Bv, 2)
    video_mask = (jnp.arange(Lv)[None, :] < video_seq_len[:, None]
                  ).astype(jnp.float32)[:, :, None]                    # (Bv, Lv, 1)

    sent = jax.random.randint(ks, (Bs, Ls), 0, vocab, dtype=jnp.int32)
    sent_length = jnp.array([8, 5, 6, 4], jnp.int32)
    sent_mask = (jnp.arange(Ls)[None, :] < sent_length[:, None]).astype(jnp.float32)
    sent_gather_idx = jnp.array([0, 1, 1, 2], jnp.int32)

    fwd = jax.jit(sentence_localizer_forward)
    score, refining, ts_time = fwd(params, video_feat, video_length, video_mask,
                                   sent, sent_length, sent_mask, sent_gather_idx,
                                   scale)

    jax.block_until_ready((score, refining, ts_time))
    assert score.shape == (Bs, A)
    assert refining.shape == (Bs, A, 2)
    assert ts_time.shape == (Bs, 2)
    print("KERNEL_OK")
</pallas_src>

<mosaic_0001>
module attributes {stable_mosaic.version = 11 : i64} {
  func.func @_localizer_kernel(%arg0: i32, %arg1: memref<1x1xf32, #tpu.memory_space<smem>>, %arg2: memref<64x32xf32, #tpu.memory_space<vmem>>, %arg3: memref<8x1xi32, #tpu.memory_space<vmem>>, %arg4: memref<8x8xf32, #tpu.memory_space<vmem>>, %arg5: memref<128x32xf32, #tpu.memory_space<vmem>>, %arg6: memref<8x1xi32, #tpu.memory_space<vmem>>, %arg7: memref<16x8xf32, #tpu.memory_space<vmem>>, %arg8: memref<8x1xi32, #tpu.memory_space<vmem>>, %arg9: memref<32x32xf32, #tpu.memory_space<vmem>>, %arg10: memref<32x32xf32, #tpu.memory_space<vmem>>, %arg11: memref<1x32xf32, #tpu.memory_space<vmem>>, %arg12: memref<32x32xf32, #tpu.memory_space<vmem>>, %arg13: memref<32x32xf32, #tpu.memory_space<vmem>>, %arg14: memref<1x32xf32, #tpu.memory_space<vmem>>, %arg15: memref<32x32xf32, #tpu.memory_space<vmem>>, %arg16: memref<32x32xf32, #tpu.memory_space<vmem>>, %arg17: memref<1x32xf32, #tpu.memory_space<vmem>>, %arg18: memref<32x32xf32, #tpu.memory_space<vmem>>, %arg19: memref<1x32xf32, #tpu.memory_space<vmem>>, %arg20: memref<32x32xf32, #tpu.memory_space<vmem>>, %arg21: memref<1x32xf32, #tpu.memory_space<vmem>>, %arg22: memref<32x32xf32, #tpu.memory_space<vmem>>, %arg23: memref<1x32xf32, #tpu.memory_space<vmem>>, %arg24: memref<2x32xf32, #tpu.memory_space<vmem>>, %arg25: memref<2x32xf32, #tpu.memory_space<vmem>>, %arg26: memref<32x32xf32, #tpu.memory_space<vmem>>, %arg27: memref<32x32xf32, #tpu.memory_space<vmem>>, %arg28: memref<1x32xf32, #tpu.memory_space<vmem>>, %arg29: memref<32x96xf32, #tpu.memory_space<vmem>>, %arg30: memref<32x96xf32, #tpu.memory_space<vmem>>, %arg31: memref<32x96xf32, #tpu.memory_space<vmem>>, %arg32: memref<1x96xf32, #tpu.memory_space<vmem>>, %arg33: memref<96x96xf32, #tpu.memory_space<vmem>>, %arg34: memref<1x96xf32, #tpu.memory_space<vmem>>, %arg35: memref<96x128xf32, #tpu.memory_space<vmem>>, %arg36: memref<1x128xf32, #tpu.memory_space<vmem>>, %arg37: memref<8x128xf32, #tpu.memory_space<vmem>>, %arg38: memref<8x8x32xf32, #tpu.memory_space<vmem>>, %arg39: memref<16x8x32xf32, #tpu.memory_space<vmem>>) attributes {dimension_semantics = [#tpu.dimension_semantics<arbitrary>], iteration_bounds = array<i64: 1>, scalar_prefetch = 0 : i64, scratch_operands = 2 : i64, tpu.core_type = #tpu.core_type<tc>, window_params = [{transform_indices = @transform_0, window_bounds = array<i64: 1, 1>}, {pipeline_mode = #tpu.pipeline_mode<synchronous>, transform_indices = @transform_1, window_bounds = array<i64: 64, 32>}, {pipeline_mode = #tpu.pipeline_mode<synchronous>, transform_indices = @transform_2, window_bounds = array<i64: 8, 1>}, {pipeline_mode = #tpu.pipeline_mode<synchronous>, transform_indices = @transform_3, window_bounds = array<i64: 8, 8>}, {pipeline_mode = #tpu.pipeline_mode<synchronous>, transform_indices = @transform_4, window_bounds = array<i64: 128, 32>}, {pipeline_mode = #tpu.pipeline_mode<synchronous>, transform_indices = @transform_5, window_bounds = array<i64: 8, 1>}, {pipeline_mode = #tpu.pipeline_mode<synchronous>, transform_indices = @transform_6, window_bounds = array<i64: 16, 8>}, {pipeline_mode = #tpu.pipeline_mode<synchronous>, transform_indices = @transform_7, window_bounds = array<i64: 8, 1>}, {pipeline_mode = #tpu.pipeline_mode<synchronous>, transform_indices = @transform_8, window_bounds = array<i64: 32, 32>}, {pipeline_mode = #tpu.pipeline_mode<synchronous>, transform_indices = @transform_9, window_bounds = array<i64: 32, 32>}, {pipeline_mode = #tpu.pipeline_mode<synchronous>, transform_indices = @transform_10, window_bounds = array<i64: 1, 32>}, {pipeline_mode = #tpu.pipeline_mode<synchronous>, transform_indices = @transform_11, window_bounds = array<i64: 32, 32>}, {pipeline_mode = #tpu.pipeline_mode<synchronous>, transform_indices = @transform_12, window_bounds = array<i64: 32, 32>}, {pipeline_mode = #tpu.pipeline_mode<synchronous>, transform_indices = @transform_13, window_bounds = array<i64: 1, 32>}, {pipeline_mode = #tpu.pipeline_mode<synchronous>, transform_indices = @transform_14, window_bounds = array<i64: 32, 32>}, {pipeline_mode = #tpu.pipeline_mode<synchronous>, transform_indices = @transform_15, window_bounds = array<i64: 32, 32>}, {pipeline_mode = #tpu.pipeline_mode<synchronous>, transform_indices = @transform_16, window_bounds = array<i64: 1, 32>}, {pipeline_mode = #tpu.pipeline_mode<synchronous>, transform_indices = @transform_17, window_bounds = array<i64: 32, 32>}, {pipeline_mode = #tpu.pipeline_mode<synchronous>, transform_indices = @transform_18, window_bounds = array<i64: 1, 32>}, {pipeline_mode = #tpu.pipeline_mode<synchronous>, transform_indices = @transform_19, window_bounds = array<i64: 32, 32>}, {pipeline_mode = #tpu.pipeline_mode<synchronous>, transform_indices = @transform_20, window_bounds = array<i64: 1, 32>}, {pipeline_mode = #tpu.pipeline_mode<synchronous>, transform_indices = @transform_21, window_bounds = array<i64: 32, 32>}, {pipeline_mode = #tpu.pipeline_mode<synchronous>, transform_indices = @transform_22, window_bounds = array<i64: 1, 32>}, {pipeline_mode = #tpu.pipeline_mode<synchronous>, transform_indices = @transform_23, window_bounds = array<i64: 2, 32>}, {pipeline_mode = #tpu.pipeline_mode<synchronous>, transform_indices = @transform_24, window_bounds = array<i64: 2, 32>}, {pipeline_mode = #tpu.pipeline_mode<synchronous>, transform_indices = @transform_25, window_bounds = array<i64: 32, 32>}, {pipeline_mode = #tpu.pipeline_mode<synchronous>, transform_indices = @transform_26, window_bounds = array<i64: 32, 32>}, {pipeline_mode = #tpu.pipeline_mode<synchronous>, transform_indices = @transform_27, window_bounds = array<i64: 1, 32>}, {pipeline_mode = #tpu.pipeline_mode<synchronous>, transform_indices = @transform_28, window_bounds = array<i64: 32, 96>}, {pipeline_mode = #tpu.pipeline_mode<synchronous>, transform_indices = @transform_29, window_bounds = array<i64: 32, 96>}, {pipeline_mode = #tpu.pipeline_mode<synchronous>, transform_indices = @transform_30, window_bounds = array<i64: 32, 96>}, {pipeline_mode = #tpu.pipeline_mode<synchronous>, transform_indices = @transform_31, window_bounds = array<i64: 1, 96>}, {pipeline_mode = #tpu.pipeline_mode<synchronous>, transform_indices = @transform_32, window_bounds = array<i64: 96, 96>}, {pipeline_mode = #tpu.pipeline_mode<synchronous>, transform_indices = @transform_33, window_bounds = array<i64: 1, 96>}, {pipeline_mode = #tpu.pipeline_mode<synchronous>, transform_indices = @transform_34, window_bounds = array<i64: 96, 128>}, {pipeline_mode = #tpu.pipeline_mode<synchronous>, transform_indices = @transform_35, window_bounds = array<i64: 1, 128>}, {pipeline_mode = #tpu.pipeline_mode<synchronous>, transform_indices = @transform_36, window_bounds = array<i64: 8, 128>}]} {
    %c0 = arith.constant 0 : index
    %c0_0 = arith.constant 0 : index
    %0 = memref.load %arg1[%c0, %c0_0] : memref<1x1xf32, #tpu.memory_space<smem>>
    %c0_1 = arith.constant 0 : index
    %c0_2 = arith.constant 0 : index
    %1 = vector.load %arg8[%c0_1, %c0_2] : memref<8x1xi32, #tpu.memory_space<vmem>>, vector<8x1xi32>
    %2 = tpu.iota {dimensions = array<i32: 1>} : vector<8x8xi32>
    %3 = vector.broadcast %1 : vector<8x1xi32> to vector<8x8xi32>
    %4 = arith.cmpi eq, %2, %3 : vector<8x8xi32>
    %5 = arith.extui %4 : vector<8x8xi1> to vector<8x8xi32>
    %6 = arith.sitofp %5 : vector<8x8xi32> to vector<8x8xf32>
    %c0_3 = arith.constant 0 : index
    %c0_4 = arith.constant 0 : index
    %7 = vector.load %arg2[%c0_3, %c0_4] : memref<64x32xf32, #tpu.memory_space<vmem>>, vector<64x32xf32>
    %c0_5 = arith.constant 0 : index
    %c0_6 = arith.constant 0 : index
    %8 = vector.load %arg9[%c0_5, %c0_6] : memref<32x32xf32, #tpu.memory_space<vmem>>, vector<32x32xf32>
    %9 = arith.truncf %7 : vector<64x32xf32> to vector<64x32xbf16>
    %10 = arith.truncf %8 : vector<32x32xf32> to vector<32x32xbf16>
    %cst = arith.constant dense<0.000000e+00> : vector<64x32xf32>
    %11 = tpu.matmul %9, %10, %cst {dimension_numbers = #tpu.dot_dimension_numbers<[1], [0], [0], [1], [0, 0, 1, 1], [], []>} : vector<64x32xbf16>, vector<32x32xbf16>, vector<64x32xf32> -> vector<64x32xf32>
    %c0_7 = arith.constant 0 : index
    %c0_8 = arith.constant 0 : index
    %12 = vector.load %arg11[%c0_7, %c0_8] : memref<1x32xf32, #tpu.memory_space<vmem>>, vector<1x32xf32>
    %13 = vector.broadcast %12 : vector<1x32xf32> to vector<64x32xf32>
    %14 = arith.addf %11, %13 : vector<64x32xf32>
    %c0_9 = arith.constant 0 : index
    %c0_10 = arith.constant 0 : index
    %15 = vector.load %arg10[%c0_9, %c0_10] : memref<32x32xf32, #tpu.memory_space<vmem>>, vector<32x32xf32>
    %c0_11 = arith.constant 0 : index
    %c0_12 = arith.constant 0 : index
    %16 = vector.load %arg3[%c0_11, %c0_12] : memref<8x1xi32, #tpu.memory_space<vmem>>, vector<8x1xi32>
    %cst_13 = arith.constant 0.000000e+00 : f32
    %17 = vector.broadcast %cst_13 : f32 to vector<8x32xf32>
    %cst_14 = arith.constant 0.000000e+00 : f32
    %18 = vector.broadcast %cst_14 : f32 to vector<8x32xf32>
    %19 = vector.extract_strided_slice %14 {offsets = [0, 0], sizes = [8, 32], strides = [1, 1]} : vector<64x32xf32> to vector<8x32xf32>
    %cst_15 = arith.constant dense<0.000000e+00> : vector<8x32xf32>
    %20 = tpu.matmul %17, %15, %cst_15 {dimension_numbers = #tpu.dot_dimension_numbers<[1], [0], [0], [1], [0, 0, 1, 1], [], []>} : vector<8x32xf32>, vector<32x32xf32>, vector<8x32xf32> -> vector<8x32xf32>
    %21 = arith.addf %19, %20 : vector<8x32xf32>
    %22 = math.tanh %21 : vector<8x32xf32>
    %c0_16 = arith.constant 0 : index
    %c0_17 = arith.constant 0 : index
    %c0_18 = arith.constant 0 : index
    %23 = vector.load %arg38[%c0_16, %c0_17, %c0_18] : memref<8x8x32xf32, #tpu.memory_space<vmem>>, vector<1x8x32xf32>
    %24 = vector.shape_cast %23 : vector<1x8x32xf32> to vector<8x32xf32>
    %25 = vector.shape_cast %22 : vector<8x32xf32> to vector<1x8x32xf32>
    tpu.vector_store %arg38[%c0_16, %c0_17, %c0_18], %25 {strides = array<i32>} : memref<8x8x32xf32, #tpu.memory_space<vmem>>, vector<1x8x32xf32>,
    %c1_i32 = arith.constant 1 : i32
    %26 = vector.broadcast %c1_i32 : i32 to vector<8x1xi32>
    %27 = arith.cmpi eq, %16, %26 : vector<8x1xi32>
    %28 = vector.shape_cast %27 : vector<8x1xi1> to vector<8x1xi1>
    %29 = vector.broadcast %28 : vector<8x1xi1> to vector<8x32xi1>
    %30 = arith.select %29, %22, %18 : vector<8x32xi1>, vector<8x32xf32>
    %31 = vector.extract_strided_slice %14 {offsets = [8, 0], sizes = [8, 32], strides = [1, 1]} : vector<64x32xf32> to vector<8x32xf32>
    %cst_19 = arith.constant dense<0.000000e+00> : vector<8x32xf32>
    %32 = tpu.matmul %22, %15, %cst_19 {dimension_numbers = #tpu.dot_dimension_numbers<[1], [0], [0], [1], [0, 0, 1, 1], [], []>} : vector<8x32xf32>, vector<32x32xf32>, vector<8x32xf32> -> vector<8x32xf32>
    %33 = arith.addf %31, %32 : vector<8x32xf32>
    %34 = math.tanh %33 : vector<8x32xf32>
    %c1 = arith.constant 1 : index
    %c0_20 = arith.constant 0 : index
    %c0_21 = arith.constant 0 : index
    %35 = vector.load %arg38[%c1, %c0_20, %c0_21] : memref<8x8x32xf32, #tpu.memory_space<vmem>>, vector<1x8x32xf32>
    %36 = vector.shape_cast %35 : vector<1x8x32xf32> to vector<8x32xf32>
    %37 = vector.shape_cast %34 : vector<8x32xf32> to vector<1x8x32xf32>
    tpu.vector_store %arg38[%c1, %c0_20, %c0_21], %37 {strides = array<i32>} : memref<8x8x32xf32, #tpu.memory_space<vmem>>, vector<1x8x32xf32>,
    %c2_i32 = arith.constant 2 : i32
    %38 = vector.broadcast %c2_i32 : i32 to vector<8x1xi32>
    %39 = arith.cmpi eq, %16, %38 : vector<8x1xi32>
    %40 = vector.shape_cast %39 : vector<8x1xi1> to vector<8x1xi1>
    %41 = vector.broadcast %40 : vector<8x1xi1> to vector<8x32xi1>
    %42 = arith.select %41, %34, %30 : vector<8x32xi1>, vector<8x32xf32>
    %43 = vector.extract_strided_slice %14 {offsets = [16, 0], sizes = [8, 32], strides = [1, 1]} : vector<64x32xf32> to vector<8x32xf32>
    %cst_22 = arith.constant dense<0.000000e+00> : vector<8x32xf32>
    %44 = tpu.matmul %34, %15, %cst_22 {dimension_numbers = #tpu.dot_dimension_numbers<[1], [0], [0], [1], [0, 0, 1, 1], [], []>} : vector<8x32xf32>, vector<32x32xf32>, vector<8x32xf32> -> vector<8x32xf32>
    %45 = arith.addf %43, %44 : vector<8x32xf32>
    %46 = math.tanh %45 : vector<8x32xf32>
    %c2 = arith.constant 2 : index
    %c0_23 = arith.constant 0 : index
    %c0_24 = arith.constant 0 : index
    %47 = vector.load %arg38[%c2, %c0_23, %c0_24] : memref<8x8x32xf32, #tpu.memory_space<vmem>>, vector<1x8x32xf32>
    %48 = vector.shape_cast %47 : vector<1x8x32xf32> to vector<8x32xf32>
    %49 = vector.shape_cast %46 : vector<8x32xf32> to vector<1x8x32xf32>
    tpu.vector_store %arg38[%c2, %c0_23, %c0_24], %49 {strides = array<i32>} : memref<8x8x32xf32, #tpu.memory_space<vmem>>, vector<1x8x32xf32>,
    %c3_i32 = arith.constant 3 : i32
    %50 = vector.broadcast %c3_i32 : i32 to vector<8x1xi32>
    %51 = arith.cmpi eq, %16, %50 : vector<8x1xi32>
    %52 = vector.shape_cast %51 : vector<8x1xi1> to vector<8x1xi1>
    %53 = vector.broadcast %52 : vector<8x1xi1> to vector<8x32xi1>
    %54 = arith.select %53, %46, %42 : vector<8x32xi1>, vector<8x32xf32>
    %55 = vector.extract_strided_slice %14 {offsets = [24, 0], sizes = [8, 32], strides = [1, 1]} : vector<64x32xf32> to vector<8x32xf32>
    %cst_25 = arith.constant dense<0.000000e+00> : vector<8x32xf32>
    %56 = tpu.matmul %46, %15, %cst_25 {dimension_numbers = #tpu.dot_dimension_numbers<[1], [0], [0], [1], [0, 0, 1, 1], [], []>} : vector<8x32xf32>, vector<32x32xf32>, vector<8x32xf32> -> vector<8x32xf32>
    %57 = arith.addf %55, %56 : vector<8x32xf32>
    %58 = math.tanh %57 : vector<8x32xf32>
    %c3 = arith.constant 3 : index
    %c0_26 = arith.constant 0 : index
    %c0_27 = arith.constant 0 : index
    %59 = vector.load %arg38[%c3, %c0_26, %c0_27] : memref<8x8x32xf32, #tpu.memory_space<vmem>>, vector<1x8x32xf32>
    %60 = vector.shape_cast %59 : vector<1x8x32xf32> to vector<8x32xf32>
    %61 = vector.shape_cast %58 : vector<8x32xf32> to vector<1x8x32xf32>
    tpu.vector_store %arg38[%c3, %c0_26, %c0_27], %61 {strides = array<i32>} : memref<8x8x32xf32, #tpu.memory_space<vmem>>, vector<1x8x32xf32>,
    %c4_i32 = arith.constant 4 : i32
    %62 = vector.broadcast %c4_i32 : i32 to vector<8x1xi32>
    %63 = arith.cmpi eq, %16, %62 : vector<8x1xi32>
    %64 = vector.shape_cast %63 : vector<8x1xi1> to vector<8x1xi1>
    %65 = vector.broadcast %64 : vector<8x1xi1> to vector<8x32xi1>
    %66 = arith.select %65, %58, %54 : vector<8x32xi1>, vector<8x32xf32>
    %67 = vector.extract_strided_slice %14 {offsets = [32, 0], sizes = [8, 32], strides = [1, 1]} : vector<64x32xf32> to vector<8x32xf32>
    %cst_28 = arith.constant dense<0.000000e+00> : vector<8x32xf32>
    %68 = tpu.matmul %58, %15, %cst_28 {dimension_numbers = #tpu.dot_dimension_numbers<[1], [0], [0], [1], [0, 0, 1, 1], [], []>} : vector<8x32xf32>, vector<32x32xf32>, vector<8x32xf32> -> vector<8x32xf32>
    %69 = arith.addf %67, %68 : vector<8x32xf32>
    %70 = math.tanh %69 : vector<8x32xf32>
    %c4 = arith.constant 4 : index
    %c0_29 = arith.constant 0 : index
    %c0_30 = arith.constant 0 : index
    %71 = vector.load %arg38[%c4, %c0_29, %c0_30] : memref<8x8x32xf32, #tpu.memory_space<vmem>>, vector<1x8x32xf32>
    %72 = vector.shape_cast %71 : vector<1x8x32xf32> to vector<8x32xf32>
    %73 = vector.shape_cast %70 : vector<8x32xf32> to vector<1x8x32xf32>
    tpu.vector_store %arg38[%c4, %c0_29, %c0_30], %73 {strides = array<i32>} : memref<8x8x32xf32, #tpu.memory_space<vmem>>, vector<1x8x32xf32>,
    %c5_i32 = arith.constant 5 : i32
    %74 = vector.broadcast %c5_i32 : i32 to vector<8x1xi32>
    %75 = arith.cmpi eq, %16, %74 : vector<8x1xi32>
    %76 = vector.shape_cast %75 : vector<8x1xi1> to vector<8x1xi1>
    %77 = vector.broadcast %76 : vector<8x1xi1> to vector<8x32xi1>
    %78 = arith.select %77, %70, %66 : vector<8x32xi1>, vector<8x32xf32>
    %79 = vector.extract_strided_slice %14 {offsets = [40, 0], sizes = [8, 32], strides = [1, 1]} : vector<64x32xf32> to vector<8x32xf32>
    %cst_31 = arith.constant dense<0.000000e+00> : vector<8x32xf32>
    %80 = tpu.matmul %70, %15, %cst_31 {dimension_numbers = #tpu.dot_dimension_numbers<[1], [0], [0], [1], [0, 0, 1, 1], [], []>} : vector<8x32xf32>, vector<32x32xf32>, vector<8x32xf32> -> vector<8x32xf32>
    %81 = arith.addf %79, %80 : vector<8x32xf32>
    %82 = math.tanh %81 : vector<8x32xf32>
    %c5 = arith.constant 5 : index
    %c0_32 = arith.constant 0 : index
    %c0_33 = arith.constant 0 : index
    %83 = vector.load %arg38[%c5, %c0_32, %c0_33] : memref<8x8x32xf32, #tpu.memory_space<vmem>>, vector<1x8x32xf32>
    %84 = vector.shape_cast %83 : vector<1x8x32xf32> to vector<8x32xf32>
    %85 = vector.shape_cast %82 : vector<8x32xf32> to vector<1x8x32xf32>
    tpu.vector_store %arg38[%c5, %c0_32, %c0_33], %85 {strides = array<i32>} : memref<8x8x32xf32, #tpu.memory_space<vmem>>, vector<1x8x32xf32>,
    %c6_i32 = arith.constant 6 : i32
    %86 = vector.broadcast %c6_i32 : i32 to vector<8x1xi32>
    %87 = arith.cmpi eq, %16, %86 : vector<8x1xi32>
    %88 = vector.shape_cast %87 : vector<8x1xi1> to vector<8x1xi1>
    %89 = vector.broadcast %88 : vector<8x1xi1> to vector<8x32xi1>
    %90 = arith.select %89, %82, %78 : vector<8x32xi1>, vector<8x32xf32>
    %91 = vector.extract_strided_slice %14 {offsets = [48, 0], sizes = [8, 32], strides = [1, 1]} : vector<64x32xf32> to vector<8x32xf32>
    %cst_34 = arith.constant dense<0.000000e+00> : vector<8x32xf32>
    %92 = tpu.matmul %82, %15, %cst_34 {dimension_numbers = #tpu.dot_dimension_numbers<[1], [0], [0], [1], [0, 0, 1, 1], [], []>} : vector<8x32xf32>, vector<32x32xf32>, vector<8x32xf32> -> vector<8x32xf32>
    %93 = arith.addf %91, %92 : vector<8x32xf32>
    %94 = math.tanh %93 : vector<8x32xf32>
    %c6 = arith.constant 6 : index
    %c0_35 = arith.constant 0 : index
    %c0_36 = arith.constant 0 : index
    %95 = vector.load %arg38[%c6, %c0_35, %c0_36] : memref<8x8x32xf32, #tpu.memory_space<vmem>>, vector<1x8x32xf32>
    %96 = vector.shape_cast %95 : vector<1x8x32xf32> to vector<8x32xf32>
    %97 = vector.shape_cast %94 : vector<8x32xf32> to vector<1x8x32xf32>
    tpu.vector_store %arg38[%c6, %c0_35, %c0_36], %97 {strides = array<i32>} : memref<8x8x32xf32, #tpu.memory_space<vmem>>, vector<1x8x32xf32>,
    %c7_i32 = arith.constant 7 : i32
    %98 = vector.broadcast %c7_i32 : i32 to vector<8x1xi32>
    %99 = arith.cmpi eq, %16, %98 : vector<8x1xi32>
    %100 = vector.shape_cast %99 : vector<8x1xi1> to vector<8x1xi1>
    %101 = vector.broadcast %100 : vector<8x1xi1> to vector<8x32xi1>
    %102 = arith.select %101, %94, %90 : vector<8x32xi1>, vector<8x32xf32>
    %103 = vector.extract_strided_slice %14 {offsets = [56, 0], sizes = [8, 32], strides = [1, 1]} : vector<64x32xf32> to vector<8x32xf32>
    %cst_37 = arith.constant dense<0.000000e+00> : vector<8x32xf32>
    %104 = tpu.matmul %94, %15, %cst_37 {dimension_numbers = #tpu.dot_dimension_numbers<[1], [0], [0], [1], [0, 0, 1, 1], [], []>} : vector<8x32xf32>, vector<32x32xf32>, vector<8x32xf32> -> vector<8x32xf32>
    %105 = arith.addf %103, %104 : vector<8x32xf32>
    %106 = math.tanh %105 : vector<8x32xf32>
    %c7 = arith.constant 7 : index
    %c0_38 = arith.constant 0 : index
    %c0_39 = arith.constant 0 : index
    %107 = vector.load %arg38[%c7, %c0_38, %c0_39] : memref<8x8x32xf32, #tpu.memory_space<vmem>>, vector<1x8x32xf32>
    %108 = vector.shape_cast %107 : vector<1x8x32xf32> to vector<8x32xf32>
    %109 = vector.shape_cast %106 : vector<8x32xf32> to vector<1x8x32xf32>
    tpu.vector_store %arg38[%c7, %c0_38, %c0_39], %109 {strides = array<i32>} : memref<8x8x32xf32, #tpu.memory_space<vmem>>, vector<1x8x32xf32>,
    %c8_i32 = arith.constant 8 : i32
    %110 = vector.broadcast %c8_i32 : i32 to vector<8x1xi32>
    %111 = arith.cmpi eq, %16, %110 : vector<8x1xi32>
    %112 = vector.shape_cast %111 : vector<8x1xi1> to vector<8x1xi1>
    %113 = vector.broadcast %112 : vector<8x1xi1> to vector<8x32xi1>
    %114 = arith.select %113, %106, %102 : vector<8x32xi1>, vector<8x32xf32>
    %c0_40 = arith.constant 0 : index
    %c0_41 = arith.constant 0 : index
    %c0_42 = arith.constant 0 : index
    %115 = vector.load %arg38[%c0_40, %c0_41, %c0_42] : memref<8x8x32xf32, #tpu.memory_space<vmem>>, vector<8x8x32xf32>
    %116 = vector.shape_cast %115 : vector<8x8x32xf32> to vector<64x32xf32>
    %c0_43 = arith.constant 0 : index
    %c0_44 = arith.constant 0 : index
    %117 = vector.load %arg16[%c0_43, %c0_44] : memref<32x32xf32, #tpu.memory_space<vmem>>, vector<32x32xf32>
    %118 = arith.truncf %116 : vector<64x32xf32> to vector<64x32xbf16>
    %119 = arith.truncf %117 : vector<32x32xf32> to vector<32x32xbf16>
    %cst_45 = arith.constant dense<0.000000e+00> : vector<64x32xf32>
    %120 = tpu.matmul %118, %119, %cst_45 {dimension_numbers = #tpu.dot_dimension_numbers<[1], [0], [0], [1], [0, 0, 1, 1], [], []>} : vector<64x32xbf16>, vector<32x32xbf16>, vector<64x32xf32> -> vector<64x32xf32>
    %c0_46 = arith.constant 0 : index
    %c0_47 = arith.constant 0 : index
    %121 = vector.load %arg17[%c0_46, %c0_47] : memref<1x32xf32, #tpu.memory_space<vmem>>, vector<1x32xf32>
    %122 = vector.broadcast %121 : vector<1x32xf32> to vector<64x32xf32>
    %123 = arith.addf %120, %122 : vector<64x32xf32>
    %124 = vector.shape_cast %123 : vector<64x32xf32> to vector<8x8x32xf32>
    %c0_48 = arith.constant 0 : index
    %c0_49 = arith.constant 0 : index
    %125 = vector.load %arg5[%c0_48, %c0_49] : memref<128x32xf32, #tpu.memory_space<vmem>>, vector<128x32xf32>
    %c0_50 = arith.constant 0 : index
    %c0_51 = arith.constant 0 : index
    %126 = vector.load %arg12[%c0_50, %c0_51] : memref<32x32xf32, #tpu.memory_space<vmem>>, vector<32x32xf32>
    %127 = arith.truncf %125 : vector<128x32xf32> to vector<128x32xbf16>
    %128 = arith.truncf %126 : vector<32x32xf32> to vector<32x32xbf16>
    %cst_52 = arith.constant dense<0.000000e+00> : vector<128x32xf32>
    %129 = tpu.matmul %127, %128, %cst_52 {dimension_numbers = #tpu.dot_dimension_numbers<[1], [0], [0], [1], [0, 0, 1, 1], [], []>} : vector<128x32xbf16>, vector<32x32xbf16>, vector<128x32xf32> -> vector<128x32xf32>
    %c0_53 = arith.constant 0 : index
    %c0_54 = arith.constant 0 : index
    %130 = vector.load %arg14[%c0_53, %c0_54] : memref<1x32xf32, #tpu.memory_space<vmem>>, vector<1x32xf32>
    %131 = vector.broadcast %130 : vector<1x32xf32> to vector<128x32xf32>
    %132 = arith.addf %129, %131 : vector<128x32xf32>
    %c0_55 = arith.constant 0 : index
    %c0_56 = arith.constant 0 : index
    %133 = vector.load %arg15[%c0_55, %c0_56] : memref<32x32xf32, #tpu.memory_space<vmem>>, vector<32x32xf32>
    %134 = arith.truncf %125 : vector<128x32xf32> to vector<128x32xbf16>
    %135 = arith.truncf %133 : vector<32x32xf32> to vector<32x32xbf16>
    %cst_57 = arith.constant dense<0.000000e+00> : vector<128x32xf32>
    %136 = tpu.matmul %134, %135, %cst_57 {dimension_numbers = #tpu.dot_dimension_numbers<[1], [0], [0], [1], [0, 0, 1, 1], [], []>} : vector<128x32xbf16>, vector<32x32xbf16>, vector<128x32xf32> -> vector<128x32xf32>
    %c0_58 = arith.constant 0 : index
    %c0_59 = arith.constant 0 : index
    %137 = vector.load %arg13[%c0_58, %c0_59] : memref<32x32xf32, #tpu.memory_space<vmem>>, vector<32x32xf32>
    %c0_60 = arith.constant 0 : index
    %c0_61 = arith.constant 0 : index
    %138 = vector.load %arg6[%c0_60, %c0_61] : memref<8x1xi32, #tpu.memory_space<vmem>>, vector<8x1xi32>
    %cst_62 = arith.constant 0.000000e+00 : f32
    %139 = vector.broadcast %cst_62 : f32 to vector<8x32xf32>
    %cst_63 = arith.constant 0.000000e+00 : f32
    %140 = vector.broadcast %cst_63 : f32 to vector<8x32xf32>
    %141 = vector.extract_strided_slice %132 {offsets = [0, 0], sizes = [8, 32], strides = [1, 1]} : vector<128x32xf32> to vector<8x32xf32>
    %cst_64 = arith.constant dense<0.000000e+00> : vector<8x32xf32>
    %142 = tpu.matmul %139, %137, %cst_64 {dimension_numbers = #tpu.dot_dimension_numbers<[1], [0], [0], [1], [0, 0, 1, 1], [], []>} : vector<8x32xf32>, vector<32x32xf32>, vector<8x32xf32> -> vector<8x32xf32>
    %143 = arith.addf %141, %142 : vector<8x32xf32>
    %144 = math.tanh %143 : vector<8x32xf32>
    %145 = vector.extract_strided_slice %136 {offsets = [0, 0], sizes = [8, 32], strides = [1, 1]} : vector<128x32xf32> to vector<8x32xf32>
    %146 = arith.addf %144, %145 : vector<8x32xf32>
    %cst_65 = arith.constant dense<0.000000e+00> : vector<8x32xf32>
    %147 = tpu.matmul %6, %146, %cst_65 {dimension_numbers = #tpu.dot_dimension_numbers<[1], [0], [0], [1], [0, 0, 1, 1], [], []>} : vector<8x8xf32>, vector<8x32xf32>, vector<8x32xf32> -> vector<8x32xf32>
    %c0_66 = arith.constant 0 : index
    %c0_67 = arith.constant 0 : index
    %c0_68 = arith.constant 0 : index
    %148 = vector.load %arg39[%c0_66, %c0_67, %c0_68] : memref<16x8x32xf32, #tpu.memory_space<vmem>>, vector<1x8x32xf32>
    %149 = vector.shape_cast %148 : vector<1x8x32xf32> to vector<8x32xf32>
    %150 = vector.shape_cast %147 : vector<8x32xf32> to vector<1x8x32xf32>
    tpu.vector_store %arg39[%c0_66, %c0_67, %c0_68], %150 {strides = array<i32>} : memref<16x8x32xf32, #tpu.memory_space<vmem>>, vector<1x8x32xf32>,
    %c1_i32_69 = arith.constant 1 : i32
    %151 = vector.broadcast %c1_i32_69 : i32 to vector<8x1xi32>
    %152 = arith.cmpi eq, %138, %151 : vector<8x1xi32>
    %153 = vector.shape_cast %152 : vector<8x1xi1> to vector<8x1xi1>
    %154 = vector.broadcast %153 : vector<8x1xi1> to vector<8x32xi1>
    %155 = arith.select %154, %144, %140 : vector<8x32xi1>, vector<8x32xf32>
    %156 = vector.extract_strided_slice %132 {offsets = [8, 0], sizes = [8, 32], strides = [1, 1]} : vector<128x32xf32> to vector<8x32xf32>
    %cst_70 = arith.constant dense<0.000000e+00> : vector<8x32xf32>
    %157 = tpu.matmul %144, %137, %cst_70 {dimension_numbers = #tpu.dot_dimension_numbers<[1], [0], [0], [1], [0, 0, 1, 1], [], []>} : vector<8x32xf32>, vector<32x32xf32>, vector<8x32xf32> -> vector<8x32xf32>
    %158 = arith.addf %156, %157 : vector<8x32xf32>
    %159 = math.tanh %158 : vector<8x32xf32>
    %160 = vector.extract_strided_slice %136 {offsets = [8, 0], sizes = [8, 32], strides = [1, 1]} : vector<128x32xf32> to vector<8x32xf32>
    %161 = arith.addf %159, %160 : vector<8x32xf32>
    %cst_71 = arith.constant dense<0.000000e+00> : vector<8x32xf32>
    %162 = tpu.matmul %6, %161, %cst_71 {dimension_numbers = #tpu.dot_dimension_numbers<[1], [0], [0], [1], [0, 0, 1, 1], [], []>} : vector<8x8xf32>, vector<8x32xf32>, vector<8x32xf32> -> vector<8x32xf32>
    %c1_72 = arith.constant 1 : index
    %c0_73 = arith.constant 0 : index
    %c0_74 = arith.constant 0 : index
    %163 = vector.load %arg39[%c1_72, %c0_73, %c0_74] : memref<16x8x32xf32, #tpu.memory_space<vmem>>, vector<1x8x32xf32>
    %164 = vector.shape_cast %163 : vector<1x8x32xf32> to vector<8x32xf32>
    %165 = vector.shape_cast %162 : vector<8x32xf32> to vector<1x8x32xf32>
    tpu.vector_store %arg39[%c1_72, %c0_73, %c0_74], %165 {strides = array<i32>} : memref<16x8x32xf32, #tpu.memory_space<vmem>>, vector<1x8x32xf32>,
    %c2_i32_75 = arith.constant 2 : i32
    %166 = vector.broadcast %c2_i32_75 : i32 to vector<8x1xi32>
    %167 = arith.cmpi eq, %138, %166 : vector<8x1xi32>
    %168 = vector.shape_cast %167 : vector<8x1xi1> to vector<8x1xi1>
    %169 = vector.broadcast %168 : vector<8x1xi1> to vector<8x32xi1>
    %170 = arith.select %169, %159, %155 : vector<8x32xi1>, vector<8x32xf32>
    %171 = vector.extract_strided_slice %132 {offsets = [16, 0], sizes = [8, 32], strides = [1, 1]} : vector<128x32xf32> to vector<8x32xf32>
    %cst_76 = arith.constant dense<0.000000e+00> : vector<8x32xf32>
    %172 = tpu.matmul %159, %137, %cst_76 {dimension_numbers = #tpu.dot_dimension_numbers<[1], [0], [0], [1], [0, 0, 1, 1], [], []>} : vector<8x32xf32>, vector<32x32xf32>, vector<8x32xf32> -> vector<8x32xf32>
    %173 = arith.addf %171, %172 : vector<8x32xf32>
    %174 = math.tanh %173 : vector<8x32xf32>
    %175 = vector.extract_strided_slice %136 {offsets = [16, 0], sizes = [8, 32], strides = [1, 1]} : vector<128x32xf32> to vector<8x32xf32>
    %176 = arith.addf %174, %175 : vector<8x32xf32>
    %cst_77 = arith.constant dense<0.000000e+00> : vector<8x32xf32>
    %177 = tpu.matmul %6, %176, %cst_77 {dimension_numbers = #tpu.dot_dimension_numbers<[1], [0], [0], [1], [0, 0, 1, 1], [], []>} : vector<8x8xf32>, vector<8x32xf32>, vector<8x32xf32> -> vector<8x32xf32>
    %c2_78 = arith.constant 2 : index
    %c0_79 = arith.constant 0 : index
    %c0_80 = arith.constant 0 : index
    %178 = vector.load %arg39[%c2_78, %c0_79, %c0_80] : memref<16x8x32xf32, #tpu.memory_space<vmem>>, vector<1x8x32xf32>
    %179 = vector.shape_cast %178 : vector<1x8x32xf32> to vector<8x32xf32>
    %180 = vector.shape_cast %177 : vector<8x32xf32> to vector<1x8x32xf32>
    tpu.vector_store %arg39[%c2_78, %c0_79, %c0_80], %180 {strides = array<i32>} : memref<16x8x32xf32, #tpu.memory_space<vmem>>, vector<1x8x32xf32>,
    %c3_i32_81 = arith.constant 3 : i32
    %181 = vector.broadcast %c3_i32_81 : i32 to vector<8x1xi32>
    %182 = arith.cmpi eq, %138, %181 : vector<8x1xi32>
    %183 = vector.shape_cast %182 : vector<8x1xi1> to vector<8x1xi1>
    %184 = vector.broadcast %183 : vector<8x1xi1> to vector<8x32xi1>
    %185 = arith.select %184, %174, %170 : vector<8x32xi1>, vector<8x32xf32>
    %186 = vector.extract_strided_slice %132 {offsets = [24, 0], sizes = [8, 32], strides = [1, 1]} : vector<128x32xf32> to vector<8x32xf32>
    %cst_82 = arith.constant dense<0.000000e+00> : vector<8x32xf32>
    %187 = tpu.matmul %174, %137, %cst_82 {dimension_numbers = #tpu.dot_dimension_numbers<[1], [0], [0], [1], [0, 0, 1, 1], [], []>} : vector<8x32xf32>, vector<32x32xf32>, vector<8x32xf32> -> vector<8x32xf32>
    %188 = arith.addf %186, %187 : vector<8x32xf32>
    %189 = math.tanh %188 : vector<8x32xf32>
    %190 = vector.extract_strided_slice %136 {offsets = [24, 0], sizes = [8, 32], strides = [1, 1]} : vector<128x32xf32> to vector<8x32xf32>
    %191 = arith.addf %189, %190 : vector<8x32xf32>
    %cst_83 = arith.constant dense<0.000000e+00> : vector<8x32xf32>
    %192 = tpu.matmul %6, %191, %cst_83 {dimension_numbers = #tpu.dot_dimension_numbers<[1], [0], [0], [1], [0, 0, 1, 1], [], []>} : vector<8x8xf32>, vector<8x32xf32>, vector<8x32xf32> -> vector<8x32xf32>
    %c3_84 = arith.constant 3 : index
    %c0_85 = arith.constant 0 : index
    %c0_86 = arith.constant 0 : index
    %193 = vector.load %arg39[%c3_84, %c0_85, %c0_86] : memref<16x8x32xf32, #tpu.memory_space<vmem>>, vector<1x8x32xf32>
    %194 = vector.shape_cast %193 : vector<1x8x32xf32> to vector<8x32xf32>
    %195 = vector.shape_cast %192 : vector<8x32xf32> to vector<1x8x32xf32>
    tpu.vector_store %arg39[%c3_84, %c0_85, %c0_86], %195 {strides = array<i32>} : memref<16x8x32xf32, #tpu.memory_space<vmem>>, vector<1x8x32xf32>,
    %c4_i32_87 = arith.constant 4 : i32
    %196 = vector.broadcast %c4_i32_87 : i32 to vector<8x1xi32>
    %197 = arith.cmpi eq, %138, %196 : vector<8x1xi32>
    %198 = vector.shape_cast %197 : vector<8x1xi1> to vector<8x1xi1>
    %199 = vector.broadcast %198 : vector<8x1xi1> to vector<8x32xi1>
    %200 = arith.select %199, %189, %185 : vector<8x32xi1>, vector<8x32xf32>
    %201 = vector.extract_strided_slice %132 {offsets = [32, 0], sizes = [8, 32], strides = [1, 1]} : vector<128x32xf32> to vector<8x32xf32>
    %cst_88 = arith.constant dense<0.000000e+00> : vector<8x32xf32>
    %202 = tpu.matmul %189, %137, %cst_88 {dimension_numbers = #tpu.dot_dimension_numbers<[1], [0], [0], [1], [0, 0, 1, 1], [], []>} : vector<8x32xf32>, vector<32x32xf32>, vector<8x32xf32> -> vector<8x32xf32>
    %203 = arith.addf %201, %202 : vector<8x32xf32>
    %204 = math.tanh %203 : vector<8x32xf32>
    %205 = vector.extract_strided_slice %136 {offsets = [32, 0], sizes = [8, 32], strides = [1, 1]} : vector<128x32xf32> to vector<8x32xf32>
    %206 = arith.addf %204, %205 : vector<8x32xf32>
    %cst_89 = arith.constant dense<0.000000e+00> : vector<8x32xf32>
    %207 = tpu.matmul %6, %206, %cst_89 {dimension_numbers = #tpu.dot_dimension_numbers<[1], [0], [0], [1], [0, 0, 1, 1], [], []>} : vector<8x8xf32>, vector<8x32xf32>, vector<8x32xf32> -> vector<8x32xf32>
    %c4_90 = arith.constant 4 : index
    %c0_91 = arith.constant 0 : index
    %c0_92 = arith.constant 0 : index
    %208 = vector.load %arg39[%c4_90, %c0_91, %c0_92] : memref<16x8x32xf32, #tpu.memory_space<vmem>>, vector<1x8x32xf32>
    %209 = vector.shape_cast %208 : vector<1x8x32xf32> to vector<8x32xf32>
    %210 = vector.shape_cast %207 : vector<8x32xf32> to vector<1x8x32xf32>
    tpu.vector_store %arg39[%c4_90, %c0_91, %c0_92], %210 {strides = array<i32>} : memref<16x8x32xf32, #tpu.memory_space<vmem>>, vector<1x8x32xf32>,
    %c5_i32_93 = arith.constant 5 : i32
    %211 = vector.broadcast %c5_i32_93 : i32 to vector<8x1xi32>
    %212 = arith.cmpi eq, %138, %211 : vector<8x1xi32>
    %213 = vector.shape_cast %212 : vector<8x1xi1> to vector<8x1xi1>
    %214 = vector.broadcast %213 : vector<8x1xi1> to vector<8x32xi1>
    %215 = arith.select %214, %204, %200 : vector<8x32xi1>, vector<8x32xf32>
    %216 = vector.extract_strided_slice %132 {offsets = [40, 0], sizes = [8, 32], strides = [1, 1]} : vector<128x32xf32> to vector<8x32xf32>
    %cst_94 = arith.constant dense<0.000000e+00> : vector<8x32xf32>
    %217 = tpu.matmul %204, %137, %cst_94 {dimension_numbers = #tpu.dot_dimension_numbers<[1], [0], [0], [1], [0, 0, 1, 1], [], []>} : vector<8x32xf32>, vector<32x32xf32>, vector<8x32xf32> -> vector<8x32xf32>
    %218 = arith.addf %216, %217 : vector<8x32xf32>
    %219 = math.tanh %218 : vector<8x32xf32>
    %220 = vector.extract_strided_slice %136 {offsets = [40, 0], sizes = [8, 32], strides = [1, 1]} : vector<128x32xf32> to vector<8x32xf32>
    %221 = arith.addf %219, %220 : vector<8x32xf32>
    %cst_95 = arith.constant dense<0.000000e+00> : vector<8x32xf32>
    %222 = tpu.matmul %6, %221, %cst_95 {dimension_numbers = #tpu.dot_dimension_numbers<[1], [0], [0], [1], [0, 0, 1, 1], [], []>} : vector<8x8xf32>, vector<8x32xf32>, vector<8x32xf32> -> vector<8x32xf32>
    %c5_96 = arith.constant 5 : index
    %c0_97 = arith.constant 0 : index
    %c0_98 = arith.constant 0 : index
    %223 = vector.load %arg39[%c5_96, %c0_97, %c0_98] : memref<16x8x32xf32, #tpu.memory_space<vmem>>, vector<1x8x32xf32>
    %224 = vector.shape_cast %223 : vector<1x8x32xf32> to vector<8x32xf32>
    %225 = vector.shape_cast %222 : vector<8x32xf32> to vector<1x8x32xf32>
    tpu.vector_store %arg39[%c5_96, %c0_97, %c0_98], %225 {strides = array<i32>} : memref<16x8x32xf32, #tpu.memory_space<vmem>>, vector<1x8x32xf32>,
    %c6_i32_99 = arith.constant 6 : i32
    %226 = vector.broadcast %c6_i32_99 : i32 to vector<8x1xi32>
    %227 = arith.cmpi eq, %138, %226 : vector<8x1xi32>
    %228 = vector.shape_cast %227 : vector<8x1xi1> to vector<8x1xi1>
    %229 = vector.broadcast %228 : vector<8x1xi1> to vector<8x32xi1>
    %230 = arith.select %229, %219, %215 : vector<8x32xi1>, vector<8x32xf32>
    %231 = vector.extract_strided_slice %132 {offsets = [48, 0], sizes = [8, 32], strides = [1, 1]} : vector<128x32xf32> to vector<8x32xf32>
    %cst_100 = arith.constant dense<0.000000e+00> : vector<8x32xf32>
    %232 = tpu.matmul %219, %137, %cst_100 {dimension_numbers = #tpu.dot_dimension_numbers<[1], [0], [0], [1], [0, 0, 1, 1], [], []>} : vector<8x32xf32>, vector<32x32xf32>, vector<8x32xf32> -> vector<8x32xf32>
    %233 = arith.addf %231, %232 : vector<8x32xf32>
    %234 = math.tanh %233 : vector<8x32xf32>
    %235 = vector.extract_strided_slice %136 {offsets = [48, 0], sizes = [8, 32], strides = [1, 1]} : vector<128x32xf32> to vector<8x32xf32>
    %236 = arith.addf %234, %235 : vector<8x32xf32>
    %cst_101 = arith.constant dense<0.000000e+00> : vector<8x32xf32>
    %237 = tpu.matmul %6, %236, %cst_101 {dimension_numbers = #tpu.dot_dimension_numbers<[1], [0], [0], [1], [0, 0, 1, 1], [], []>} : vector<8x8xf32>, vector<8x32xf32>, vector<8x32xf32> -> vector<8x32xf32>
    %c6_102 = arith.constant 6 : index
    %c0_103 = arith.constant 0 : index
    %c0_104 = arith.constant 0 : index
    %238 = vector.load %arg39[%c6_102, %c0_103, %c0_104] : memref<16x8x32xf32, #tpu.memory_space<vmem>>, vector<1x8x32xf32>
    %239 = vector.shape_cast %238 : vector<1x8x32xf32> to vector<8x32xf32>
    %240 = vector.shape_cast %237 : vector<8x32xf32> to vector<1x8x32xf32>
    tpu.vector_store %arg39[%c6_102, %c0_103, %c0_104], %240 {strides = array<i32>} : memref<16x8x32xf32, #tpu.memory_space<vmem>>, vector<1x8x32xf32>,
    %c7_i32_105 = arith.constant 7 : i32
    %241 = vector.broadcast %c7_i32_105 : i32 to vector<8x1xi32>
    %242 = arith.cmpi eq, %138, %241 : vector<8x1xi32>
    %243 = vector.shape_cast %242 : vector<8x1xi1> to vector<8x1xi1>
    %244 = vector.broadcast %243 : vector<8x1xi1> to vector<8x32xi1>
    %245 = arith.select %244, %234, %230 : vector<8x32xi1>, vector<8x32xf32>
    %246 = vector.extract_strided_slice %132 {offsets = [56, 0], sizes = [8, 32], strides = [1, 1]} : vector<128x32xf32> to vector<8x32xf32>
    %cst_106 = arith.constant dense<0.000000e+00> : vector<8x32xf32>
    %247 = tpu.matmul %234, %137, %cst_106 {dimension_numbers = #tpu.dot_dimension_numbers<[1], [0], [0], [1], [0, 0, 1, 1], [], []>} : vector<8x32xf32>, vector<32x32xf32>, vector<8x32xf32> -> vector<8x32xf32>
    %248 = arith.addf %246, %247 : vector<8x32xf32>
    %249 = math.tanh %248 : vector<8x32xf32>
    %250 = vector.extract_strided_slice %136 {offsets = [56, 0], sizes = [8, 32], strides = [1, 1]} : vector<128x32xf32> to vector<8x32xf32>
    %251 = arith.addf %249, %250 : vector<8x32xf32>
    %cst_107 = arith.constant dense<0.000000e+00> : vector<8x32xf32>
    %252 = tpu.matmul %6, %251, %cst_107 {dimension_numbers = #tpu.dot_dimension_numbers<[1], [0], [0], [1], [0, 0, 1, 1], [], []>} : vector<8x8xf32>, vector<8x32xf32>, vector<8x32xf32> -> vector<8x32xf32>
    %c7_108 = arith.constant 7 : index
    %c0_109 = arith.constant 0 : index
    %c0_110 = arith.constant 0 : index
    %253 = vector.load %arg39[%c7_108, %c0_109, %c0_110] : memref<16x8x32xf32, #tpu.memory_space<vmem>>, vector<1x8x32xf32>
    %254 = vector.shape_cast %253 : vector<1x8x32xf32> to vector<8x32xf32>
    %255 = vector.shape_cast %252 : vector<8x32xf32> to vector<1x8x32xf32>
    tpu.vector_store %arg39[%c7_108, %c0_109, %c0_110], %255 {strides = array<i32>} : memref<16x8x32xf32, #tpu.memory_space<vmem>>, vector<1x8x32xf32>,
    %c8_i32_111 = arith.constant 8 : i32
    %256 = vector.broadcast %c8_i32_111 : i32 to vector<8x1xi32>
    %257 = arith.cmpi eq, %138, %256 : vector<8x1xi32>
    %258 = vector.shape_cast %257 : vector<8x1xi1> to vector<8x1xi1>
    %259 = vector.broadcast %258 : vector<8x1xi1> to vector<8x32xi1>
    %260 = arith.select %259, %249, %245 : vector<8x32xi1>, vector<8x32xf32>
    %261 = vector.extract_strided_slice %132 {offsets = [64, 0], sizes = [8, 32], strides = [1, 1]} : vector<128x32xf32> to vector<8x32xf32>
    %cst_112 = arith.constant dense<0.000000e+00> : vector<8x32xf32>
    %262 = tpu.matmul %249, %137, %cst_112 {dimension_numbers = #tpu.dot_dimension_numbers<[1], [0], [0], [1], [0, 0, 1, 1], [], []>} : vector<8x32xf32>, vector<32x32xf32>, vector<8x32xf32> -> vector<8x32xf32>
    %263 = arith.addf %261, %262 : vector<8x32xf32>
    %264 = math.tanh %263 : vector<8x32xf32>
    %265 = vector.extract_strided_slice %136 {offsets = [64, 0], sizes = [8, 32], strides = [1, 1]} : vector<128x32xf32> to vector<8x32xf32>
    %266 = arith.addf %264, %265 : vector<8x32xf32>
    %cst_113 = arith.constant dense<0.000000e+00> : vector<8x32xf32>
    %267 = tpu.matmul %6, %266, %cst_113 {dimension_numbers = #tpu.dot_dimension_numbers<[1], [0], [0], [1], [0, 0, 1, 1], [], []>} : vector<8x8xf32>, vector<8x32xf32>, vector<8x32xf32> -> vector<8x32xf32>
    %c8 = arith.constant 8 : index
    %c0_114 = arith.constant 0 : index
    %c0_115 = arith.constant 0 : index
    %268 = vector.load %arg39[%c8, %c0_114, %c0_115] : memref<16x8x32xf32, #tpu.memory_space<vmem>>, vector<1x8x32xf32>
    %269 = vector.shape_cast %268 : vector<1x8x32xf32> to vector<8x32xf32>
    %270 = vector.shape_cast %267 : vector<8x32xf32> to vector<1x8x32xf32>
    tpu.vector_store %arg39[%c8, %c0_114, %c0_115], %270 {strides = array<i32>} : memref<16x8x32xf32, #tpu.memory_space<vmem>>, vector<1x8x32xf32>,
    %c9_i32 = arith.constant 9 : i32
    %271 = vector.broadcast %c9_i32 : i32 to vector<8x1xi32>
    %272 = arith.cmpi eq, %138, %271 : vector<8x1xi32>
    %273 = vector.shape_cast %272 : vector<8x1xi1> to vector<8x1xi1>
    %274 = vector.broadcast %273 : vector<8x1xi1> to vector<8x32xi1>
    %275 = arith.select %274, %264, %260 : vector<8x32xi1>, vector<8x32xf32>
    %276 = vector.extract_strided_slice %132 {offsets = [72, 0], sizes = [8, 32], strides = [1, 1]} : vector<128x32xf32> to vector<8x32xf32>
    %cst_116 = arith.constant dense<0.000000e+00> : vector<8x32xf32>
    %277 = tpu.matmul %264, %137, %cst_116 {dimension_numbers = #tpu.dot_dimension_numbers<[1], [0], [0], [1], [0, 0, 1, 1], [], []>} : vector<8x32xf32>, vector<32x32xf32>, vector<8x32xf32> -> vector<8x32xf32>
    %278 = arith.addf %276, %277 : vector<8x32xf32>
    %279 = math.tanh %278 : vector<8x32xf32>
    %280 = vector.extract_strided_slice %136 {offsets = [72, 0], sizes = [8, 32], strides = [1, 1]} : vector<128x32xf32> to vector<8x32xf32>
    %281 = arith.addf %279, %280 : vector<8x32xf32>
    %cst_117 = arith.constant dense<0.000000e+00> : vector<8x32xf32>
    %282 = tpu.matmul %6, %281, %cst_117 {dimension_numbers = #tpu.dot_dimension_numbers<[1], [0], [0], [1], [0, 0, 1, 1], [], []>} : vector<8x8xf32>, vector<8x32xf32>, vector<8x32xf32> -> vector<8x32xf32>
    %c9 = arith.constant 9 : index
    %c0_118 = arith.constant 0 : index
    %c0_119 = arith.constant 0 : index
    %283 = vector.load %arg39[%c9, %c0_118, %c0_119] : memref<16x8x32xf32, #tpu.memory_space<vmem>>, vector<1x8x32xf32>
    %284 = vector.shape_cast %283 : vector<1x8x32xf32> to vector<8x32xf32>
    %285 = vector.shape_cast %282 : vector<8x32xf32> to vector<1x8x32xf32>
    tpu.vector_store %arg39[%c9, %c0_118, %c0_119], %285 {strides = array<i32>} : memref<16x8x32xf32, #tpu.memory_space<vmem>>, vector<1x8x32xf32>,
    %c10_i32 = arith.constant 10 : i32
    %286 = vector.broadcast %c10_i32 : i32 to vector<8x1xi32>
    %287 = arith.cmpi eq, %138, %286 : vector<8x1xi32>
    %288 = vector.shape_cast %287 : vector<8x1xi1> to vector<8x1xi1>
    %289 = vector.broadcast %288 : vector<8x1xi1> to vector<8x32xi1>
    %290 = arith.select %289, %279, %275 : vector<8x32xi1>, vector<8x32xf32>
    %291 = vector.extract_strided_slice %132 {offsets = [80, 0], sizes = [8, 32], strides = [1, 1]} : vector<128x32xf32> to vector<8x32xf32>
    %cst_120 = arith.constant dense<0.000000e+00> : vector<8x32xf32>
    %292 = tpu.matmul %279, %137, %cst_120 {dimension_numbers = #tpu.dot_dimension_numbers<[1], [0], [0], [1], [0, 0, 1, 1], [], []>} : vector<8x32xf32>, vector<32x32xf32>, vector<8x32xf32> -> vector<8x32xf32>
    %293 = arith.addf %291, %292 : vector<8x32xf32>
    %294 = math.tanh %293 : vector<8x32xf32>
    %295 = vector.extract_strided_slice %136 {offsets = [80, 0], sizes = [8, 32], strides = [1, 1]} : vector<128x32xf32> to vector<8x32xf32>
    %296 = arith.addf %294, %295 : vector<8x32xf32>
    %cst_121 = arith.constant dense<0.000000e+00> : vector<8x32xf32>
    %297 = tpu.matmul %6, %296, %cst_121 {dimension_numbers = #tpu.dot_dimension_numbers<[1], [0], [0], [1], [0, 0, 1, 1], [], []>} : vector<8x8xf32>, vector<8x32xf32>, vector<8x32xf32> -> vector<8x32xf32>
    %c10 = arith.constant 10 : index
    %c0_122 = arith.constant 0 : index
    %c0_123 = arith.constant 0 : index
    %298 = vector.load %arg39[%c10, %c0_122, %c0_123] : memref<16x8x32xf32, #tpu.memory_space<vmem>>, vector<1x8x32xf32>
    %299 = vector.shape_cast %298 : vector<1x8x32xf32> to vector<8x32xf32>
    %300 = vector.shape_cast %297 : vector<8x32xf32> to vector<1x8x32xf32>
    tpu.vector_store %arg39[%c10, %c0_122, %c0_123], %300 {strides = array<i32>} : memref<16x8x32xf32, #tpu.memory_space<vmem>>, vector<1x8x32xf32>,
    %c11_i32 = arith.constant 11 : i32
    %301 = vector.broadcast %c11_i32 : i32 to vector<8x1xi32>
    %302 = arith.cmpi eq, %138, %301 : vector<8x1xi32>
    %303 = vector.shape_cast %302 : vector<8x1xi1> to vector<8x1xi1>
    %304 = vector.broadcast %303 : vector<8x1xi1> to vector<8x32xi1>
    %305 = arith.select %304, %294, %290 : vector<8x32xi1>, vector<8x32xf32>
    %306 = vector.extract_strided_slice %132 {offsets = [88, 0], sizes = [8, 32], strides = [1, 1]} : vector<128x32xf32> to vector<8x32xf32>
    %cst_124 = arith.constant dense<0.000000e+00> : vector<8x32xf32>
    %307 = tpu.matmul %294, %137, %cst_124 {dimension_numbers = #tpu.dot_dimension_numbers<[1], [0], [0], [1], [0, 0, 1, 1], [], []>} : vector<8x32xf32>, vector<32x32xf32>, vector<8x32xf32> -> vector<8x32xf32>
    %308 = arith.addf %306, %307 : vector<8x32xf32>
    %309 = math.tanh %308 : vector<8x32xf32>
    %310 = vector.extract_strided_slice %136 {offsets = [88, 0], sizes = [8, 32], strides = [1, 1]} : vector<128x32xf32> to vector<8x32xf32>
    %311 = arith.addf %309, %310 : vector<8x32xf32>
    %cst_125 = arith.constant dense<0.000000e+00> : vector<8x32xf32>
    %312 = tpu.matmul %6, %311, %cst_125 {dimension_numbers = #tpu.dot_dimension_numbers<[1], [0], [0], [1], [0, 0, 1, 1], [], []>} : vector<8x8xf32>, vector<8x32xf32>, vector<8x32xf32> -> vector<8x32xf32>
    %c11 = arith.constant 11 : index
    %c0_126 = arith.constant 0 : index
    %c0_127 = arith.constant 0 : index
    %313 = vector.load %arg39[%c11, %c0_126, %c0_127] : memref<16x8x32xf32, #tpu.memory_space<vmem>>, vector<1x8x32xf32>
    %314 = vector.shape_cast %313 : vector<1x8x32xf32> to vector<8x32xf32>
    %315 = vector.shape_cast %312 : vector<8x32xf32> to vector<1x8x32xf32>
    tpu.vector_store %arg39[%c11, %c0_126, %c0_127], %315 {strides = array<i32>} : memref<16x8x32xf32, #tpu.memory_space<vmem>>, vector<1x8x32xf32>,
    %c12_i32 = arith.constant 12 : i32
    %316 = vector.broadcast %c12_i32 : i32 to vector<8x1xi32>
    %317 = arith.cmpi eq, %138, %316 : vector<8x1xi32>
    %318 = vector.shape_cast %317 : vector<8x1xi1> to vector<8x1xi1>
    %319 = vector.broadcast %318 : vector<8x1xi1> to vector<8x32xi1>
    %320 = arith.select %319, %309, %305 : vector<8x32xi1>, vector<8x32xf32>
    %321 = vector.extract_strided_slice %132 {offsets = [96, 0], sizes = [8, 32], strides = [1, 1]} : vector<128x32xf32> to vector<8x32xf32>
    %cst_128 = arith.constant dense<0.000000e+00> : vector<8x32xf32>
    %322 = tpu.matmul %309, %137, %cst_128 {dimension_numbers = #tpu.dot_dimension_numbers<[1], [0], [0], [1], [0, 0, 1, 1], [], []>} : vector<8x32xf32>, vector<32x32xf32>, vector<8x32xf32> -> vector<8x32xf32>
    %323 = arith.addf %321, %322 : vector<8x32xf32>
    %324 = math.tanh %323 : vector<8x32xf32>
    %325 = vector.extract_strided_slice %136 {offsets = [96, 0], sizes = [8, 32], strides = [1, 1]} : vector<128x32xf32> to vector<8x32xf32>
    %326 = arith.addf %324, %325 : vector<8x32xf32>
    %cst_129 = arith.constant dense<0.000000e+00> : vector<8x32xf32>
    %327 = tpu.matmul %6, %326, %cst_129 {dimension_numbers = #tpu.dot_dimension_numbers<[1], [0], [0], [1], [0, 0, 1, 1], [], []>} : vector<8x8xf32>, vector<8x32xf32>, vector<8x32xf32> -> vector<8x32xf32>
    %c12 = arith.constant 12 : index
    %c0_130 = arith.constant 0 : index
    %c0_131 = arith.constant 0 : index
    %328 = vector.load %arg39[%c12, %c0_130, %c0_131] : memref<16x8x32xf32, #tpu.memory_space<vmem>>, vector<1x8x32xf32>
    %329 = vector.shape_cast %328 : vector<1x8x32xf32> to vector<8x32xf32>
    %330 = vector.shape_cast %327 : vector<8x32xf32> to vector<1x8x32xf32>
    tpu.vector_store %arg39[%c12, %c0_130, %c0_131], %330 {strides = array<i32>} : memref<16x8x32xf32, #tpu.memory_space<vmem>>, vector<1x8x32xf32>,
    %c13_i32 = arith.constant 13 : i32
    %331 = vector.broadcast %c13_i32 : i32 to vector<8x1xi32>
    %332 = arith.cmpi eq, %138, %331 : vector<8x1xi32>
    %333 = vector.shape_cast %332 : vector<8x1xi1> to vector<8x1xi1>
    %334 = vector.broadcast %333 : vector<8x1xi1> to vector<8x32xi1>
    %335 = arith.select %334, %324, %320 : vector<8x32xi1>, vector<8x32xf32>
    %336 = vector.extract_strided_slice %132 {offsets = [104, 0], sizes = [8, 32], strides = [1, 1]} : vector<128x32xf32> to vector<8x32xf32>
    %cst_132 = arith.constant dense<0.000000e+00> : vector<8x32xf32>
    %337 = tpu.matmul %324, %137, %cst_132 {dimension_numbers = #tpu.dot_dimension_numbers<[1], [0], [0], [1], [0, 0, 1, 1], [], []>} : vector<8x32xf32>, vector<32x32xf32>, vector<8x32xf32> -> vector<8x32xf32>
    %338 = arith.addf %336, %337 : vector<8x32xf32>
    %339 = math.tanh %338 : vector<8x32xf32>
    %340 = vector.extract_strided_slice %136 {offsets = [104, 0], sizes = [8, 32], strides = [1, 1]} : vector<128x32xf32> to vector<8x32xf32>
    %341 = arith.addf %339, %340 : vector<8x32xf32>
    %cst_133 = arith.constant dense<0.000000e+00> : vector<8x32xf32>
    %342 = tpu.matmul %6, %341, %cst_133 {dimension_numbers = #tpu.dot_dimension_numbers<[1], [0], [0], [1], [0, 0, 1, 1], [], []>} : vector<8x8xf32>, vector<8x32xf32>, vector<8x32xf32> -> vector<8x32xf32>
    %c13 = arith.constant 13 : index
    %c0_134 = arith.constant 0 : index
    %c0_135 = arith.constant 0 : index
    %343 = vector.load %arg39[%c13, %c0_134, %c0_135] : memref<16x8x32xf32, #tpu.memory_space<vmem>>, vector<1x8x32xf32>
    %344 = vector.shape_cast %343 : vector<1x8x32xf32> to vector<8x32xf32>
    %345 = vector.shape_cast %342 : vector<8x32xf32> to vector<1x8x32xf32>
    tpu.vector_store %arg39[%c13, %c0_134, %c0_135], %345 {strides = array<i32>} : memref<16x8x32xf32, #tpu.memory_space<vmem>>, vector<1x8x32xf32>,
    %c14_i32 = arith.constant 14 : i32
    %346 = vector.broadcast %c14_i32 : i32 to vector<8x1xi32>
    %347 = arith.cmpi eq, %138, %346 : vector<8x1xi32>
    %348 = vector.shape_cast %347 : vector<8x1xi1> to vector<8x1xi1>
    %349 = vector.broadcast %348 : vector<8x1xi1> to vector<8x32xi1>
    %350 = arith.select %349, %339, %335 : vector<8x32xi1>, vector<8x32xf32>
    %351 = vector.extract_strided_slice %132 {offsets = [112, 0], sizes = [8, 32], strides = [1, 1]} : vector<128x32xf32> to vector<8x32xf32>
    %cst_136 = arith.constant dense<0.000000e+00> : vector<8x32xf32>
    %352 = tpu.matmul %339, %137, %cst_136 {dimension_numbers = #tpu.dot_dimension_numbers<[1], [0], [0], [1], [0, 0, 1, 1], [], []>} : vector<8x32xf32>, vector<32x32xf32>, vector<8x32xf32> -> vector<8x32xf32>
    %353 = arith.addf %351, %352 : vector<8x32xf32>
    %354 = math.tanh %353 : vector<8x32xf32>
    %355 = vector.extract_strided_slice %136 {offsets = [112, 0], sizes = [8, 32], strides = [1, 1]} : vector<128x32xf32> to vector<8x32xf32>
    %356 = arith.addf %354, %355 : vector<8x32xf32>
    %cst_137 = arith.constant dense<0.000000e+00> : vector<8x32xf32>
    %357 = tpu.matmul %6, %356, %cst_137 {dimension_numbers = #tpu.dot_dimension_numbers<[1], [0], [0], [1], [0, 0, 1, 1], [], []>} : vector<8x8xf32>, vector<8x32xf32>, vector<8x32xf32> -> vector<8x32xf32>
    %c14 = arith.constant 14 : index
    %c0_138 = arith.constant 0 : index
    %c0_139 = arith.constant 0 : index
    %358 = vector.load %arg39[%c14, %c0_138, %c0_139] : memref<16x8x32xf32, #tpu.memory_space<vmem>>, vector<1x8x32xf32>
    %359 = vector.shape_cast %358 : vector<1x8x32xf32> to vector<8x32xf32>
    %360 = vector.shape_cast %357 : vector<8x32xf32> to vector<1x8x32xf32>
    tpu.vector_store %arg39[%c14, %c0_138, %c0_139], %360 {strides = array<i32>} : memref<16x8x32xf32, #tpu.memory_space<vmem>>, vector<1x8x32xf32>,
    %c15_i32 = arith.constant 15 : i32
    %361 = vector.broadcast %c15_i32 : i32 to vector<8x1xi32>
    %362 = arith.cmpi eq, %138, %361 : vector<8x1xi32>
    %363 = vector.shape_cast %362 : vector<8x1xi1> to vector<8x1xi1>
    %364 = vector.broadcast %363 : vector<8x1xi1> to vector<8x32xi1>
    %365 = arith.select %364, %354, %350 : vector<8x32xi1>, vector<8x32xf32>
    %366 = vector.extract_strided_slice %132 {offsets = [120, 0], sizes = [8, 32], strides = [1, 1]} : vector<128x32xf32> to vector<8x32xf32>
    %cst_140 = arith.constant dense<0.000000e+00> : vector<8x32xf32>
    %367 = tpu.matmul %354, %137, %cst_140 {dimension_numbers = #tpu.dot_dimension_numbers<[1], [0], [0], [1], [0, 0, 1, 1], [], []>} : vector<8x32xf32>, vector<32x32xf32>, vector<8x32xf32> -> vector<8x32xf32>
    %368 = arith.addf %366, %367 : vector<8x32xf32>
    %369 = math.tanh %368 : vector<8x32xf32>
    %370 = vector.extract_strided_slice %136 {offsets = [120, 0], sizes = [8, 32], strides = [1, 1]} : vector<128x32xf32> to vector<8x32xf32>
    %371 = arith.addf %369, %370 : vector<8x32xf32>
    %cst_141 = arith.constant dense<0.000000e+00> : vector<8x32xf32>
    %372 = tpu.matmul %6, %371, %cst_141 {dimension_numbers = #tpu.dot_dimension_numbers<[1], [0], [0], [1], [0, 0, 1, 1], [], []>} : vector<8x8xf32>, vector<8x32xf32>, vector<8x32xf32> -> vector<8x32xf32>
    %c15 = arith.constant 15 : index
    %c0_142 = arith.constant 0 : index
    %c0_143 = arith.constant 0 : index
    %373 = vector.load %arg39[%c15, %c0_142, %c0_143] : memref<16x8x32xf32, #tpu.memory_space<vmem>>, vector<1x8x32xf32>
    %374 = vector.shape_cast %373 : vector<1x8x32xf32> to vector<8x32xf32>
    %375 = vector.shape_cast %372 : vector<8x32xf32> to vector<1x8x32xf32>
    tpu.vector_store %arg39[%c15, %c0_142, %c0_143], %375 {strides = array<i32>} : memref<16x8x32xf32, #tpu.memory_space<vmem>>, vector<1x8x32xf32>,
    %c16_i32 = arith.constant 16 : i32
    %376 = vector.broadcast %c16_i32 : i32 to vector<8x1xi32>
    %377 = arith.cmpi eq, %138, %376 : vector<8x1xi32>
    %378 = vector.shape_cast %377 : vector<8x1xi1> to vector<8x1xi1>
    %379 = vector.broadcast %378 : vector<8x1xi1> to vector<8x32xi1>
    %380 = arith.select %379, %369, %365 : vector<8x32xi1>, vector<8x32xf32>
    %cst_144 = arith.constant dense<0.000000e+00> : vector<8x32xf32>
    %381 = tpu.matmul %6, %380, %cst_144 {dimension_numbers = #tpu.dot_dimension_numbers<[1], [0], [0], [1], [0, 0, 1, 1], [], []>} : vector<8x8xf32>, vector<8x32xf32>, vector<8x32xf32> -> vector<8x32xf32>
    %c0_145 = arith.constant 0 : index
    %c0_146 = arith.constant 0 : index
    %c0_147 = arith.constant 0 : index
    %382 = vector.load %arg39[%c0_145, %c0_146, %c0_147] : memref<16x8x32xf32, #tpu.memory_space<vmem>>, vector<16x8x32xf32>
    %383 = vector.shape_cast %382 : vector<16x8x32xf32> to vector<128x32xf32>
    %c0_148 = arith.constant 0 : index
    %c0_149 = arith.constant 0 : index
    %384 = vector.load %arg18[%c0_148, %c0_149] : memref<32x32xf32, #tpu.memory_space<vmem>>, vector<32x32xf32>
    %385 = arith.truncf %383 : vector<128x32xf32> to vector<128x32xbf16>
    %386 = arith.truncf %384 : vector<32x32xf32> to vector<32x32xbf16>
    %cst_150 = arith.constant dense<0.000000e+00> : vector<128x32xf32>
    %387 = tpu.matmul %385, %386, %cst_150 {dimension_numbers = #tpu.dot_dimension_numbers<[1], [0], [0], [1], [0, 0, 1, 1], [], []>} : vector<128x32xbf16>, vector<32x32xbf16>, vector<128x32xf32> -> vector<128x32xf32>
    %c0_151 = arith.constant 0 : index
    %c0_152 = arith.constant 0 : index
    %388 = vector.load %arg19[%c0_151, %c0_152] : memref<1x32xf32, #tpu.memory_space<vmem>>, vector<1x32xf32>
    %389 = vector.broadcast %388 : vector<1x32xf32> to vector<128x32xf32>
    %390 = arith.addf %387, %389 : vector<128x32xf32>
    %391 = vector.shape_cast %390 : vector<128x32xf32> to vector<16x8x32xf32>
    %c0_153 = arith.constant 0 : index
    %c0_154 = arith.constant 0 : index
    %392 = vector.load %arg4[%c0_153, %c0_154] : memref<8x8xf32, #tpu.memory_space<vmem>>, vector<8x8xf32>
    %c0_155 = arith.constant 0 : index
    %c0_156 = arith.constant 0 : index
    %393 = vector.load %arg20[%c0_155, %c0_156] : memref<32x32xf32, #tpu.memory_space<vmem>>, vector<32x32xf32>
    %c0_157 = arith.constant 0 : index
    %c0_158 = arith.constant 0 : index
    %394 = vector.load %arg21[%c0_157, %c0_158] : memref<1x32xf32, #tpu.memory_space<vmem>>, vector<1x32xf32>
    %cst_159 = arith.constant dense<0.000000e+00> : vector<8x32xf32>
    %395 = tpu.matmul %381, %393, %cst_159 {dimension_numbers = #tpu.dot_dimension_numbers<[1], [0], [0], [1], [0, 0, 1, 1], [], []>} : vector<8x32xf32>, vector<32x32xf32>, vector<8x32xf32> -> vector<8x32xf32>
    %396 = vector.shape_cast %395 : vector<8x32xf32> to vector<1x8x32xf32>
    %397 = vector.broadcast %396 : vector<1x8x32xf32> to vector<8x8x32xf32>
    %398 = arith.addf %124, %397 : vector<8x8x32xf32>
    %399 = math.tanh %398 : vector<8x8x32xf32>
    %400 = vector.shape_cast %394 : vector<1x32xf32> to vector<1x1x32xf32>
    %401 = vector.broadcast %400 : vector<1x1x32xf32> to vector<8x8x32xf32>
    %402 = arith.mulf %399, %401 : vector<8x8x32xf32>
    %cst_160 = arith.constant dense<0.000000e+00> : vector<8x8xf32>
    %403 = vector.multi_reduction <add>, %402, %cst_160 [2] : vector<8x8x32xf32> to vector<8x8xf32>
    %cst_161 = arith.constant 5.000000e-01 : f32
    %404 = vector.broadcast %cst_161 : f32 to vector<8x8xf32>
    %405 = arith.cmpf ogt, %392, %404 : vector<8x8xf32>
    %cst_162 = arith.constant -1.000000e+30 : f32
    %406 = vector.broadcast %cst_162 : f32 to vector<8x8xf32>
    %407 = arith.select %405, %403, %406 : vector<8x8xi1>, vector<8x8xf32>
    %cst_163 = arith.constant dense<0xFF800000> : vector<8xf32>
    %408 = vector.multi_reduction <maximumf>, %407, %cst_163 [0] : vector<8x8xf32> to vector<8xf32>
    %409 = vector.shape_cast %408 : vector<8xf32> to vector<1x8xf32>
    %410 = vector.broadcast %409 : vector<1x8xf32> to vector<8x8xf32>
    %411 = arith.subf %407, %410 : vector<8x8xf32>
    %412 = math.exp %411 : vector<8x8xf32>
    %cst_164 = arith.constant dense<0.000000e+00> : vector<8xf32>
    %413 = vector.multi_reduction <add>, %412, %cst_164 [0] : vector<8x8xf32> to vector<8xf32>
    %414 = vector.shape_cast %413 : vector<8xf32> to vector<1x8xf32>
    %415 = tpu.reciprocal %414 {approx = true} : vector<1x8xf32> -> vector<1x8xf32>
    %416 = vector.broadcast %415 : vector<1x8xf32> to vector<8x8xf32>
    %417 = arith.mulf %412, %416 : vector<8x8xf32>
    %418 = vector.shape_cast %417 : vector<8x8xf32> to vector<8x8x1xf32>
    %419 = vector.broadcast %418 : vector<8x8x1xf32> to vector<8x8x32xf32>
    %420 = arith.mulf %419, %115 : vector<8x8x32xf32>
    %cst_165 = arith.constant dense<0.000000e+00> : vector<8x32xf32>
    %421 = vector.multi_reduction <add>, %420, %cst_165 [0] : vector<8x8x32xf32> to vector<8x32xf32>
    %c0_166 = arith.constant 0 : index
    %c0_167 = arith.constant 0 : index
    %422 = vector.load %arg7[%c0_166, %c0_167] : memref<16x8xf32, #tpu.memory_space<vmem>>, vector<16x8xf32>
    %c0_168 = arith.constant 0 : index
    %c0_169 = arith.constant 0 : index
    %423 = vector.load %arg22[%c0_168, %c0_169] : memref<32x32xf32, #tpu.memory_space<vmem>>, vector<32x32xf32>
    %c0_170 = arith.constant 0 : index
    %c0_171 = arith.constant 0 : index
    %424 = vector.load %arg23[%c0_170, %c0_171] : memref<1x32xf32, #tpu.memory_space<vmem>>, vector<1x32xf32>
    %cst_172 = arith.constant dense<0.000000e+00> : vector<8x32xf32>
    %425 = tpu.matmul %114, %423, %cst_172 {dimension_numbers = #tpu.dot_dimension_numbers<[1], [0], [0], [1], [0, 0, 1, 1], [], []>} : vector<8x32xf32>, vector<32x32xf32>, vector<8x32xf32> -> vector<8x32xf32>
    %426 = vector.shape_cast %425 : vector<8x32xf32> to vector<1x8x32xf32>
    %427 = vector.broadcast %426 : vector<1x8x32xf32> to vector<16x8x32xf32>
    %428 = arith.addf %391, %427 : vector<16x8x32xf32>
    %429 = math.tanh %428 : vector<16x8x32xf32>
    %430 = vector.shape_cast %424 : vector<1x32xf32> to vector<1x1x32xf32>
    %431 = vector.broadcast %430 : vector<1x1x32xf32> to vector<16x8x32xf32>
    %432 = arith.mulf %429, %431 : vector<16x8x32xf32>
    %cst_173 = arith.constant dense<0.000000e+00> : vector<16x8xf32>
    %433 = vector.multi_reduction <add>, %432, %cst_173 [2] : vector<16x8x32xf32> to vector<16x8xf32>
    %cst_174 = arith.constant 5.000000e-01 : f32
    %434 = vector.broadcast %cst_174 : f32 to vector<16x8xf32>
    %435 = arith.cmpf ogt, %422, %434 : vector<16x8xf32>
    %cst_175 = arith.constant -1.000000e+30 : f32
    %436 = vector.broadcast %cst_175 : f32 to vector<16x8xf32>
    %437 = arith.select %435, %433, %436 : vector<16x8xi1>, vector<16x8xf32>
    %cst_176 = arith.constant dense<0xFF800000> : vector<8xf32>
    %438 = vector.multi_reduction <maximumf>, %437, %cst_176 [0] : vector<16x8xf32> to vector<8xf32>
    %439 = vector.shape_cast %438 : vector<8xf32> to vector<1x8xf32>
    %440 = vector.broadcast %439 : vector<1x8xf32> to vector<16x8xf32>
    %441 = arith.subf %437, %440 : vector<16x8xf32>
    %442 = math.exp %441 : vector<16x8xf32>
    %cst_177 = arith.constant dense<0.000000e+00> : vector<8xf32>
    %443 = vector.multi_reduction <add>, %442, %cst_177 [0] : vector<16x8xf32> to vector<8xf32>
    %444 = vector.shape_cast %443 : vector<8xf32> to vector<1x8xf32>
    %445 = tpu.reciprocal %444 {approx = true} : vector<1x8xf32> -> vector<1x8xf32>
    %446 = vector.broadcast %445 : vector<1x8xf32> to vector<16x8xf32>
    %447 = arith.mulf %442, %446 : vector<16x8xf32>
    %448 = vector.shape_cast %447 : vector<16x8xf32> to vector<16x8x1xf32>
    %449 = vector.broadcast %448 : vector<16x8x1xf32> to vector<16x8x32xf32>
    %450 = arith.mulf %449, %382 : vector<16x8x32xf32>
    %cst_178 = arith.constant dense<0.000000e+00> : vector<8x32xf32>
    %451 = vector.multi_reduction <add>, %450, %cst_178 [0] : vector<16x8x32xf32> to vector<8x32xf32>
    %c0_179 = arith.constant 0 : index
    %c0_180 = arith.constant 0 : index
    %452 = vector.load %arg24[%c0_179, %c0_180] : memref<2x32xf32, #tpu.memory_space<vmem>>, vector<2x32xf32>
    %c0_181 = arith.constant 0 : index
    %c0_182 = arith.constant 0 : index
    %453 = vector.load %arg25[%c0_181, %c0_182] : memref<2x32xf32, #tpu.memory_space<vmem>>, vector<2x32xf32>
    %454 = vector.extract_strided_slice %452 {offsets = [0, 0], sizes = [1, 32], strides = [1, 1]} : vector<2x32xf32> to vector<1x32xf32>
    %455 = vector.broadcast %454 : vector<1x32xf32> to vector<8x32xf32>
    %456 = arith.mulf %421, %455 : vector<8x32xf32>
    %457 = vector.extract_strided_slice %452 {offsets = [1, 0], sizes = [1, 32], strides = [1, 1]} : vector<2x32xf32> to vector<1x32xf32>
    %458 = vector.broadcast %457 : vector<1x32xf32> to vector<8x32xf32>
    %459 = arith.addf %456, %458 : vector<8x32xf32>
    %460 = vector.extract_strided_slice %453 {offsets = [0, 0], sizes = [1, 32], strides = [1, 1]} : vector<2x32xf32> to vector<1x32xf32>
    %461 = vector.broadcast %460 : vector<1x32xf32> to vector<8x32xf32>
    %462 = arith.mulf %451, %461 : vector<8x32xf32>
    %463 = vector.extract_strided_slice %453 {offsets = [1, 0], sizes = [1, 32], strides = [1, 1]} : vector<2x32xf32> to vector<1x32xf32>
    %464 = vector.broadcast %463 : vector<1x32xf32> to vector<8x32xf32>
    %465 = arith.addf %462, %464 : vector<8x32xf32>
    %c0_183 = arith.constant 0 : index
    %c0_184 = arith.constant 0 : index
    %466 = vector.load %arg26[%c0_183, %c0_184] : memref<32x32xf32, #tpu.memory_space<vmem>>, vector<32x32xf32>
    %467 = arith.truncf %459 : vector<8x32xf32> to vector<8x32xbf16>
    %468 = arith.truncf %466 : vector<32x32xf32> to vector<32x32xbf16>
    %cst_185 = arith.constant dense<0.000000e+00> : vector<8x32xf32>
    %469 = tpu.matmul %467, %468, %cst_185 {dimension_numbers = #tpu.dot_dimension_numbers<[1], [0], [0], [1], [0, 0, 1, 1], [], []>} : vector<8x32xbf16>, vector<32x32xbf16>, vector<8x32xf32> -> vector<8x32xf32>
    %c0_186 = arith.constant 0 : index
    %c0_187 = arith.constant 0 : index
    %470 = vector.load %arg27[%c0_186, %c0_187] : memref<32x32xf32, #tpu.memory_space<vmem>>, vector<32x32xf32>
    %471 = arith.truncf %465 : vector<8x32xf32> to vector<8x32xbf16>
    %472 = arith.truncf %470 : vector<32x32xf32> to vector<32x32xbf16>
    %cst_188 = arith.constant dense<0.000000e+00> : vector<8x32xf32>
    %473 = tpu.matmul %471, %472, %cst_188 {dimension_numbers = #tpu.dot_dimension_numbers<[1], [0], [0], [1], [0, 0, 1, 1], [], []>} : vector<8x32xbf16>, vector<32x32xbf16>, vector<8x32xf32> -> vector<8x32xf32>
    %474 = arith.addf %469, %473 : vector<8x32xf32>
    %c0_189 = arith.constant 0 : index
    %c0_190 = arith.constant 0 : index
    %475 = vector.load %arg28[%c0_189, %c0_190] : memref<1x32xf32, #tpu.memory_space<vmem>>, vector<1x32xf32>
    %476 = vector.broadcast %475 : vector<1x32xf32> to vector<8x32xf32>
    %477 = arith.addf %474, %476 : vector<8x32xf32>
    %c0_191 = arith.constant 0 : index
    %c0_192 = arith.constant 0 : index
    %478 = vector.load %arg29[%c0_191, %c0_192] : memref<32x96xf32, #tpu.memory_space<vmem>>, vector<32x96xf32>
    %479 = arith.truncf %477 : vector<8x32xf32> to vector<8x32xbf16>
    %480 = arith.truncf %478 : vector<32x96xf32> to vector<32x96xbf16>
    %cst_193 = arith.constant dense<0.000000e+00> : vector<8x96xf32>
    %481 = tpu.matmul %479, %480, %cst_193 {dimension_numbers = #tpu.dot_dimension_numbers<[1], [0], [0], [1], [0, 0, 1, 1], [], []>} : vector<8x32xbf16>, vector<32x96xbf16>, vector<8x96xf32> -> vector<8x96xf32>
    %482 = arith.mulf %459, %465 : vector<8x32xf32>
    %c0_194 = arith.constant 0 : index
    %c0_195 = arith.constant 0 : index
    %483 = vector.load %arg30[%c0_194, %c0_195] : memref<32x96xf32, #tpu.memory_space<vmem>>, vector<32x96xf32>
    %484 = arith.truncf %482 : vector<8x32xf32> to vector<8x32xbf16>
    %485 = arith.truncf %483 : vector<32x96xf32> to vector<32x96xbf16>
    %cst_196 = arith.constant dense<0.000000e+00> : vector<8x96xf32>
    %486 = tpu.matmul %484, %485, %cst_196 {dimension_numbers = #tpu.dot_dimension_numbers<[1], [0], [0], [1], [0, 0, 1, 1], [], []>} : vector<8x32xbf16>, vector<32x96xbf16>, vector<8x96xf32> -> vector<8x96xf32>
    %487 = arith.addf %481, %486 : vector<8x96xf32>
    %488 = arith.addf %459, %465 : vector<8x32xf32>
    %c0_197 = arith.constant 0 : index
    %c0_198 = arith.constant 0 : index
    %489 = vector.load %arg31[%c0_197, %c0_198] : memref<32x96xf32, #tpu.memory_space<vmem>>, vector<32x96xf32>
    %490 = arith.truncf %488 : vector<8x32xf32> to vector<8x32xbf16>
    %491 = arith.truncf %489 : vector<32x96xf32> to vector<32x96xbf16>
    %cst_199 = arith.constant dense<0.000000e+00> : vector<8x96xf32>
    %492 = tpu.matmul %490, %491, %cst_199 {dimension_numbers = #tpu.dot_dimension_numbers<[1], [0], [0], [1], [0, 0, 1, 1], [], []>} : vector<8x32xbf16>, vector<32x96xbf16>, vector<8x96xf32> -> vector<8x96xf32>
    %493 = arith.addf %487, %492 : vector<8x96xf32>
    %c0_200 = arith.constant 0 : index
    %c0_201 = arith.constant 0 : index
    %494 = vector.load %arg32[%c0_200, %c0_201] : memref<1x96xf32, #tpu.memory_space<vmem>>, vector<1x96xf32>
    %495 = vector.broadcast %494 : vector<1x96xf32> to vector<8x96xf32>
    %496 = arith.addf %493, %495 : vector<8x96xf32>
    %cst_202 = arith.constant 0.000000e+00 : f32
    %497 = vector.broadcast %cst_202 : f32 to vector<8x96xf32>
    %498 = arith.maximumf %496, %497 : vector<8x96xf32>
    %c0_203 = arith.constant 0 : index
    %c0_204 = arith.constant 0 : index
    %499 = vector.load %arg33[%c0_203, %c0_204] : memref<96x96xf32, #tpu.memory_space<vmem>>, vector<96x96xf32>
    %500 = arith.truncf %498 : vector<8x96xf32> to vector<8x96xbf16>
    %501 = arith.truncf %499 : vector<96x96xf32> to vector<96x96xbf16>
    %cst_205 = arith.constant dense<0.000000e+00> : vector<8x96xf32>
    %502 = tpu.matmul %500, %501, %cst_205 {dimension_numbers = #tpu.dot_dimension_numbers<[1], [0], [0], [1], [0, 0, 1, 1], [], []>} : vector<8x96xbf16>, vector<96x96xbf16>, vector<8x96xf32> -> vector<8x96xf32>
    %c0_206 = arith.constant 0 : index
    %c0_207 = arith.constant 0 : index
    %503 = vector.load %arg34[%c0_206, %c0_207] : memref<1x96xf32, #tpu.memory_space<vmem>>, vector<1x96xf32>
    %504 = vector.broadcast %503 : vector<1x96xf32> to vector<8x96xf32>
    %505 = arith.addf %502, %504 : vector<8x96xf32>
    %cst_208 = arith.constant 0.000000e+00 : f32
    %506 = vector.broadcast %cst_208 : f32 to vector<8x96xf32>
    %507 = arith.maximumf %505, %506 : vector<8x96xf32>
    %c0_209 = arith.constant 0 : index
    %c0_210 = arith.constant 0 : index
    %508 = vector.load %arg35[%c0_209, %c0_210] : memref<96x128xf32, #tpu.memory_space<vmem>>, vector<96x128xf32>
    %509 = arith.truncf %507 : vector<8x96xf32> to vector<8x96xbf16>
    %510 = arith.truncf %508 : vector<96x128xf32> to vector<96x128xbf16>
    %cst_211 = arith.constant dense<0.000000e+00> : vector<8x128xf32>
    %511 = tpu.matmul %509, %510, %cst_211 {dimension_numbers = #tpu.dot_dimension_numbers<[1], [0], [0], [1], [0, 0, 1, 1], [], []>} : vector<8x96xbf16>, vector<96x128xbf16>, vector<8x128xf32> -> vector<8x128xf32>
    %c0_212 = arith.constant 0 : index
    %c0_213 = arith.constant 0 : index
    %512 = vector.load %arg36[%c0_212, %c0_213] : memref<1x128xf32, #tpu.memory_space<vmem>>, vector<1x128xf32>
    %513 = vector.broadcast %512 : vector<1x128xf32> to vector<8x128xf32>
    %514 = arith.addf %511, %513 : vector<8x128xf32>
    %515 = tpu.iota {dimensions = array<i32: 1>} : vector<8x128xi32>
    %516 = arith.negf %514 : vector<8x128xf32>
    %517 = math.exp %516 : vector<8x128xf32>
    %cst_214 = arith.constant 1.000000e+00 : f32
    %518 = vector.broadcast %cst_214 : f32 to vector<8x128xf32>
    %519 = arith.addf %518, %517 : vector<8x128xf32>
    %520 = arith.divf %518, %519 : vector<8x128xf32>
    %521 = vector.broadcast %0 : f32 to vector<8x128xf32>
    %522 = arith.mulf %520, %521 : vector<8x128xf32>
    %c15_i32_215 = arith.constant 15 : i32
    %523 = vector.broadcast %c15_i32_215 : i32 to vector<8x128xi32>
    %524 = arith.cmpi slt, %515, %523 : vector<8x128xi32>
    %525 = arith.select %524, %514, %522 : vector<8x128xi1>, vector<8x128xf32>
    %c0_216 = arith.constant 0 : index
    %c0_217 = arith.constant 0 : index
    %526 = vector.load %arg37[%c0_216, %c0_217] : memref<8x128xf32, #tpu.memory_space<vmem>>, vector<8x128xf32>
    tpu.vector_store %arg37[%c0_216, %c0_217], %525 {strides = array<i32>} : memref<8x128xf32, #tpu.memory_space<vmem>>, vector<8x128xf32>,
    return
  }
  func.func @transform_0(%arg0: i32) -> (i32, i32) {
    %c0_i32 = arith.constant 0 : i32
    %c0_i32_0 = arith.constant 0 : i32
    %c0_i32_1 = arith.constant 0 : i32
    return %c0_i32, %c0_i32_0 : i32, i32
  }
  func.func @transform_1(%arg0: i32) -> (i32, i32) {
    %c0_i32 = arith.constant 0 : i32
    %c0_i32_0 = arith.constant 0 : i32
    %c0_i32_1 = arith.constant 0 : i32
    return %c0_i32, %c0_i32_0 : i32, i32
  }
  func.func @transform_2(%arg0: i32) -> (i32, i32) {
    %c0_i32 = arith.constant 0 : i32
    %c0_i32_0 = arith.constant 0 : i32
    %c0_i32_1 = arith.constant 0 : i32
    return %c0_i32, %c0_i32_0 : i32, i32
  }
  func.func @transform_3(%arg0: i32) -> (i32, i32) {
    %c0_i32 = arith.constant 0 : i32
    %c0_i32_0 = arith.constant 0 : i32
    %c0_i32_1 = arith.constant 0 : i32
    return %c0_i32, %c0_i32_0 : i32, i32
  }
  func.func @transform_4(%arg0: i32) -> (i32, i32) {
    %c0_i32 = arith.constant 0 : i32
    %c0_i32_0 = arith.constant 0 : i32
    %c0_i32_1 = arith.constant 0 : i32
    return %c0_i32, %c0_i32_0 : i32, i32
  }
  func.func @transform_5(%arg0: i32) -> (i32, i32) {
    %c0_i32 = arith.constant 0 : i32
    %c0_i32_0 = arith.constant 0 : i32
    %c0_i32_1 = arith.constant 0 : i32
    return %c0_i32, %c0_i32_0 : i32, i32
  }
  func.func @transform_6(%arg0: i32) -> (i32, i32) {
    %c0_i32 = arith.constant 0 : i32
    %c0_i32_0 = arith.constant 0 : i32
    %c0_i32_1 = arith.constant 0 : i32
    return %c0_i32, %c0_i32_0 : i32, i32
  }
  func.func @transform_7(%arg0: i32) -> (i32, i32) {
    %c0_i32 = arith.constant 0 : i32
    %c0_i32_0 = arith.constant 0 : i32
    %c0_i32_1 = arith.constant 0 : i32
    return %c0_i32, %c0_i32_0 : i32, i32
  }
  func.func @transform_8(%arg0: i32) -> (i32, i32) {
    %c0_i32 = arith.constant 0 : i32
    %c0_i32_0 = arith.constant 0 : i32
    %c0_i32_1 = arith.constant 0 : i32
    return %c0_i32, %c0_i32_0 : i32, i32
  }
  func.func @transform_9(%arg0: i32) -> (i32, i32) {
    %c0_i32 = arith.constant 0 : i32
    %c0_i32_0 = arith.constant 0 : i32
    %c0_i32_1 = arith.constant 0 : i32
    return %c0_i32, %c0_i32_0 : i32, i32
  }
  func.func @transform_10(%arg0: i32) -> (i32, i32) {
    %c0_i32 = arith.constant 0 : i32
    %c0_i32_0 = arith.constant 0 : i32
    %c0_i32_1 = arith.constant 0 : i32
    return %c0_i32, %c0_i32_0 : i32, i32
  }
  func.func @transform_11(%arg0: i32) -> (i32, i32) {
    %c0_i32 = arith.constant 0 : i32
    %c0_i32_0 = arith.constant 0 : i32
    %c0_i32_1 = arith.constant 0 : i32
    return %c0_i32, %c0_i32_0 : i32, i32
  }
  func.func @transform_12(%arg0: i32) -> (i32, i32) {
    %c0_i32 = arith.constant 0 : i32
    %c0_i32_0 = arith.constant 0 : i32
    %c0_i32_1 = arith.constant 0 : i32
    return %c0_i32, %c0_i32_0 : i32, i32
  }
  func.func @transform_13(%arg0: i32) -> (i32, i32) {
    %c0_i32 = arith.constant 0 : i32
    %c0_i32_0 = arith.constant 0 : i32
    %c0_i32_1 = arith.constant 0 : i32
    return %c0_i32, %c0_i32_0 : i32, i32
  }
  func.func @transform_14(%arg0: i32) -> (i32, i32) {
    %c0_i32 = arith.constant 0 : i32
    %c0_i32_0 = arith.constant 0 : i32
    %c0_i32_1 = arith.constant 0 : i32
    return %c0_i32, %c0_i32_0 : i32, i32
  }
  func.func @transform_15(%arg0: i32) -> (i32, i32) {
    %c0_i32 = arith.constant 0 : i32
    %c0_i32_0 = arith.constant 0 : i32
    %c0_i32_1 = arith.constant 0 : i32
    return %c0_i32, %c0_i32_0 : i32, i32
  }
  func.func @transform_16(%arg0: i32) -> (i32, i32) {
    %c0_i32 = arith.constant 0 : i32
    %c0_i32_0 = arith.constant 0 : i32
    %c0_i32_1 = arith.constant 0 : i32
    return %c0_i32, %c0_i32_0 : i32, i32
  }
  func.func @transform_17(%arg0: i32) -> (i32, i32) {
    %c0_i32 = arith.constant 0 : i32
    %c0_i32_0 = arith.constant 0 : i32
    %c0_i32_1 = arith.constant 0 : i32
    return %c0_i32, %c0_i32_0 : i32, i32
  }
  func.func @transform_18(%arg0: i32) -> (i32, i32) {
    %c0_i32 = arith.constant 0 : i32
    %c0_i32_0 = arith.constant 0 : i32
    %c0_i32_1 = arith.constant 0 : i32
    return %c0_i32, %c0_i32_0 : i32, i32
  }
  func.func @transform_19(%arg0: i32) -> (i32, i32) {
    %c0_i32 = arith.constant 0 : i32
    %c0_i32_0 = arith.constant 0 : i32
    %c0_i32_1 = arith.constant 0 : i32
    return %c0_i32, %c0_i32_0 : i32, i32
  }
  func.func @transform_20(%arg0: i32) -> (i32, i32) {
    %c0_i32 = arith.constant 0 : i32
    %c0_i32_0 = arith.constant 0 : i32
    %c0_i32_1 = arith.constant 0 : i32
    return %c0_i32, %c0_i32_0 : i32, i32
  }
  func.func @transform_21(%arg0: i32) -> (i32, i32) {
    %c0_i32 = arith.constant 0 : i32
    %c0_i32_0 = arith.constant 0 : i32
    %c0_i32_1 = arith.constant 0 : i32
    return %c0_i32, %c0_i32_0 : i32, i32
  }
  func.func @transform_22(%arg0: i32) -> (i32, i32) {
    %c0_i32 = arith.constant 0 : i32
    %c0_i32_0 = arith.constant 0 : i32
    %c0_i32_1 = arith.constant 0 : i32
    return %c0_i32, %c0_i32_0 : i32, i32
  }
  func.func @transform_23(%arg0: i32) -> (i32, i32) {
    %c0_i32 = arith.constant 0 : i32
    %c0_i32_0 = arith.constant 0 : i32
    %c0_i32_1 = arith.constant 0 : i32
    return %c0_i32, %c0_i32_0 : i32, i32
  }
  func.func @transform_24(%arg0: i32) -> (i32, i32) {
    %c0_i32 = arith.constant 0 : i32
    %c0_i32_0 = arith.constant 0 : i32
    %c0_i32_1 = arith.constant 0 : i32
    return %c0_i32, %c0_i32_0 : i32, i32
  }
  func.func @transform_25(%arg0: i32) -> (i32, i32) {
    %c0_i32 = arith.constant 0 : i32
    %c0_i32_0 = arith.constant 0 : i32
    %c0_i32_1 = arith.constant 0 : i32
    return %c0_i32, %c0_i32_0 : i32, i32
  }
  func.func @transform_26(%arg0: i32) -> (i32, i32) {
    %c0_i32 = arith.constant 0 : i32
    %c0_i32_0 = arith.constant 0 : i32
    %c0_i32_1 = arith.constant 0 : i32
    return %c0_i32, %c0_i32_0 : i32, i32
  }
  func.func @transform_27(%arg0: i32) -> (i32, i32) {
    %c0_i32 = arith.constant 0 : i32
    %c0_i32_0 = arith.constant 0 : i32
    %c0_i32_1 = arith.constant 0 : i32
    return %c0_i32, %c0_i32_0 : i32, i32
  }
  func.func @transform_28(%arg0: i32) -> (i32, i32) {
    %c0_i32 = arith.constant 0 : i32
    %c0_i32_0 = arith.constant 0 : i32
    %c0_i32_1 = arith.constant 0 : i32
    return %c0_i32, %c0_i32_0 : i32, i32
  }
  func.func @transform_29(%arg0: i32) -> (i32, i32) {
    %c0_i32 = arith.constant 0 : i32
    %c0_i32_0 = arith.constant 0 : i32
    %c0_i32_1 = arith.constant 0 : i32
    return %c0_i32, %c0_i32_0 : i32, i32
  }
  func.func @transform_30(%arg0: i32) -> (i32, i32) {
    %c0_i32 = arith.constant 0 : i32
    %c0_i32_0 = arith.constant 0 : i32
    %c0_i32_1 = arith.constant 0 : i32
    return %c0_i32, %c0_i32_0 : i32, i32
  }
  func.func @transform_31(%arg0: i32) -> (i32, i32) {
    %c0_i32 = arith.constant 0 : i32
    %c0_i32_0 = arith.constant 0 : i32
    %c0_i32_1 = arith.constant 0 : i32
    return %c0_i32, %c0_i32_0 : i32, i32
  }
  func.func @transform_32(%arg0: i32) -> (i32, i32) {
    %c0_i32 = arith.constant 0 : i32
    %c0_i32_0 = arith.constant 0 : i32
    %c0_i32_1 = arith.constant 0 : i32
    return %c0_i32, %c0_i32_0 : i32, i32
  }
  func.func @transform_33(%arg0: i32) -> (i32, i32) {
    %c0_i32 = arith.constant 0 : i32
    %c0_i32_0 = arith.constant 0 : i32
    %c0_i32_1 = arith.constant 0 : i32
    return %c0_i32, %c0_i32_0 : i32, i32
  }
  func.func @transform_34(%arg0: i32) -> (i32, i32) {
    %c0_i32 = arith.constant 0 : i32
    %c0_i32_0 = arith.constant 0 : i32
    %c0_i32_1 = arith.constant 0 : i32
    return %c0_i32, %c0_i32_0 : i32, i32
  }
  func.func @transform_35(%arg0: i32) -> (i32, i32) {
    %c0_i32 = arith.constant 0 : i32
    %c0_i32_0 = arith.constant 0 : i32
    %c0_i32_1 = arith.constant 0 : i32
    return %c0_i32, %c0_i32_0 : i32, i32
  }
  func.func @transform_36(%arg0: i32) -> (i32, i32) {
    %c0_i32 = arith.constant 0 : i32
    %c0_i32_0 = arith.constant 0 : i32
    %c0_i32_1 = arith.constant 0 : i32
    return %c0_i32, %c0_i32_0 : i32, i32
  }
}

</mosaic_0001>

<bundles_post_ra>
// kernel: sentence_localizer_forward.1
= control target key start
LH: loop header
LB: loop body
LE: loop exit
PB: predicated region body
PF: predicated region fallthrough
CT: control target
= control target key end

     0   :  { %s6440_s3 = smov 8   ;;  %v7568_v0 = vmov 0.0|0.0   ;;  %s6442_s7 = smov 9   ;;  %vm6443_vm0 = vmmov 0   ;;  %v7566_v1 = vmov 0.0   ;;  %v6445_v2 = vmov 0   ;;  %s7564_s0 = inlined_call_operand.smem [shape: u32[37], index: -1, kind: input, shape index: {}] }
   0x1   :  { %s5227_s6 = sld [smem:[%s7564_s0 + %s6440_s3]]   ;;  %6110 = vmatprep.subr.bf16.mxu1 %v7568_v0  ;;  %5603 = vmatprep.mubr.msk.f32.mxu1 %vm6443_vm0, %v7566_v1  ;;  %s6446_s11 = smov 1   ;;  %vm187_vm1 = vcmask 261120  }
   0x2   :  { %s5228_s10 = sld [smem:[%s7564_s0 + %s6442_s7]]   ;;  %6307 = vset.pattern.permute.xlu1 %v6445_v2  ;;  %6306 = vset.pattern.permute.xlu0 %v6445_v2  ;;  %s6447_s15 = smov 5  }
   0x3   :  { %s6499_s14 = sld [smem:[%s7564_s0 + %s6446_s11]]   ;;  %s6448_s19 = smov 2  }
   0x4   :  { %s5224_s18 = sld [smem:[%s7564_s0 + %s6447_s15]]   ;;  %s6449_s23 = smov 7  }
   0x5   :  { %s5221_s22 = sld [smem:[%s7564_s0 + %s6448_s19]]   ;;  %s6450_s27 = smov 10  }
   0x6   :  { %s5226_s26 = sld [smem:[%s7564_s0 + %s6449_s23]]   ;;  %s6451_s1 = smov 15  }
   0x7   :  { %v170_v3 = vld [vmem:[%s5227_s6] sm:$0xff]  ;;  %v171_v4 = vld [vmem:[%s5227_s6 + $0x8] sm:$0xff]  ;;  %v172_v8 = vld [vmem:[%s5227_s6 + $0x10] sm:$0xff]  ;;  %s5229_s30 = sld [smem:[%s7564_s0 + %s6450_s27]]   ;;  %s6452_s5 = smov 11  }
   0x8   :  { %v265_v5 = vld [vmem:[%s5228_s10] sm:$0xff]  ;;  %v178_v6 = vpack.c.bf16 %v171_v4, %v170_v3  ;;  %v266_v7 = vld [vmem:[%s5228_s10 + $0x8] sm:$0xff]  ;;  %v173_v9 = vld [vmem:[%s5227_s6 + $0x18] sm:$0xff]  ;;  %s5234_s4 = sld [smem:[%s7564_s0 + %s6451_s1]]   ;;  %s6453_s9 = smov 4  }
   0x9   :  { %v6504_v10 = vpack.c.bf16 %v266_v7, %v265_v5  ;;  %v179_v11 = vpack.c.bf16 %v173_v9, %v172_v8  ;;  %v162_v12 = vld [vmem:[%s6499_s14] sm:$0xff]  ;;  %v163_v13 = vld [vmem:[%s6499_s14 + $0x8] sm:$0xff]  ;;  %v267_v14 = vld [vmem:[%s5228_s10 + $0x10] sm:$0xff]  ;;  %s5230_s8 = sld [smem:[%s7564_s0 + %s6452_s5]]   ;;  %s6454_s13 = smov 12  }
   0xa   :  { %5583 = vmatprep.subr.bf16.mxu0 %v178_v6  ;;  %v174_v15 = vpack.c.bf16 %v163_v13, %v162_v12  ;;  %v268_v16 = vld [vmem:[%s5228_s10 + $0x18] sm:$0xff]  ;;  %v164_v18 = vld [vmem:[%s6499_s14 + $0x10] sm:$0xff]  ;;  %v6513_v20 = vld [vmem:[%s5224_s18] sm:$0xff]  ;;  %s6708_s12 = sld [smem:[%s7564_s0 + %s6453_s9]]   ;;  %s6455_s17 = smov 14  }
   0xb   :  { %5584 = vmatpush3.bf16.msra.mxu0 %v178_v6  ;;  %6112 = vmatpush3.bf16.msra.mxu1 %v6504_v10  ;;  %v6509_v17 = vpack.c.bf16 %v268_v16, %v267_v14  ;;  %v165_v19 = vld [vmem:[%s6499_s14 + $0x18] sm:$0xff]  ;;  %vm1612_vm2 = vcmp.eq.s32.totalorder %v6513_v20, 2  ;;  %vm1767_vm3 = vcmp.eq.s32.totalorder %v6513_v20, 3  ;;  %vm2077_vm4 = vcmp.eq.s32.totalorder %v6513_v20, 5  ;;  %v6550_v29 = vld [vmem:[%s5221_s22] sm:$0xff]  ;;  %v167_v53 = vld [vmem:[%s6499_s14 + $0x28] sm:$0xff]  ;;  %s5231_s16 = sld [smem:[%s7564_s0 + %s6454_s13]]  }
   0xc   :  { %5585 = vmatprep.subr.bf16.mxu0 %v179_v11  ;;  %6113 = vmatprep.subr.bf16.mxu1 %v7568_v0  ;;  %v1613_v21 = vsel %vm1612_vm2, 1, %v6445_v2  ;;  %v175_v22 = vpack.c.bf16 %v165_v19, %v164_v18  ;;  %v1768_v23 = vsel %vm1767_vm3, 1, %v6445_v2  ;;  %v2078_v24 = vsel %vm2077_vm4, 1, %v6445_v2  ;;  %v153_v32 = vld [vmem:[%s5226_s26] sm:$0xff]  ;;  %v168_v55 = vld [vmem:[%s6499_s14 + $0x30] sm:$0xff]  ;;  %v169_v56 = vld [vmem:[%s6499_s14 + $0x38] sm:$0xff]  ;;  %s5233_s20 = sld [smem:[%s7564_s0 + %s6455_s17]]  }
   0xd   :  { %5587 = vmatprep.mubr.msk.bf16.mxu0 %vm187_vm1, %v174_v15  ;;  %1615 = vperm.xlu1 %6307, %v1613_v21   ;;  %vm2387_vm5 = vcmp.eq.s32.totalorder %v6513_v20, 7  ;;  %vm2697_vm6 = vcmp.eq.s32.totalorder %v6513_v20, 9  ;;  %vm3007_vm7 = vcmp.eq.s32.totalorder %v6513_v20, 11  ;;  %vm3317_vm8 = vcmp.eq.s32.totalorder %v6513_v20, 13  ;;  %v6579_v42 = vld [vmem:[%s5229_s30] ss:$0 sm:$0xff] }
   0xe   :  { %v2388_v25 = vsel %vm2387_vm5, 1, %v6445_v2  ;;  %v2698_v26 = vsel %vm2697_vm6, 1, %v6445_v2  ;;  %v3008_v27 = vsel %vm3007_vm7, 1, %v6445_v2  ;;  %v3318_v28 = vsel %vm3317_vm8, 1, %v6445_v2  ;;  %157 = vperm.xlu0 %6306, %v153_v32   ;;  %v166_v52 = vld [vmem:[%s6499_s14 + $0x20] sm:$0xff]  ;;  %s6456_s21 = smov 13  }
   0xf   :  { %5586 = vmatpush3.bf16.msra.mxu0 %v179_v11  ;;  %6115 = vmatpush3.bf16.msra.mxu1 %v6509_v17  ;;  %vm3627_vm9 = vcmp.eq.s32.totalorder %v6513_v20, 15  ;;  %vm346_vm10 = vcmp.eq.s32.totalorder %v6550_v29, 1  ;;  %vm1457_vm11 = vcmp.eq.s32.totalorder %v6513_v20, 1  ;;  %vm1922_vm12 = vcmp.eq.s32.totalorder %v6513_v20, 4  ;;  %s5232_s24 = sld [smem:[%s7564_s0 + %s6456_s21]]   ;;  %s6457_s25 = smov 17  }
  0x10   :  { %6116 = vmatprep.subr.bf16.mxu1 %v7568_v0  ;;  %6122 = vmatprep.subr.bf16.mxu0 %v7568_v0  ;;  %v3628_v30 = vsel %vm3627_vm9, 1, %v6445_v2  ;;  %v347_v31 = vsel %vm346_vm10, 1, %v6445_v2  ;;  %v1458_v33 = vsel %vm1457_vm11, 1, %v6445_v2  ;;  %v1923_v34 = vsel %vm1922_vm12, 1, %v6445_v2  ;;  %s5236_s28 = sld [smem:[%s7564_s0 + %s6457_s25]]   ;;  %s6458_s29 = smov 19  }
  0x11   :  { %1770 = vperm.xlu1 %6307, %v1768_v23   ;;  %vm2232_vm13 = vcmp.eq.s32.totalorder %v6513_v20, 6  ;;  %vm2542_vm14 = vcmp.eq.s32.totalorder %v6513_v20, 8  ;;  %vm2852_vm15 = vcmp.eq.s32.totalorder %v6513_v20, 10  ;;  %vm3162_vm2 = vcmp.eq.s32.totalorder %v6513_v20, 12  ;;  %s7144_s2 = sld [smem:[%s7564_s0 + %s6458_s29]]   ;;  %s6459_s3 = smov 21  }
  0x12   :  { %5588 = vmatmul.mubr.msk.bf16.vlgmr.msra.gmra.mrb[0].mxu0 %vm187_vm1, %v175_v22  ;;  %5604 = vmatmul.mubr.f32.vlgmr.msra.gmra.mrb[0].mxu1 %v7566_v1  ;;  %v2233_v35 = vsel %vm2232_vm13, 1, %v6445_v2  ;;  %v2543_v36 = vsel %vm2542_vm14, 1, %v6445_v2  ;;  %v2853_v37 = vsel %vm2852_vm15, 1, %v6445_v2  ;;  %v3163_v38 = vsel %vm3162_vm2, 1, %v6445_v2  ;;  %s5240_s6 = sld [smem:[%s7564_s0 + %s6459_s3]]   ;;  %s6460_s7 = smov 16  }
  0x13   :  { %6118 = vmatpush3.bf16.msra.mxu1 %v6504_v10  ;;  %5614 = vmatprep.mubr.msk.f32.mxu1 %vm6443_vm0, %v7566_v1  ;;  %vm3472_vm3 = vcmp.eq.s32.totalorder %v6513_v20, 14  ;;  %vm3782_vm4 = vcmp.eq.s32.totalorder %v6513_v20, 16  ;;  %vm430_vm5 = vcmp.eq.s32.totalorder %v6550_v29, 2  ;;  %v176_v54 = vpack.c.bf16 %v167_v53, %v166_v52  ;;  %s5235_s10 = sld [smem:[%s7564_s0 + %s6460_s7]]   ;;  %s6461_s11 = smov 18  }
  0x14   :  { %6119 = vmatprep.subr.bf16.mxu1 %v7568_v0  ;;  %6124 = vmatpush3.bf16.msra.mxu0 %v6504_v10  ;;  %v3473_v39 = vsel %vm3472_vm3, 1, %v6445_v2  ;;  %v3783_v40 = vsel %vm3782_vm4, 1, %v6445_v2  ;;  %v431_v41 = vsel %vm430_vm5, 1, %v6445_v2  ;;  %v177_v57 = vpack.c.bf16 %v169_v56, %v168_v55  ;;  %v949_v56 = vld [vmem:[%s5234_s4] sm:$0xff]  ;;  %s5237_s14 = sld [smem:[%s7564_s0 + %s6461_s11]]   ;;  %s6462_s15 = smov 22  }
  0x15   :  { %6125 = vmatprep.subr.bf16.mxu0 %v7568_v0  ;;  %2080 = vperm.xlu1 %6307, %v2078_v24   ;;  %vm514_vm6 = vcmp.eq.s32.totalorder %v6550_v29, 3  ;;  %vm598_vm9 = vcmp.eq.s32.totalorder %v6550_v29, 4  ;;  %vm682_vm11 = vcmp.eq.s32.totalorder %v6550_v29, 5  ;;  %vm766_vm13 = vcmp.eq.s32.totalorder %v6550_v29, 6  ;;  %s5241_s18 = sld [smem:[%s7564_s0 + %s6462_s15]]   ;;  %s6463_s19 = smov 20  }
  0x16   :  { %1460 = vperm.xlu0 %6306, %v1458_v33   ;;  %5591 = vmatprep.mubr.msk.bf16.mxu0 %vm187_vm1, %v176_v54  ;;  %v515_v58 = vsel %vm514_vm6, 1, %v6445_v2  ;;  %vm850_vm15 = vcmp.eq.s32.totalorder %v6550_v29, 7  ;;  %vm934_vm3 = vcmp.eq.s32.totalorder %v6550_v29, 8  ;;  %s5239_s22 = sld [smem:[%s7564_s0 + %s6463_s19]]   ;;  %s6464_s23 = smov 6  }
  0x17   :  { %6121 = vmatpush3.bf16.msra.mxu1 %v6509_v17  ;;  %s7319_s26 = sld [smem:[%s7564_s0 + %s6464_s23]]   ;;  %s6465_s27 = smov 3  }
  0x18   :  { %6128 = vmatprep.subr.bf16.mxu1 %v7568_v0  ;;  %6127 = vmatpush3.bf16.msra.mxu0 %v6509_v17  ;;  %s5222_s30 = sld [smem:[%s7564_s0 + %s6465_s27]]   ;;  %s6466_s1 = smov 26  }
  0x19   :  { %6134 = vmatprep.subr.bf16.mxu0 %v7568_v0  ;;  %2390 = vperm.xlu1 %6307, %v2388_v25   ;;  %s6467_s5 = smov 29   ;;  %s6468_s9 = smov 24  }
  0x1a   :  { %1925 = vperm.xlu0 %6306, %v1923_v34   ;;  %5592 = vmatmul.mubr.msk.bf16.gmra.mrb[4].mxu0 %vm187_vm1, %v177_v57  ;;  %v950_v57 = vld [vmem:[%s5234_s4 + $0x8] sm:$0xff]  ;;  %s6469_s13 = smov 25   ;;  %s6470_s17 = smov 23  }
  0x1b   :  { %5625 = vmatprep.mubr.msk.f32.mxu0 %vm6443_vm0, %v7566_v1  ;;  %s6471_s21 = smov 30   ;;  %s6472_s25 = smov 28  }
  0x1c   :  { %s6473_s29 = smov 27   ;;  %s6474_s3 = smov 32  }
  0x1d   :  { %2700 = vperm.xlu1 %6307, %v2698_v26   ;;  %s6475_s7 = smov 34   ;;  %s6476_s11 = smov 31  }
  0x1e   :  { %2235 = vperm.xlu0 %6306, %v2233_v35   ;;  %s6477_s15 = smov 33   ;;  %s6478_s19 = smov 35  }
  0x21   :  { %3010 = vperm.xlu1 %6307, %v3008_v27  }
  0x22   :  { %2545 = vperm.xlu0 %6306, %v2543_v36  }
  0x25   :  { %3320 = vperm.xlu1 %6307, %v3318_v28  }
  0x26   :  { %2855 = vperm.xlu0 %6306, %v2853_v37  }
  0x29   :  { %3630 = vperm.xlu1 %6307, %v3628_v30  }
  0x2a   :  { %3165 = vperm.xlu0 %6306, %v3163_v38  }
  0x2d   :  { %349 = vperm.xlu1 %6307, %v347_v31   ;;  %v599_v31 = vsel %vm598_vm9, 1, %v6445_v2 }
  0x2e   :  { %3475 = vperm.xlu0 %6306, %v3473_v39   ;;  %v683_v39 = vsel %vm682_vm11, 1, %v6445_v2 }
  0x31   :  { %517 = vperm.xlu1 %6307, %v515_v58   ;;  %v957_v58 = vpack.c.bf16 %v950_v57, %v949_v56  ;;  %v1045_v57 = vld [vmem:[%s6708_s12 + $0x10] sm:$0xff] }
  0x32   :  { %3785 = vperm.xlu0 %6306, %v3783_v40  }
  0x35   :  { %685 = vperm.xlu1 %6307, %v683_v39   ;;  %v1059_v39 = vld [vmem:[%s5230_s8] sm:$0xff] }
  0x36   :  { %433 = vperm.xlu0 %6306, %v431_v41  }
  0x3a   :  { %601 = vperm.xlu0 %6306, %v599_v31  }
  0x8c   :  { %v6606_v60 = vpop.permute.xlu1 %1615 }
  0x8d   :  { %v6604_v59 = vpop.permute.xlu0 %157  ;;  %vm1617_vm9 = vcmp.eq.s32.totalorder %v6606_v60, 1 }
  0x90   :  { %v6610_v62 = vpop.permute.xlu1 %1770 }
  0x94   :  { %v6614_v3 = vpop.permute.xlu1 %2080 }
  0x95   :  { %v6608_v61 = vpop.permute.xlu0 %1460 }
  0x98   :  { %v6618_v5 = vpop.permute.xlu1 %2390 }
  0x99   :  { %v6612_v63 = vpop.permute.xlu0 %1925 }
  0x9a   :  { %vm1927_vm11 = vcmp.eq.s32.totalorder %v6612_v63, 1 }
  0x9c   :  { %v6622_v7 = vpop.permute.xlu1 %2700 }
  0x9d   :  { %v6616_v4 = vpop.permute.xlu0 %2235 }
  0xa0   :  { %v6626_v9 = vpop.permute.xlu1 %3010 }
  0xa1   :  { %v6620_v6 = vpop.permute.xlu0 %2545 }
  0xa4   :  { %v6630_v12 = vpop.permute.xlu1 %3320 }
  0xa5   :  { %v6624_v8 = vpop.permute.xlu0 %2855 }
  0xa8   :  { %v6635_v16 = vpop.permute.xlu1 %3630 }
  0xa9   :  { %v6628_v11 = vpop.permute.xlu0 %3165 }
  0xac   :  { %v350_v21 = vpop.permute.xlu1 %349 }
  0xad   :  { %v6632_v13 = vpop.permute.xlu0 %3475  ;;  %vm351_vm7 = vcmp.eq.s32.totalorder %v350_v21, 1  ;;  %v951_v21 = vld [vmem:[%s5234_s4 + $0x10] sm:$0xff] }
  0xb0   :  { %v518_v36 = vpop.permute.xlu1 %517 }
  0xb1   :  { %v6637_v20 = vpop.permute.xlu0 %3785  ;;  %vm519_vm10 = vcmp.eq.s32.totalorder %v518_v36, 1 }
  0xb4   :  { %v686_v53 = vpop.permute.xlu1 %685 }
  0xb5   :  { %v434_v22 = vpop.permute.xlu0 %433  ;;  %vm687_vm14 = vcmp.eq.s32.totalorder %v686_v53, 1 }
  0xb6   :  { %vm435_vm8 = vcmp.eq.s32.totalorder %v434_v22, 1  ;;  %v952_v22 = vld [vmem:[%s5234_s4 + $0x18] sm:$0xff]  ;;  %s5245_s4 = sld [smem:[%s7564_s0 + %s6466_s1]]  }
  0xe5   :  { %v6581_v43 = vpop.f32.mrb[0].mxu0  ;;  %v339_v44 = vpop.f32.mrb[0].mxu1 }
  0xe6   :  { %v234_v45 = vpop.f32.mrb[1].mxu0  ;;  %v5605_v46 = vpop.f32.mrb[1].mxu1  ;;  %v243_v32 = vadd.f32 %v6581_v43, %v6579_v42 }
  0xe7   :  { %v235_v47 = vadd.f32 %v6579_v42, %v234_v45  ;;  %v6584_v48 = vpop.f32.mrb[2].mxu0  ;;  %v602_v45 = vpop.permute.xlu0 %601 }
  0xe8   :  { %v237_v49 = vpop.f32.mrb[3].mxu0  ;;  %v246_v40 = vadd.f32 %v6584_v48, %v6579_v42  ;;  %vm603_vm12 = vcmp.eq.s32.totalorder %v602_v45, 1  ;;  %v767_v48 = vsel %vm766_vm13, 1, %v6445_v2  ;;  %vm2237_vm13 = vcmp.eq.s32.totalorder %v6616_v4, 1 }
  0xe9   :  { %v343_v50 = vadd.f32 %v339_v44, %v235_v47  ;;  %v238_v14 = vadd.f32 %v6579_v42, %v237_v49  ;;  %769 = vperm.xlu0 %6306, %v767_v48   ;;  %v1044_v48 = vld [vmem:[%s6708_s12 + $0x8] sm:$0xff] }
  0xeb   :  { %6308 = vtanh.f32 %v343_v50 }
  0xed   :  { %v6647_v26 = vpop.f32.mrb[4].mxu0 }
  0xee   :  { %v250_v27 = vpop.f32.mrb[5].mxu0 }
  0xef   :  { %v6649_v28 = vpop.f32.mrb[6].mxu0  ;;  %v251_v49 = vadd.f32 %v6579_v42, %v250_v27 }
  0xf0   :  { %v6651_v30 = vpop.f32.mrb[7].mxu0 }
  0xf5   :  { %v6309_v51 = vpop.eup %6308 }
  0xf6   :  { %345 = vst.msk [vmem:[#allocation2] sm:$0xff] %vm187_vm1, %v6309_v51  ;;  %5615 = vmatmul.mubr.msk.f32.vlgmr.msra.gmra.mrb[2].mxu1 %vm187_vm1, %v6309_v51  ;;  %v352_v24 = vsel %vm351_vm7, %v6309_v51, 0.0  ;;  %vm1382_vm7 = vcmask 64512  }
  0xf7   :  { %6130 = vmatpush3.bf16.msra.mxu1 %v6504_v10  ;;  %5636 = vmatprep.mubr.msk.f32.mxu1 %vm6443_vm0, %v7566_v1 }
  0xf8   :  { %6131 = vmatprep.subr.bf16.mxu1 %v7568_v0 }
  0xfb   :  { %6133 = vmatpush3.bf16.msra.mxu1 %v6509_v17 }
  0xfc   :  { %6140 = vmatprep.subr.bf16.mxu1 %v7568_v0 }
 0x1c9   :  { %v422_v15 = vpop.f32.mrb[2].mxu1 }
 0x1ca   :  { %v426_v18 = vadd.f32 %v422_v15, %v238_v14  ;;  %v5616_v19 = vpop.f32.mrb[3].mxu1  ;;  %v254_v14 = vadd.f32 %v6579_v42, %v6651_v30 }
 0x1cb   :  { %v770_v19 = vpop.permute.xlu0 %769 }
 0x1cc   :  { %6310 = vtanh.f32 %v426_v18  ;;  %vm771_vm2 = vcmp.eq.s32.totalorder %v770_v19, 1 }
 0x1d6   :  { %v6311_v23 = vpop.eup %6310 }
 0x1d7   :  { %429 = vst.msk [vmem:[#allocation2 + $0x8] sm:$0xff] %vm187_vm1, %v6311_v23  ;;  %v436_v25 = vsel %vm435_vm8, %v6311_v23, %v352_v24  ;;  %5626 = vmatmul.mubr.msk.f32.vlgmr.msra.gmra.mrb[8].mxu0 %vm187_vm1, %v6311_v23  ;;  %v941_v24 = vld [vmem:[#allocation2] sm:$0xff]  ;;  %vm1462_vm8 = vcmp.eq.s32.totalorder %v6608_v61, 1 }
 0x1d8   :  { %6136 = vmatpush3.bf16.msra.mxu0 %v6504_v10  ;;  %5647 = vmatprep.mubr.msk.f32.mxu0 %vm6443_vm0, %v7566_v1 }
 0x1d9   :  { %6137 = vmatprep.subr.bf16.mxu0 %v7568_v0 }
 0x1dc   :  { %6139 = vmatpush3.bf16.msra.mxu0 %v6509_v17 }
 0x1dd   :  { %6146 = vmatprep.subr.bf16.mxu0 %v7568_v0 }
 0x1de   :  { %v942_v23 = vld [vmem:[#allocation2 + $0x8] sm:$0xff] }
 0x1df   :  { %v953_v31 = vpack.c.bf16 %v942_v23, %v941_v24  ;;  %v1307_v23 = vld [vmem:[%s5231_s16 + $0x18] sm:$0xff]  ;;  %v1049_v24 = vld [vmem:[%s6708_s12 + $0x30] sm:$0xff] }
 0x2aa   :  { %v506_v33 = vpop.f32.mrb[8].mxu0 }
 0x2ab   :  { %v510_v34 = vadd.f32 %v506_v33, %v243_v32  ;;  %v5627_v35 = vpop.f32.mrb[9].mxu0 }
 0x2ad   :  { %6312 = vtanh.f32 %v510_v34 }
 0x2b7   :  { %v6313_v37 = vpop.eup %6312 }
 0x2b8   :  { %513 = vst.msk [vmem:[#allocation2 + $0x10] sm:$0xff] %vm187_vm1, %v6313_v37  ;;  %v520_v38 = vsel %vm519_vm10, %v6313_v37, %v436_v25  ;;  %5637 = vmatmul.mubr.msk.f32.vlgmr.msra.gmra.mrb[4].mxu1 %vm187_vm1, %v6313_v37  ;;  %v958_v25 = vpack.c.bf16 %v952_v22, %v951_v21  ;;  %v1306_v22 = vld [vmem:[%s5231_s16 + $0x10] sm:$0xff]  ;;  %vm1772_vm10 = vcmp.eq.s32.totalorder %v6610_v62, 1 }
 0x2b9   :  { %6142 = vmatpush3.bf16.msra.mxu1 %v6504_v10  ;;  %5658 = vmatprep.mubr.msk.f32.mxu1 %vm6443_vm0, %v7566_v1 }
 0x2ba   :  { %6143 = vmatprep.subr.bf16.mxu1 %v7568_v0 }
 0x2bd   :  { %6145 = vmatpush3.bf16.msra.mxu1 %v6509_v17 }
 0x2be   :  { %6152 = vmatprep.subr.bf16.mxu1 %v7568_v0 }
 0x2bf   :  { %v943_v33 = vld [vmem:[#allocation2 + $0x10] sm:$0xff] }
 0x38b   :  { %v590_v41 = vpop.f32.mrb[4].mxu1 }
 0x38c   :  { %v594_v43 = vadd.f32 %v590_v41, %v246_v40  ;;  %v5638_v44 = vpop.f32.mrb[5].mxu1  ;;  %v1060_v40 = vld [vmem:[%s5230_s8 + $0x8] sm:$0xff] }
 0x38d   :  { %v1071_v41 = vpack.c.bf16 %v1060_v40, %v1059_v39  ;;  %v1057_v40 = vld [vmem:[%s6708_s12 + $0x70] sm:$0xff] }
 0x38e   :  { %6314 = vtanh.f32 %v594_v43  ;;  %v259_v43 = vadd.f32 %v6647_v26, %v6579_v42 }
 0x398   :  { %v6315_v46 = vpop.eup %6314 }
 0x399   :  { %597 = vst.msk [vmem:[#allocation2 + $0x18] sm:$0xff] %vm187_vm1, %v6315_v46  ;;  %v604_v47 = vsel %vm603_vm12, %v6315_v46, %v520_v38  ;;  %5648 = vmatmul.mubr.msk.f32.vlgmr.msra.gmra.mrb[10].mxu0 %vm187_vm1, %v6315_v46  ;;  %v935_v38 = vsel %vm934_vm3, 1, %v6445_v2  ;;  %vm2082_vm12 = vcmp.eq.s32.totalorder %v6614_v3, 1  ;;  %vm2857_vm3 = vcmp.eq.s32.totalorder %v6624_v8, 1 }
 0x39a   :  { %6148 = vmatpush3.bf16.msra.mxu0 %v6504_v10  ;;  %5669 = vmatprep.mubr.msk.f32.mxu0 %vm6443_vm0, %v7566_v1 }
 0x39b   :  { %6149 = vmatprep.subr.bf16.mxu0 %v7568_v0  ;;  %937 = vperm.xlu0 %6306, %v935_v38  }
 0x39e   :  { %6151 = vmatpush3.bf16.msra.mxu0 %v6509_v17 }
 0x39f   :  { %5683 = vmatprep.subr.bf16.mxu0 %v957_v58 }
 0x3a0   :  { %v944_v30 = vld [vmem:[#allocation2 + $0x18] sm:$0xff] }
 0x3a1   :  { %v954_v34 = vpack.c.bf16 %v944_v30, %v943_v33 }
 0x46c   :  { %v674_v50 = vpop.f32.mrb[10].mxu0 }
 0x46d   :  { %v678_v51 = vadd.f32 %v674_v50, %v251_v49  ;;  %v5649_v52 = vpop.f32.mrb[11].mxu0  ;;  %v1061_v49 = vld [vmem:[%s5230_s8 + $0x10] sm:$0xff]  ;;  %v1062_v50 = vld [vmem:[%s5230_s8 + $0x18] sm:$0xff]  ;;  %s5248_s8 = sld [smem:[%s7564_s0 + %s6467_s5]]  }
 0x46f   :  { %6316 = vtanh.f32 %v678_v51 }
 0x479   :  { %v6317_v54 = vpop.eup %6316 }
 0x47a   :  { %681 = vst.msk [vmem:[#allocation2 + $0x20] sm:$0xff] %vm187_vm1, %v6317_v54  ;;  %v688_v55 = vsel %vm687_vm14, %v6317_v54, %v604_v47  ;;  %5659 = vmatmul.mubr.msk.f32.vlgmr.msra.gmra.mrb[6].mxu1 %vm187_vm1, %v6317_v54  ;;  %v1043_v47 = vld [vmem:[%s6708_s12] sm:$0xff]  ;;  %v1072_v54 = vpack.c.bf16 %v1062_v50, %v1061_v49  ;;  %v262_v49 = vadd.f32 %v6649_v28, %v6579_v42  ;;  %vm2392_vm14 = vcmp.eq.s32.totalorder %v6618_v5, 1 }
 0x47b   :  { %6154 = vmatpush3.bf16.msra.mxu1 %v6504_v10  ;;  %5680 = vmatprep.mubr.msk.f32.mxu1 %vm6443_vm0, %v7566_v1  ;;  %v851_v10 = vsel %vm850_vm15, 1, %v6445_v2  ;;  %v6723_v53 = vpack.c.bf16 %v1044_v48, %v1043_v47  ;;  %v1204_v47 = vld [vmem:[%s5233_s20 + $0x18] sm:$0xff]  ;;  %vm2547_vm15 = vcmp.eq.s32.totalorder %v6620_v6, 1 }
 0x47c   :  { %6155 = vmatprep.subr.bf16.mxu1 %v7568_v0  ;;  %853 = vperm.xlu1 %6307, %v851_v10   ;;  %v1047_v10 = vld [vmem:[%s6708_s12 + $0x20] sm:$0xff] }
 0x47f   :  { %6157 = vmatpush3.bf16.msra.mxu1 %v6509_v17 }
 0x480   :  { %5695 = vmatprep.subr.bf16.mxu1 %v1071_v41 }
 0x481   :  { %v945_v35 = vld [vmem:[#allocation2 + $0x20] sm:$0xff] }
 0x4fb   :  { %v854_v46 = vpop.permute.xlu1 %853 }
 0x4fc   :  { %vm855_vm4 = vcmp.eq.s32.totalorder %v854_v46, 1  ;;  %v1203_v46 = vld [vmem:[%s5233_s20 + $0x10] sm:$0xff] }
 0x4fd   :  { %v1206_v48 = vpack.c.bf16 %v1204_v47, %v1203_v46 }
 0x54d   :  { %v758_v15 = vpop.f32.mrb[6].mxu1 }
 0x54e   :  { %v762_v18 = vadd.f32 %v758_v15, %v254_v14  ;;  %v5660_v17 = vpop.f32.mrb[7].mxu1  ;;  %v1048_v14 = vld [vmem:[%s6708_s12 + $0x28] sm:$0xff]  ;;  %v1304_v15 = vld [vmem:[%s5231_s16] sm:$0xff] }
 0x54f   :  { %v6737_v19 = vpack.c.bf16 %v1048_v14, %v1047_v10 }
 0x550   :  { %6318 = vtanh.f32 %v762_v18  ;;  %v1305_v18 = vld [vmem:[%s5231_s16 + $0x8] sm:$0xff]  ;;  %s7445_s16 = sld [smem:[%s7564_s0 + %s6469_s13]]  }
 0x551   :  { %v6739_v21 = vpack.c.bf16 %v1305_v18, %v1304_v15 }
 0x55a   :  { %v6319_v27 = vpop.eup %6318 }
 0x55b   :  { %765 = vst.msk [vmem:[#allocation2 + $0x28] sm:$0xff] %vm187_vm1, %v6319_v27  ;;  %v772_v32 = vsel %vm771_vm2, %v6319_v27, %v688_v55  ;;  %5670 = vmatmul.mubr.msk.f32.vlgmr.msra.gmra.mrb[12].mxu0 %vm187_vm1, %v6319_v27  ;;  %v6749_v27 = vpack.c.bf16 %v1307_v23, %v1306_v22  ;;  %vm2702_vm2 = vcmp.eq.s32.totalorder %v6622_v7, 1 }
 0x55c   :  { %5684 = vmatpush3.bf16.msra.mxu0 %v957_v58  ;;  %5687 = vmatprep.mubr.msk.bf16.mxu0 %vm187_vm1, %v953_v31  ;;  %v1046_v58 = vld [vmem:[%s6708_s12 + $0x18] sm:$0xff]  ;;  %v1051_v31 = vld [vmem:[%s6708_s12 + $0x40] sm:$0xff] }
 0x55d   :  { %5685 = vmatprep.subr.bf16.mxu0 %v958_v25  ;;  %v6735_v17 = vpack.c.bf16 %v1046_v58, %v1045_v57  ;;  %v5274_v57 = vld [vmem:[%s5232_s24] ss:$0 sm:$0xff]  ;;  %v938_v58 = vpop.permute.xlu0 %937  ;;  %s5249_s24 = sld [smem:[%s7564_s0 + %s6471_s21]]  }
 0x55e   :  { %vm939_vm5 = vcmp.eq.s32.totalorder %v938_v58, 1 }
 0x560   :  { %5686 = vmatpush3.bf16.msra.mxu0 %v958_v25  ;;  %v1050_v25 = vld [vmem:[%s6708_s12 + $0x38] sm:$0xff] }
 0x561   :  { %v6754_v30 = vpack.c.bf16 %v1050_v25, %v1049_v24 }
 0x562   :  { %v946_v36 = vld [vmem:[#allocation2 + $0x28] sm:$0xff] }
 0x563   :  { %5688 = vmatmul.mubr.msk.bf16.vlgmr.msra.gmra.mrb[16].mxu0 %vm187_vm1, %v954_v34  ;;  %v955_v37 = vpack.c.bf16 %v946_v36, %v945_v35  ;;  %v1053_v34 = vld [vmem:[%s6708_s12 + $0x50] sm:$0xff]  ;;  %v1054_v35 = vld [vmem:[%s6708_s12 + $0x58] sm:$0xff]  ;;  %v1055_v36 = vld [vmem:[%s6708_s12 + $0x60] sm:$0xff] }
 0x564   :  { %v6768_v38 = vpack.c.bf16 %v1054_v35, %v1053_v34 }
 0x565   :  { %5691 = vmatprep.mubr.msk.bf16.mxu0 %vm187_vm1, %v955_v37  ;;  %v1056_v37 = vld [vmem:[%s6708_s12 + $0x68] sm:$0xff] }
 0x566   :  { %v6770_v39 = vpack.c.bf16 %v1056_v37, %v1055_v36 }
 0x62e   :  { %v842_v44 = vpop.f32.mrb[12].mxu0 }
 0x62f   :  { %v846_v2 = vadd.f32 %v842_v44, %v259_v43  ;;  %v5671_v29 = vpop.f32.mrb[13].mxu0  ;;  %v1201_v44 = vld [vmem:[%s5233_s20] sm:$0xff] }
 0x631   :  { %6320 = vtanh.f32 %v846_v2  ;;  %v1202_v2 = vld [vmem:[%s5233_s20 + $0x8] sm:$0xff]  ;;  %s5242_s20 = sld [smem:[%s7564_s0 + %s6470_s17]]  }
 0x632   :  { %v1205_v29 = vpack.c.bf16 %v1202_v2, %v1201_v44 }
 0x634   :  { %5715 = vmatprep.subr.bf16.mxu0 %v1205_v29 }
 0x635   :  { %5716 = vmatpush3.bf16.msra.mxu0 %v1205_v29 }
 0x636   :  { %v6710_v45 = vpop.f32.mrb[16].mxu0  ;;  %5717 = vmatprep.subr.bf16.mxu0 %v1206_v48 }
 0x637   :  { %v6717_v26 = vpop.f32.mrb[17].mxu0 }
 0x638   :  { %v6719_v51 = vpop.f32.mrb[18].mxu0 }
 0x639   :  { %v6721_v52 = vpop.f32.mrb[19].mxu0  ;;  %5718 = vmatpush3.bf16.msra.mxu0 %v1206_v48 }
 0x63a   :  { %5778 = vmatprep.subr.mxu0 %v7566_v1 }
 0x63b   :  { %v6321_v55 = vpop.eup %6320 }
 0x63c   :  { %849 = vst.msk [vmem:[#allocation2 + $0x30] sm:$0xff] %vm187_vm1, %v6321_v55  ;;  %v6726_v56 = vsel %vm855_vm4, %v6321_v55, %v772_v32  ;;  %5681 = vmatmul.mubr.msk.f32.vlgmr.msra.gmra.mrb[8].mxu1 %vm187_vm1, %v6321_v55  ;;  %v1052_v32 = vld [vmem:[%s6708_s12 + $0x48] sm:$0xff]  ;;  %vm3012_vm4 = vcmp.eq.s32.totalorder %v6626_v9, 1 }
 0x63d   :  { %5696 = vmatpush3.bf16.msra.mxu1 %v1071_v41  ;;  %5699 = vmatprep.mubr.msk.bf16.mxu1 %vm187_vm1, %v6723_v53  ;;  %v6756_v33 = vpack.c.bf16 %v1052_v32, %v1051_v31  ;;  %v1058_v41 = vld [vmem:[%s6708_s12 + $0x78] sm:$0xff]  ;;  %s7432_s12 = sld [smem:[%s7564_s0 + %s6468_s9]]  }
 0x63e   :  { %5697 = vmatprep.subr.bf16.mxu1 %v1072_v54  ;;  %v6778_v43 = vpack.c.bf16 %v1058_v41, %v1057_v40 }
 0x641   :  { %5698 = vmatpush3.bf16.msra.mxu1 %v1072_v54 }
 0x642   :  { %6158 = vmatprep.subr.bf16.mxu1 %v7568_v0 }
 0x643   :  { %v947_v41 = vld [vmem:[#allocation2 + $0x30] sm:$0xff] }
 0x644   :  { %5700 = vmatmul.mubr.msk.bf16.vlgmr.msra.gmra.mrb[12].mxu1 %vm187_vm1, %v6735_v17 }
 0x645   :  { %5703 = vmatprep.mubr.msk.bf16.mxu1 %vm187_vm1, %v6737_v19  ;;  %6160 = vmatpush3.bf16.msra.mxu1 %v6739_v21 }
 0x646   :  { %6161 = vmatprep.subr.bf16.mxu1 %v7568_v0 }
 0x649   :  { %6163 = vmatpush3.bf16.msra.mxu1 %v6749_v27 }
 0x64a   :  { %5746 = vmatprep.subr.mxu1 %v7566_v1 }
 0x64c   :  { %5704 = vmatmul.mubr.msk.bf16.gmra.mrb[16].mxu1 %vm187_vm1, %v6754_v30 }
 0x64d   :  { %5707 = vmatprep.mubr.msk.bf16.mxu1 %vm187_vm1, %v6756_v33 }
 0x654   :  { %5708 = vmatmul.mubr.msk.bf16.gmra.mrb[20].mxu1 %vm187_vm1, %v6768_v38 }
 0x655   :  { %5711 = vmatprep.mubr.msk.bf16.mxu1 %vm187_vm1, %v6770_v39 }
 0x65c   :  { %5712 = vmatmul.mubr.msk.bf16.gmra.mrb[24].mxu1 %vm187_vm1, %v6778_v43 }
 0x65d   :  { %5743 = vmatprep.mubr.msk.f32.mxu1 %vm6443_vm0, %v7566_v1 }
 0x664   :  { %5744 = vmatmul.mubr.f32.vlgmr.msra.gmra.mrb[10].mxu1 %v7566_v1 }
 0x665   :  { %5748 = vmatprep.mubr.msk.f32.mxu1 %vm6443_vm0, %v7566_v1 }
 0x70f   :  { %v926_v50 = vpop.f32.mrb[8].mxu1 }
 0x710   :  { %v930_v54 = vadd.f32 %v926_v50, %v262_v49  ;;  %v5682_v55 = vpop.f32.mrb[9].mxu1 }
 0x712   :  { %6322 = vtanh.f32 %v930_v54 }
 0x717   :  { %v5701_v10 = vpop.f32.mrb[12].mxu1 }
 0x718   :  { %v6796_v14 = vadd.f32 %v5701_v10, %v5274_v57  ;;  %v1138_v15 = vpop.f32.mrb[13].mxu1 }
 0x719   :  { %v5702_v18 = vpop.f32.mrb[14].mxu1 }
 0x71a   :  { %v6798_v22 = vadd.f32 %v5702_v18, %v5274_v57  ;;  %v1141_v23 = vpop.f32.mrb[15].mxu1 }
 0x71b   :  { %v6800_v24 = vadd.f32 %v5274_v57, %v1141_v23 }
 0x71c   :  { %v6323_v25 = vpop.eup %6322 }
 0x71d   :  { %933 = vst.msk [vmem:[#allocation2 + $0x38] sm:$0xff] %vm187_vm1, %v6323_v25  ;;  %v6804_v42 = vsel %vm939_vm5, %v6323_v25, %v6726_v56  ;;  %vm3167_vm5 = vcmp.eq.s32.totalorder %v6628_v11, 1 }
 0x71f   :  { %v5705_v28 = vpop.f32.mrb[16].mxu1 }
 0x720   :  { %v6806_v31 = vadd.f32 %v5705_v28, %v5274_v57  ;;  %v1154_v32 = vpop.f32.mrb[17].mxu1 }
 0x721   :  { %v6808_v34 = vadd.f32 %v5274_v57, %v1154_v32  ;;  %v5706_v35 = vpop.f32.mrb[18].mxu1  ;;  %v1139_v32 = vadd.f32 %v5274_v57, %v1138_v15 }
 0x722   :  { %v6810_v36 = vadd.f32 %v5706_v35, %v5274_v57  ;;  %v1157_v37 = vpop.f32.mrb[19].mxu1 }
 0x723   :  { %v6812_v40 = vadd.f32 %v5274_v57, %v1157_v37 }
 0x724   :  { %v948_v44 = vld [vmem:[#allocation2 + $0x38] sm:$0xff] }
 0x725   :  { %v956_v2 = vpack.c.bf16 %v948_v44, %v947_v41 }
 0x727   :  { %5692 = vmatmul.mubr.msk.bf16.gmra.mrb[20].mxu0 %vm187_vm1, %v956_v2  ;;  %v5709_v29 = vpop.f32.mrb[20].mxu1 }
 0x728   :  { %5719 = vmatprep.mubr.msk.bf16.mxu0 %vm187_vm1, %v6723_v53  ;;  %v6817_v56 = vadd.f32 %v5709_v29, %v5274_v57  ;;  %v1170_v46 = vpop.f32.mrb[21].mxu1 }
 0x729   :  { %v6819_v47 = vadd.f32 %v5274_v57, %v1170_v46  ;;  %v5710_v48 = vpop.f32.mrb[22].mxu1 }
 0x72a   :  { %v6821_v49 = vadd.f32 %v5710_v48, %v5274_v57  ;;  %v1173_v50 = vpop.f32.mrb[23].mxu1 }
 0x72b   :  { %v6823_v54 = vadd.f32 %v5274_v57, %v1173_v50 }
 0x72f   :  { %5720 = vmatmul.mubr.msk.bf16.vlgmr.msra.gmra.mrb[24].mxu0 %vm187_vm1, %v6735_v17  ;;  %v5713_v55 = vpop.f32.mrb[24].mxu1 }
 0x730   :  { %v6827_v58 = vadd.f32 %v5713_v55, %v5274_v57  ;;  %v1186_v10 = vpop.f32.mrb[25].mxu1  ;;  %5723 = vmatprep.mubr.msk.bf16.mxu0 %vm187_vm1, %v6737_v19  ;;  %v7565_v19 = vlaneseq }
 0x731   :  { %v6831_v53 = vadd.f32 %v5274_v57, %v1186_v10  ;;  %v5714_v18 = vpop.f32.mrb[26].mxu1 }
 0x732   :  { %v6833_v23 = vadd.f32 %v5714_v18, %v5274_v57  ;;  %v1189_v25 = vpop.f32.mrb[27].mxu1 }
 0x733   :  { %v6835_v28 = vadd.f32 %v5274_v57, %v1189_v25 }
 0x737   :  { %v1375_v35 = vpop.f32.mrb[10].mxu1  ;;  %5724 = vmatmul.mubr.msk.bf16.gmra.mrb[28].mxu0 %vm187_vm1, %v6754_v30 }
 0x738   :  { %v1379_v17 = vadd.f32 %v1375_v35, %v1139_v32  ;;  %v5745_v37 = vpop.f32.mrb[11].mxu1  ;;  %5727 = vmatprep.mubr.msk.bf16.mxu0 %vm187_vm1, %v6756_v33  ;;  %v6856_v33 = vand.u32 127, %v7565_v19 }
 0x73a   :  { %6324 = vtanh.f32 %v1379_v17  ;;  %7575 = vst [vmem:[#allocation8_spill] sm:$0xff] %v6856_v33  ;;  %vm159_vm6 = vcmp.eq.s32.totalorder %v6856_v33, %v6604_v59 }
 0x73b   :  { %v6865_v44 = vsel %vm159_vm6, 1.0, %v7566_v1  ;;  %vm3322_vm6 = vcmp.eq.s32.totalorder %v6630_v12, 1 }
 0x73f   :  { %5728 = vmatmul.mubr.msk.bf16.gmra.mrb[32].mxu0 %vm187_vm1, %v6768_v38 }
 0x740   :  { %5731 = vmatprep.mubr.msk.bf16.mxu0 %vm187_vm1, %v6770_v39 }
 0x747   :  { %5732 = vmatmul.mubr.msk.bf16.gmra.mrb[36].mxu0 %vm187_vm1, %v6778_v43  ;;  %v6325_v43 = vpop.eup %6324 }
 0x748   :  { %5780 = vmatprep.mubr.msk.f32.mxu0 %vm6443_vm0, %v7566_v1  ;;  %v1463_v33 = vsel %vm1462_vm8, %v6325_v43, 0.0  ;;  %vm3477_vm8 = vcmp.eq.s32.totalorder %v6632_v13, 1 }
 0x7fa   :  { %v6849_v30 = vpop.f32.mrb[20].mxu0 }
 0x7fb   :  { %7572 = vst [vmem:[#allocation5_spill] sm:$0xff] %v6849_v30  ;;  %v6851_v57 = vpop.f32.mrb[21].mxu0 }
 0x7fc   :  { %7573 = vst [vmem:[#allocation6_spill] sm:$0xff] %v6851_v57  ;;  %v6853_v15 = vpop.f32.mrb[22].mxu0 }
 0x7fd   :  { %7574 = vst [vmem:[#allocation7_spill] sm:$0xff] %v6853_v15  ;;  %v6858_v38 = vpop.f32.mrb[23].mxu0 }
 0x7fe   :  { %7576 = vst [vmem:[#allocation9_spill] sm:$0xff] %v6858_v38 }
 0x802   :  { %v6862_v39 = vpop.f32.mrb[24].mxu0 }
 0x803   :  { %v1241_v41 = vpop.f32.mrb[25].mxu0 }
 0x804   :  { %v1381_v2 = vadd.f32 %v6325_v43, %v1241_v41  ;;  %v6867_v29 = vpop.f32.mrb[26].mxu0 }
 0x805   :  { %v1244_v46 = vpop.f32.mrb[27].mxu0 }
 0x806   :  { %5747 = vmatpush3.msra.mxu1 %v1381_v2 }
 0x807   :  { %5749 = vmatmul.mubr.msk.f32.vlgmr.msra.gmra.mrb[28].mxu1 %vm1382_vm7, %v6865_v44  ;;  %6164 = vmatprep.subr.bf16.mxu1 %v7568_v0 }
 0x808   :  { %6166 = vmatpush3.bf16.msra.mxu1 %v6739_v21  ;;  %5759 = vmatprep.mubr.msk.f32.mxu1 %vm6443_vm0, %v7566_v1 }
 0x809   :  { %6167 = vmatprep.subr.bf16.mxu1 %v7568_v0 }
 0x80c   :  { %6169 = vmatpush3.bf16.msra.mxu1 %v6749_v27 }
 0x80d   :  { %5762 = vmatprep.subr.mxu1 %v7566_v1 }
 0x80f   :  { %5760 = vmatmul.mubr.msk.f32.vlgmr.msra.gmra.mrb[30].mxu1 %vm187_vm1, %v6325_v43 }
 0x810   :  { %5764 = vmatprep.mubr.msk.f32.mxu1 %vm6443_vm0, %v7566_v1 }
 0x8da   :  { %v1452_v59 = vpop.f32.mrb[28].mxu1 }
 0x8db   :  { %1456 = vst.msk [vmem:[#allocation3] sm:$0xff] %vm187_vm1, %v1452_v59  ;;  %v5750_v48 = vpop.f32.mrb[29].mxu1 }
 0x8e2   :  { %v1533_v50 = vpop.f32.mrb[30].mxu1 }
 0x8e3   :  { %v1537_v55 = vadd.f32 %v1533_v50, %v6800_v24  ;;  %v5761_v10 = vpop.f32.mrb[31].mxu1  ;;  %v6895_v24 = vpop.f32.mrb[28].mxu0 }
 0x8e4   :  { %v6897_v32 = vpop.f32.mrb[29].mxu0 }
 0x8e5   :  { %6326 = vtanh.f32 %v1537_v55  ;;  %v6899_v35 = vpop.f32.mrb[30].mxu0 }
 0x8e6   :  { %v6901_v17 = vpop.f32.mrb[31].mxu0 }
 0x8e7   :  { %v6903_v37 = vpop.f32.mrb[32].mxu0 }
 0x8e8   :  { %v6905_v41 = vpop.f32.mrb[33].mxu0 }
 0x8e9   :  { %v6907_v2 = vpop.f32.mrb[34].mxu0 }
 0x8ef   :  { %v6327_v18 = vpop.eup %6326 }
 0x8f0   :  { %v1539_v25 = vadd.f32 %v6327_v18, %v1244_v46  ;;  %v6909_v46 = vpop.f32.mrb[35].mxu0  ;;  %v1618_v15 = vsel %vm1617_vm9, %v6327_v18, %v1463_v33  ;;  %vm3632_vm9 = vcmp.eq.s32.totalorder %v6635_v16, 1 }
 0x8f1   :  { %v6911_v59 = vpop.f32.mrb[36].mxu0 }
 0x8f2   :  { %5763 = vmatpush3.msra.mxu1 %v1539_v25  ;;  %v6913_v48 = vpop.f32.mrb[37].mxu0 }
 0x8f3   :  { %5765 = vmatmul.mubr.msk.f32.vlgmr.msra.gmra.mrb[32].mxu1 %vm1382_vm7, %v6865_v44  ;;  %6170 = vmatprep.subr.bf16.mxu1 %v7568_v0  ;;  %v6915_v50 = vpop.f32.mrb[38].mxu0 }
 0x8f4   :  { %6172 = vmatpush3.bf16.msra.mxu1 %v6739_v21  ;;  %5775 = vmatprep.mubr.msk.f32.mxu1 %vm6443_vm0, %v7566_v1  ;;  %v6917_v55 = vpop.f32.mrb[39].mxu0 }
 0x8f5   :  { %6173 = vmatprep.subr.bf16.mxu1 %v7568_v0 }
 0x8f8   :  { %6175 = vmatpush3.bf16.msra.mxu1 %v6749_v27 }
 0x8f9   :  { %5794 = vmatprep.subr.mxu1 %v7566_v1 }
 0x8fb   :  { %5776 = vmatmul.mubr.msk.f32.vlgmr.msra.gmra.mrb[34].mxu1 %vm187_vm1, %v6327_v18 }
 0x8fc   :  { %5796 = vmatprep.mubr.msk.f32.mxu1 %vm6443_vm0, %v7566_v1 }
 0x9c6   :  { %v1606_v10 = vpop.f32.mrb[32].mxu1 }
 0x9c7   :  { %1611 = vst.msk [vmem:[#allocation3 + $0x8] sm:$0xff] %vm187_vm1, %v1606_v10  ;;  %v5766_v25 = vpop.f32.mrb[33].mxu1  ;;  %v7577_v10 = vmov 0.0|0.0  }
 0x9ce   :  { %v1688_v19 = vpop.f32.mrb[34].mxu1 }
 0x9cf   :  { %v1692_v1 = vadd.f32 %v1688_v19, %v6796_v14  ;;  %v5777_v0 = vpop.f32.mrb[35].mxu1 }
 0x9d0   :  { %v7578_v0 = vmov 0.0  }
 0x9d1   :  { %6328 = vtanh.f32 %v1692_v1 }
 0x9db   :  { %v6329_v38 = vpop.eup %6328 }
 0x9dc   :  { %v1773_v57 = vsel %vm1772_vm10, %v6329_v38, %v1618_v15  ;;  %v1694_v30 = vadd.f32 %v6329_v38, %v6862_v39  ;;  %vm3787_vm10 = vcmp.eq.s32.totalorder %v6637_v20, 1 }
 0x9de   :  { %5779 = vmatpush3.msra.mxu0 %v1694_v30 }
 0x9df   :  { %5781 = vmatmul.mubr.msk.f32.vlgmr.msra.gmra.mrb[14].mxu0 %vm1382_vm7, %v6865_v44  ;;  %6176 = vmatprep.subr.bf16.mxu0 %v7577_v10 }
 0x9e0   :  { %6178 = vmatpush3.bf16.msra.mxu0 %v6739_v21  ;;  %5791 = vmatprep.mubr.msk.f32.mxu0 %vm6443_vm0, %v7578_v0 }
 0x9e1   :  { %6179 = vmatprep.subr.bf16.mxu0 %v7577_v10 }
 0x9e4   :  { %6181 = vmatpush3.bf16.msra.mxu0 %v6749_v27 }
 0x9e5   :  { %5810 = vmatprep.subr.mxu0 %v7578_v0 }
 0x9e7   :  { %5792 = vmatmul.mubr.msk.f32.vlgmr.msra.gmra.mrb[40].mxu0 %vm187_vm1, %v6329_v38 }
 0x9e8   :  { %5812 = vmatprep.mubr.msk.f32.mxu0 %vm6443_vm0, %v7578_v0 }
 0xab2   :  { %v1761_v1 = vpop.f32.mrb[14].mxu0 }
 0xab3   :  { %1766 = vst.msk [vmem:[#allocation3 + $0x10] sm:$0xff] %vm187_vm1, %v1761_v1  ;;  %v5782_v60 = vpop.f32.mrb[15].mxu0 }
 0xaba   :  { %v1843_v61 = vpop.f32.mrb[40].mxu0 }
 0xabb   :  { %v1847_v62 = vadd.f32 %v1843_v61, %v6798_v22  ;;  %v5793_v14 = vpop.f32.mrb[41].mxu0 }
 0xabd   :  { %6330 = vtanh.f32 %v1847_v62 }
 0xac7   :  { %v6331_v19 = vpop.eup %6330 }
 0xac8   :  { %v1928_v30 = vsel %vm1927_vm11, %v6331_v19, %v1773_v57  ;;  %v1849_v15 = vadd.f32 %v6331_v19, %v6867_v29  ;;  %vm4191_vm11 = vcmask 1041409  }
 0xaca   :  { %5795 = vmatpush3.msra.mxu1 %v1849_v15 }
 0xacb   :  { %5797 = vmatmul.mubr.msk.f32.vlgmr.msra.gmra.mrb[36].mxu1 %vm1382_vm7, %v6865_v44  ;;  %6182 = vmatprep.subr.bf16.mxu1 %v7577_v10 }
 0xacc   :  { %6184 = vmatpush3.bf16.msra.mxu1 %v6739_v21  ;;  %5807 = vmatprep.mubr.msk.f32.mxu1 %vm6443_vm0, %v7578_v0 }
 0xacd   :  { %6185 = vmatprep.subr.bf16.mxu1 %v7577_v10 }
 0xad0   :  { %6187 = vmatpush3.bf16.msra.mxu1 %v6749_v27 }
 0xad1   :  { %5826 = vmatprep.subr.mxu1 %v7578_v0 }
 0xad3   :  { %5808 = vmatmul.mubr.msk.f32.vlgmr.msra.gmra.mrb[38].mxu1 %vm187_vm1, %v6331_v19 }
 0xad4   :  { %5828 = vmatprep.mubr.msk.f32.mxu1 %vm6443_vm0, %v7578_v0 }
 0xb9e   :  { %v1916_v63 = vpop.f32.mrb[36].mxu1 }
 0xb9f   :  { %1921 = vst.msk [vmem:[#allocation3 + $0x18] sm:$0xff] %vm187_vm1, %v1916_v63  ;;  %v5798_v22 = vpop.f32.mrb[37].mxu1 }
 0xba6   :  { %v1998_v57 = vpop.f32.mrb[38].mxu1 }
 0xba7   :  { %v2002_v33 = vadd.f32 %v1998_v57, %v6808_v34  ;;  %v5809_v38 = vpop.f32.mrb[39].mxu1 }
 0xba9   :  { %6332 = vtanh.f32 %v2002_v33 }
 0xbb3   :  { %v6333_v39 = vpop.eup %6332 }
 0xbb4   :  { %v2083_v43 = vsel %vm2082_vm12, %v6333_v39, %v1928_v30  ;;  %v2004_v29 = vadd.f32 %v6333_v39, %v6897_v32  ;;  %vm4193_vm12 = vcmask 1042434  }
 0xbb6   :  { %5811 = vmatpush3.msra.mxu0 %v2004_v29 }
 0xbb7   :  { %5813 = vmatmul.mubr.msk.f32.vlgmr.msra.gmra.mrb[42].mxu0 %vm1382_vm7, %v6865_v44  ;;  %6188 = vmatprep.subr.bf16.mxu0 %v7577_v10 }
 0xbb8   :  { %6190 = vmatpush3.bf16.msra.mxu0 %v6739_v21  ;;  %5823 = vmatprep.mubr.msk.f32.mxu0 %vm6443_vm0, %v7578_v0 }
 0xbb9   :  { %6191 = vmatprep.subr.bf16.mxu0 %v7577_v10 }
 0xbbc   :  { %6193 = vmatpush3.bf16.msra.mxu0 %v6749_v27 }
 0xbbd   :  { %5842 = vmatprep.subr.mxu0 %v7578_v0 }
 0xbbf   :  { %5824 = vmatmul.mubr.msk.f32.vlgmr.msra.gmra.mrb[44].mxu0 %vm187_vm1, %v6333_v39 }
 0xbc0   :  { %5844 = vmatprep.mubr.msk.f32.mxu0 %vm6443_vm0, %v7578_v0 }
 0xc8a   :  { %v2071_v3 = vpop.f32.mrb[42].mxu0 }
 0xc8b   :  { %2076 = vst.msk [vmem:[#allocation3 + $0x20] sm:$0xff] %vm187_vm1, %v2071_v3  ;;  %v5814_v34 = vpop.f32.mrb[43].mxu0 }
 0xc92   :  { %v2153_v18 = vpop.f32.mrb[44].mxu0 }
 0xc93   :  { %v2157_v32 = vadd.f32 %v2153_v18, %v6812_v40  ;;  %v5825_v25 = vpop.f32.mrb[45].mxu0 }
 0xc95   :  { %6334 = vtanh.f32 %v2157_v32 }
 0xc9f   :  { %v6335_v1 = vpop.eup %6334 }
 0xca0   :  { %v2238_v60 = vsel %vm2237_vm13, %v6335_v1, %v2083_v43  ;;  %v2159_v61 = vadd.f32 %v6335_v1, %v6901_v17  ;;  %vm4195_vm13 = vcmask 1043459  }
 0xca2   :  { %5827 = vmatpush3.msra.mxu1 %v2159_v61 }
 0xca3   :  { %5829 = vmatmul.mubr.msk.f32.vlgmr.msra.gmra.mrb[40].mxu1 %vm1382_vm7, %v6865_v44  ;;  %6194 = vmatprep.subr.bf16.mxu1 %v7577_v10 }
 0xca4   :  { %6196 = vmatpush3.bf16.msra.mxu1 %v6739_v21  ;;  %5839 = vmatprep.mubr.msk.f32.mxu1 %vm6443_vm0, %v7578_v0 }
 0xca5   :  { %6197 = vmatprep.subr.bf16.mxu1 %v7577_v10 }
 0xca8   :  { %6199 = vmatpush3.bf16.msra.mxu1 %v6749_v27 }
 0xca9   :  { %5858 = vmatprep.subr.mxu1 %v7578_v0 }
 0xcab   :  { %5840 = vmatmul.mubr.msk.f32.vlgmr.msra.gmra.mrb[42].mxu1 %vm187_vm1, %v6335_v1 }
 0xcac   :  { %5860 = vmatprep.mubr.msk.f32.mxu1 %vm6443_vm0, %v7578_v0 }
 0xd76   :  { %v2226_v4 = vpop.f32.mrb[40].mxu1 }
 0xd77   :  { %2231 = vst.msk [vmem:[#allocation3 + $0x28] sm:$0xff] %vm187_vm1, %v2226_v4  ;;  %v5830_v40 = vpop.f32.mrb[41].mxu1 }
 0xd7e   :  { %v2308_v17 = vpop.f32.mrb[42].mxu1 }
 0xd7f   :  { %v2312_v62 = vadd.f32 %v2308_v17, %v6806_v31  ;;  %v5841_v14 = vpop.f32.mrb[43].mxu1 }
 0xd81   :  { %6336 = vtanh.f32 %v2312_v62 }
 0xd8b   :  { %v6337_v19 = vpop.eup %6336 }
 0xd8c   :  { %v2314_v30 = vadd.f32 %v6337_v19, %v6895_v24  ;;  %v2393_v15 = vsel %vm2392_vm14, %v6337_v19, %v2238_v60  ;;  %vm4197_vm14 = vcmask 1044484  }
 0xd8e   :  { %5843 = vmatpush3.msra.mxu0 %v2314_v30 }
 0xd8f   :  { %5845 = vmatmul.mubr.msk.f32.vlgmr.msra.gmra.mrb[46].mxu0 %vm1382_vm7, %v6865_v44  ;;  %6200 = vmatprep.subr.bf16.mxu0 %v7577_v10 }
 0xd90   :  { %6202 = vmatpush3.bf16.msra.mxu0 %v6739_v21  ;;  %5855 = vmatprep.mubr.msk.f32.mxu0 %vm6443_vm0, %v7578_v0 }
 0xd91   :  { %6203 = vmatprep.subr.bf16.mxu0 %v7577_v10 }
 0xd94   :  { %6205 = vmatpush3.bf16.msra.mxu0 %v6749_v27 }
 0xd95   :  { %5874 = vmatprep.subr.mxu0 %v7578_v0 }
 0xd97   :  { %5856 = vmatmul.mubr.msk.f32.vlgmr.msra.gmra.mrb[48].mxu0 %vm187_vm1, %v6337_v19 }
 0xd98   :  { %5876 = vmatprep.mubr.msk.f32.mxu0 %vm6443_vm0, %v7578_v0 }
 0xe62   :  { %v2381_v5 = vpop.f32.mrb[46].mxu0 }
 0xe63   :  { %2386 = vst.msk [vmem:[#allocation3 + $0x30] sm:$0xff] %vm187_vm1, %v2381_v5  ;;  %v5846_v31 = vpop.f32.mrb[47].mxu0 }
 0xe6a   :  { %v2463_v24 = vpop.f32.mrb[48].mxu0 }
 0xe6b   :  { %v2467_v63 = vadd.f32 %v2463_v24, %v6810_v36  ;;  %v5857_v22 = vpop.f32.mrb[49].mxu0 }
 0xe6d   :  { %6338 = vtanh.f32 %v2467_v63 }
 0xe77   :  { %v6339_v57 = vpop.eup %6338 }
 0xe78   :  { %v2469_v33 = vadd.f32 %v6339_v57, %v6899_v35  ;;  %v2548_v38 = vsel %vm2547_vm15, %v6339_v57, %v2393_v15  ;;  %vm4199_vm15 = vcmask 1045509  }
 0xe7a   :  { %5859 = vmatpush3.msra.mxu1 %v2469_v33 }
 0xe7b   :  { %5861 = vmatmul.mubr.msk.f32.vlgmr.msra.gmra.mrb[44].mxu1 %vm1382_vm7, %v6865_v44  ;;  %6206 = vmatprep.subr.bf16.mxu1 %v7577_v10 }
 0xe7c   :  { %6208 = vmatpush3.bf16.msra.mxu1 %v6739_v21  ;;  %5871 = vmatprep.mubr.msk.f32.mxu1 %vm6443_vm0, %v7578_v0 }
 0xe7d   :  { %6209 = vmatprep.subr.bf16.mxu1 %v7577_v10 }
 0xe80   :  { %6211 = vmatpush3.bf16.msra.mxu1 %v6749_v27 }
 0xe81   :  { %5890 = vmatprep.subr.mxu1 %v7578_v0 }
 0xe83   :  { %5872 = vmatmul.mubr.msk.f32.vlgmr.msra.gmra.mrb[46].mxu1 %vm187_vm1, %v6339_v57 }
 0xe84   :  { %5892 = vmatprep.mubr.msk.f32.mxu1 %vm6443_vm0, %v7578_v0 }
 0xf4e   :  { %v2536_v6 = vpop.f32.mrb[44].mxu1 }
 0xf4f   :  { %2541 = vst.msk [vmem:[#allocation3 + $0x38] sm:$0xff] %vm187_vm1, %v2536_v6  ;;  %v5862_v36 = vpop.f32.mrb[45].mxu1 }
 0xf56   :  { %v2618_v35 = vpop.f32.mrb[46].mxu1 }
 0xf57   :  { %v2622_v39 = vadd.f32 %v2618_v35, %v6819_v47  ;;  %v5873_v43 = vpop.f32.mrb[47].mxu1 }
 0xf59   :  { %6340 = vtanh.f32 %v2622_v39 }
 0xf63   :  { %v6341_v29 = vpop.eup %6340 }
 0xf64   :  { %v2624_v3 = vadd.f32 %v6341_v29, %v6905_v41  ;;  %v2703_v34 = vsel %vm2702_vm2, %v6341_v29, %v2548_v38  ;;  %vm4201_vm2 = vcmask 1046534  }
 0xf66   :  { %5875 = vmatpush3.msra.mxu0 %v2624_v3 }
 0xf67   :  { %5877 = vmatmul.mubr.msk.f32.vlgmr.msra.gmra.mrb[50].mxu0 %vm1382_vm7, %v6865_v44  ;;  %6212 = vmatprep.subr.bf16.mxu0 %v7577_v10 }
 0xf68   :  { %6214 = vmatpush3.bf16.msra.mxu0 %v6739_v21  ;;  %5887 = vmatprep.mubr.msk.f32.mxu0 %vm6443_vm0, %v7578_v0 }
 0xf69   :  { %6215 = vmatprep.subr.bf16.mxu0 %v7577_v10 }
 0xf6c   :  { %6217 = vmatpush3.bf16.msra.mxu0 %v6749_v27 }
 0xf6d   :  { %5906 = vmatprep.subr.mxu0 %v7578_v0 }
 0xf6f   :  { %5888 = vmatmul.mubr.msk.f32.vlgmr.msra.gmra.mrb[52].mxu0 %vm187_vm1, %v6341_v29 }
 0xf70   :  { %5908 = vmatprep.mubr.msk.f32.mxu0 %vm6443_vm0, %v7578_v0 }
0x103a   :  { %v2691_v7 = vpop.f32.mrb[50].mxu0 }
0x103b   :  { %2696 = vst.msk [vmem:[#allocation3 + $0x40] sm:$0xff] %vm187_vm1, %v2691_v7  ;;  %v5878_v47 = vpop.f32.mrb[51].mxu0  ;;  %v3875_v7 = vld [vmem:[%s5236_s28] sm:$0xff] }
0x103c   :  { %v3876_v47 = vld [vmem:[%s5236_s28 + $0x8] sm:$0xff] }
0x103d   :  { %v3887_v16 = vpack.c.bf16 %v3876_v47, %v3875_v7  ;;  %v4309_v47 = vld [vmem:[%s5240_s6 + $0x10] sm:$0xff] }
0x1042   :  { %v2773_v41 = vpop.f32.mrb[52].mxu0 }
0x1043   :  { %v2777_v18 = vadd.f32 %v2773_v41, %v6823_v54  ;;  %v5889_v32 = vpop.f32.mrb[53].mxu0  ;;  %v3860_v41 = vld [vmem:[#allocation3 + $0x8] sm:$0xff] }
0x1045   :  { %6342 = vtanh.f32 %v2777_v18  ;;  %v3859_v18 = vld [vmem:[#allocation3] sm:$0xff] }
0x104f   :  { %v6343_v25 = vpop.eup %6342 }
0x1050   :  { %v2779_v1 = vadd.f32 %v6343_v25, %v6909_v46  ;;  %v2858_v60 = vsel %vm2857_vm3, %v6343_v25, %v2703_v34  ;;  %vm4203_vm3 = vcmask 1047559  }
0x1052   :  { %5891 = vmatpush3.msra.mxu1 %v2779_v1  ;;  %v3864_v1 = vld [vmem:[#allocation3 + $0x28] sm:$0xff] }
0x1053   :  { %5893 = vmatmul.mubr.msk.f32.vlgmr.msra.gmra.mrb[48].mxu1 %vm1382_vm7, %v6865_v44  ;;  %6218 = vmatprep.subr.bf16.mxu1 %v7577_v10 }
0x1054   :  { %6220 = vmatpush3.bf16.msra.mxu1 %v6739_v21  ;;  %5903 = vmatprep.mubr.msk.f32.mxu1 %vm6443_vm0, %v7578_v0 }
0x1055   :  { %6221 = vmatprep.subr.bf16.mxu1 %v7577_v10 }
0x1058   :  { %6223 = vmatpush3.bf16.msra.mxu1 %v6749_v27 }
0x1059   :  { %5922 = vmatprep.subr.mxu1 %v7578_v0 }
0x105b   :  { %5904 = vmatmul.mubr.msk.f32.vlgmr.msra.gmra.mrb[50].mxu1 %vm187_vm1, %v6343_v25  ;;  %v3879_v25 = vpack.c.bf16 %v3860_v41, %v3859_v18 }
0x105c   :  { %5924 = vmatprep.mubr.msk.f32.mxu1 %vm6443_vm0, %v7578_v0 }
0x1126   :  { %v2846_v8 = vpop.f32.mrb[48].mxu1 }
0x1127   :  { %2851 = vst.msk [vmem:[#allocation3 + $0x48] sm:$0xff] %vm187_vm1, %v2846_v8  ;;  %v5894_v54 = vpop.f32.mrb[49].mxu1 }
0x1128   :  { %v3863_v54 = vld [vmem:[#allocation3 + $0x20] sm:$0xff] }
0x112e   :  { %v2928_v46 = vpop.f32.mrb[50].mxu1 }
0x112f   :  { %v2932_v61 = vadd.f32 %v2928_v46, %v6817_v56  ;;  %v5905_v4 = vpop.f32.mrb[51].mxu1  ;;  %v3881_v46 = vpack.c.bf16 %v3864_v1, %v3863_v54 }
0x1130   :  { %v3865_v4 = vld [vmem:[#allocation3 + $0x30] sm:$0xff] }
0x1131   :  { %6344 = vtanh.f32 %v2932_v61  ;;  %v3868_v61 = vld [vmem:[#allocation3 + $0x48] sm:$0xff] }
0x113b   :  { %v6345_v40 = vpop.eup %6344 }
0x113c   :  { %v2934_v17 = vadd.f32 %v6345_v40, %v6903_v37  ;;  %v3013_v62 = vsel %vm3012_vm4, %v6345_v40, %v2858_v60  ;;  %v3861_v60 = vld [vmem:[#allocation3 + $0x10] sm:$0xff] }
0x113e   :  { %5907 = vmatpush3.msra.mxu0 %v2934_v17  ;;  %v3867_v17 = vld [vmem:[#allocation3 + $0x40] sm:$0xff] }
0x113f   :  { %5909 = vmatmul.mubr.msk.f32.vlgmr.msra.gmra.mrb[54].mxu0 %vm1382_vm7, %v6865_v44  ;;  %6224 = vmatprep.subr.bf16.mxu0 %v7577_v10 }
0x1140   :  { %6226 = vmatpush3.bf16.msra.mxu0 %v6739_v21  ;;  %5919 = vmatprep.mubr.msk.f32.mxu0 %vm6443_vm0, %v7578_v0 }
0x1141   :  { %6227 = vmatprep.subr.bf16.mxu0 %v7577_v10 }
0x1144   :  { %6229 = vmatpush3.bf16.msra.mxu0 %v6749_v27 }
0x1145   :  { %5938 = vmatprep.subr.mxu0 %v7578_v0 }
0x1147   :  { %5920 = vmatmul.mubr.msk.f32.vlgmr.msra.gmra.mrb[56].mxu0 %vm187_vm1, %v6345_v40 }
0x1148   :  { %5940 = vmatprep.mubr.msk.f32.mxu0 %vm6443_vm0, %v7578_v0 }
0x1212   :  { %v3001_v9 = vpop.f32.mrb[54].mxu0 }
0x1213   :  { %3006 = vst.msk [vmem:[#allocation3 + $0x50] sm:$0xff] %vm187_vm1, %v3001_v9  ;;  %v5910_v56 = vpop.f32.mrb[55].mxu0 }
0x121a   :  { %v3083_v37 = vpop.f32.mrb[56].mxu0 }
0x121b   :  { %v3087_v14 = vadd.f32 %v3083_v37, %v6821_v49  ;;  %v5921_v19 = vpop.f32.mrb[57].mxu0  ;;  %v3869_v37 = vld [vmem:[#allocation3 + $0x50] sm:$0xff] }
0x121d   :  { %6346 = vtanh.f32 %v3087_v14 }
0x1227   :  { %v6347_v30 = vpop.eup %6346 }
0x1228   :  { %v3089_v15 = vadd.f32 %v6347_v30, %v6907_v2  ;;  %v3168_v5 = vsel %vm3167_vm5, %v6347_v30, %v3013_v62  ;;  %v3883_v62 = vpack.c.bf16 %v3868_v61, %v3867_v17  ;;  %v7581_v61 = vld [vmem:[#allocation7_spill] sm:$0xff] }
0x122a   :  { %5923 = vmatpush3.msra.mxu1 %v3089_v15 }
0x122b   :  { %5925 = vmatmul.mubr.msk.f32.vlgmr.msra.gmra.mrb[52].mxu1 %vm1382_vm7, %v6865_v44  ;;  %6230 = vmatprep.subr.bf16.mxu1 %v7577_v10 }
0x122c   :  { %6232 = vmatpush3.bf16.msra.mxu1 %v6739_v21  ;;  %5935 = vmatprep.mubr.msk.f32.mxu1 %vm6443_vm0, %v7578_v0 }
0x122d   :  { %6233 = vmatprep.subr.bf16.mxu1 %v7577_v10 }
0x1230   :  { %6235 = vmatpush3.bf16.msra.mxu1 %v6749_v27 }
0x1231   :  { %5954 = vmatprep.subr.mxu1 %v7578_v0 }
0x1233   :  { %5936 = vmatmul.mubr.msk.f32.vlgmr.msra.gmra.mrb[54].mxu1 %vm187_vm1, %v6347_v30 }
0x1234   :  { %5956 = vmatprep.mubr.msk.f32.mxu1 %vm6443_vm0, %v7578_v0 }
0x12fe   :  { %v3156_v11 = vpop.f32.mrb[52].mxu1 }
0x12ff   :  { %3161 = vst.msk [vmem:[#allocation3 + $0x58] sm:$0xff] %vm187_vm1, %v3156_v11  ;;  %v5926_v49 = vpop.f32.mrb[53].mxu1 }
0x1306   :  { %v3238_v2 = vpop.f32.mrb[54].mxu1  ;;  %v3870_v9 = vld [vmem:[#allocation3 + $0x58] sm:$0xff] }
0x1307   :  { %v3242_v31 = vadd.f32 %v3238_v2, %v6831_v53  ;;  %v5937_v24 = vpop.f32.mrb[55].mxu1  ;;  %v3884_v14 = vpack.c.bf16 %v3870_v9, %v3869_v37 }
0x1309   :  { %6348 = vtanh.f32 %v3242_v31 }
0x1313   :  { %v6349_v63 = vpop.eup %6348 }
0x1314   :  { %v3244_v22 = vadd.f32 %v6349_v63, %v6913_v48  ;;  %v3323_v57 = vsel %vm3322_vm6, %v6349_v63, %v3168_v5 }
0x1316   :  { %5939 = vmatpush3.msra.mxu0 %v3244_v22 }
0x1317   :  { %5941 = vmatmul.mubr.msk.f32.vlgmr.msra.gmra.mrb[58].mxu0 %vm1382_vm7, %v6865_v44  ;;  %6236 = vmatprep.subr.bf16.mxu0 %v7577_v10 }
0x1318   :  { %6238 = vmatpush3.bf16.msra.mxu0 %v6739_v21  ;;  %5951 = vmatprep.mubr.msk.f32.mxu0 %vm6443_vm0, %v7578_v0 }
0x1319   :  { %6239 = vmatprep.subr.bf16.mxu0 %v7577_v10 }
0x131c   :  { %6241 = vmatpush3.bf16.msra.mxu0 %v6749_v27 }
0x131d   :  { %5970 = vmatprep.subr.mxu0 %v7578_v0 }
0x131f   :  { %5952 = vmatmul.mubr.msk.f32.vlgmr.msra.gmra.mrb[60].mxu0 %vm187_vm1, %v6349_v63 }
0x1320   :  { %5972 = vmatprep.mubr.msk.f32.mxu0 %vm6443_vm0, %v7578_v0 }
0x13ea   :  { %v3311_v12 = vpop.f32.mrb[58].mxu0 }
0x13eb   :  { %3316 = vst.msk [vmem:[#allocation3 + $0x60] sm:$0xff] %vm187_vm1, %v3311_v12  ;;  %v5942_v53 = vpop.f32.mrb[59].mxu0 }
0x13ec   :  { %v4018_v53 = vld [vmem:[%s7144_s2] sm:$0xff] }
0x13f2   :  { %v3393_v48 = vpop.f32.mrb[60].mxu0  ;;  %v3871_v19 = vld [vmem:[#allocation3 + $0x60] sm:$0xff] }
0x13f3   :  { %v3397_v33 = vadd.f32 %v3393_v48, %v6835_v28  ;;  %v5953_v38 = vpop.f32.mrb[61].mxu0  ;;  %v4019_v48 = vld [vmem:[%s7144_s2 + $0x8] sm:$0xff] }
0x13f5   :  { %6350 = vtanh.f32 %v3397_v33 }
0x13ff   :  { %v6351_v6 = vpop.eup %6350 }
0x1400   :  { %v3399_v36 = vadd.f32 %v6351_v6, %v6917_v55  ;;  %v3478_v35 = vsel %vm3477_vm8, %v6351_v6, %v3323_v57 }
0x1402   :  { %5955 = vmatpush3.msra.mxu1 %v3399_v36 }
0x1403   :  { %5957 = vmatmul.mubr.msk.f32.vlgmr.msra.gmra.mrb[56].mxu1 %vm1382_vm7, %v6865_v44  ;;  %6242 = vmatprep.subr.bf16.mxu1 %v7577_v10 }
0x1404   :  { %6244 = vmatpush3.bf16.msra.mxu1 %v6739_v21  ;;  %5967 = vmatprep.mubr.msk.f32.mxu1 %vm6443_vm0, %v7578_v0 }
0x1405   :  { %6245 = vmatprep.subr.bf16.mxu1 %v7577_v10 }
0x1408   :  { %6247 = vmatpush3.bf16.msra.mxu1 %v6749_v27 }
0x1409   :  { %5986 = vmatprep.subr.mxu1 %v7578_v0 }
0x140b   :  { %5968 = vmatmul.mubr.msk.f32.vlgmr.msra.gmra.mrb[58].mxu1 %vm187_vm1, %v6351_v6 }
0x140c   :  { %5988 = vmatprep.mubr.msk.f32.mxu1 %vm6443_vm0, %v7578_v0 }
0x14d6   :  { %v3466_v13 = vpop.f32.mrb[56].mxu1 }
0x14d7   :  { %3471 = vst.msk [vmem:[#allocation3 + $0x68] sm:$0xff] %vm187_vm1, %v3466_v13  ;;  %v5958_v28 = vpop.f32.mrb[57].mxu1 }
0x14de   :  { %v3548_v55 = vpop.f32.mrb[58].mxu1  ;;  %v3872_v56 = vld [vmem:[#allocation3 + $0x68] sm:$0xff] }
0x14df   :  { %v3552_v39 = vadd.f32 %v3548_v55, %v6827_v58  ;;  %v5969_v43 = vpop.f32.mrb[59].mxu1  ;;  %v3877_v58 = vld [vmem:[%s5236_s28 + $0x10] sm:$0xff]  ;;  %v3885_v30 = vpack.c.bf16 %v3872_v56, %v3871_v19 }
0x14e0   :  { %v4020_v55 = vld [vmem:[%s7144_s2 + $0x10] sm:$0xff] }
0x14e1   :  { %6352 = vtanh.f32 %v3552_v39  ;;  %v4021_v39 = vld [vmem:[%s7144_s2 + $0x18] sm:$0xff]  ;;  %s5246_s2 = sld [smem:[%s7564_s0 + %s6473_s29]]  }
0x14e2   :  { %v6258_v43 = vpack.c.bf16 %v4021_v39, %v4020_v55 }
0x14eb   :  { %v6353_v29 = vpop.eup %6352 }
0x14ec   :  { %v3554_v3 = vadd.f32 %v6353_v29, %v6911_v59  ;;  %v7120_v34 = vsel %vm3632_vm9, %v6353_v29, %v3478_v35  ;;  %v3878_v59 = vld [vmem:[%s5236_s28 + $0x18] sm:$0xff]  ;;  %s5247_s28 = sld [smem:[%s7564_s0 + %s6472_s25]]  }
0x14ed   :  { %v3888_v32 = vpack.c.bf16 %v3878_v59, %v3877_v58  ;;  %s1_s25 = sld [smem:[%s7564_s0]]  }
0x14ee   :  { %5971 = vmatpush3.msra.mxu0 %v3554_v3 }
0x14ef   :  { %5973 = vmatmul.mubr.msk.f32.vlgmr.msra.gmra.mrb[62].mxu0 %vm1382_vm7, %v6865_v44  ;;  %6248 = vmatprep.subr.bf16.mxu0 %v7577_v10 }
0x14f0   :  { %6250 = vmatpush3.bf16.msra.mxu0 %v6739_v21  ;;  %5983 = vmatprep.mubr.msk.f32.mxu0 %vm6443_vm0, %v7578_v0  ;;  %v3862_v21 = vld [vmem:[#allocation3 + $0x18] sm:$0xff] }
0x14f1   :  { %6251 = vmatprep.subr.bf16.mxu0 %v7577_v10  ;;  %v3880_v8 = vpack.c.bf16 %v3862_v21, %v3861_v60 }
0x14f4   :  { %6253 = vmatpush3.bf16.msra.mxu0 %v6749_v27  ;;  %v3866_v27 = vld [vmem:[#allocation3 + $0x38] sm:$0xff] }
0x14f5   :  { %5996 = vmatprep.subr.bf16.mxu0 %v3887_v16  ;;  %v3882_v40 = vpack.c.bf16 %v3866_v27, %v3865_v4 }
0x14f7   :  { %5984 = vmatmul.mubr.msk.f32.vlgmr.msra.gmra.mrb[64].mxu0 %vm187_vm1, %v6353_v29  ;;  %v4308_v29 = vld [vmem:[%s5240_s6 + $0x8] sm:$0xff] }
0x14f8   :  { %5997 = vmatpush3.bf16.msra.mxu0 %v3887_v16  ;;  %6000 = vmatprep.mubr.msk.bf16.mxu0 %vm187_vm1, %v3879_v25  ;;  %v4310_v16 = vld [vmem:[%s5240_s6 + $0x18] sm:$0xff] }
0x14f9   :  { %5998 = vmatprep.subr.bf16.mxu0 %v3888_v32  ;;  %v6264_v41 = vpack.c.bf16 %v4310_v16, %v4309_v47 }
0x14fc   :  { %5999 = vmatpush3.bf16.msra.mxu0 %v3888_v32 }
0x14fd   :  { %6054 = vmatprep.subr.bf16.mxu0 %v7578_v0 }
0x14ff   :  { %6001 = vmatmul.mubr.msk.bf16.vlgmr.msra.gmra.mrb[68].mxu0 %vm187_vm1, %v3880_v8  ;;  %v7579_v8 = vld [vmem:[#allocation5_spill] sm:$0xff] }
0x1500   :  { %6004 = vmatprep.mubr.msk.bf16.mxu0 %vm187_vm1, %v3881_v46  ;;  %v7580_v46 = vld [vmem:[#allocation6_spill] sm:$0xff] }
0x1507   :  { %6005 = vmatmul.mubr.msk.bf16.gmra.mrb[72].mxu0 %vm187_vm1, %v3882_v40  ;;  %v7582_v40 = vld [vmem:[#allocation9_spill] sm:$0xff] }
0x1508   :  { %6008 = vmatprep.mubr.msk.bf16.mxu0 %vm187_vm1, %v3883_v62 }
0x150f   :  { %6009 = vmatmul.mubr.msk.bf16.gmra.mrb[76].mxu0 %vm187_vm1, %v3884_v14 }
0x1510   :  { %6012 = vmatprep.mubr.msk.bf16.mxu0 %vm187_vm1, %v3885_v30 }
0x15c2   :  { %v3621_v15 = vpop.f32.mrb[62].mxu0 }
0x15c3   :  { %3626 = vst.msk [vmem:[#allocation3 + $0x70] sm:$0xff] %vm187_vm1, %v3621_v15  ;;  %v5974_v5 = vpop.f32.mrb[63].mxu0 }
0x15ca   :  { %v3703_v11 = vpop.f32.mrb[64].mxu0  ;;  %v7197_v18 = vld [vmem:[#allocation3 + $0x70] sm:$0xff] }
0x15cb   :  { %v3707_v49 = vadd.f32 %v3703_v11, %v6833_v23  ;;  %v5985_v2 = vpop.f32.mrb[65].mxu0 }
0x15cd   :  { %6354 = vtanh.f32 %v3707_v49 }
0x15d2   :  { %v7146_v31 = vpop.f32.mrb[68].mxu0 }
0x15d3   :  { %v7148_v24 = vpop.f32.mrb[69].mxu0 }
0x15d4   :  { %v7150_v63 = vpop.f32.mrb[70].mxu0 }
0x15d5   :  { %v7152_v22 = vpop.f32.mrb[71].mxu0 }
0x15d7   :  { %v6355_v57 = vpop.eup %6354 }
0x15d8   :  { %v3709_v23 = vadd.f32 %v6355_v57, %v6915_v50  ;;  %v3788_v12 = vsel %vm3787_vm10, %v6355_v57, %v7120_v34  ;;  %v6255_v50 = vpack.c.bf16 %v4019_v48, %v4018_v53 }
0x15da   :  { %5987 = vmatpush3.msra.mxu1 %v3709_v23  ;;  %v7159_v33 = vpop.f32.mrb[72].mxu0 }
0x15db   :  { %5989 = vmatmul.mubr.msk.f32.vlgmr.msra.gmra.mrb[60].mxu1 %vm1382_vm7, %v6865_v44  ;;  %5991 = vmatprep.subr.mxu1 %v7578_v0  ;;  %v7164_v38 = vpop.f32.mrb[73].mxu0 }
0x15dc   :  { %5992 = vmatpush3.msra.mxu1 %v3788_v12  ;;  %v7166_v20 = vpop.f32.mrb[74].mxu0  ;;  %5993 = vmatprep.mubr.msk.f32.mxu1 %vm6443_vm0, %v7578_v0 }
0x15dd   :  { %v7170_v6 = vpop.f32.mrb[75].mxu0  ;;  %6254 = vmatprep.subr.bf16.mxu1 %v7577_v10 }
0x15df   :  { %5994 = vmatmul.mubr.msk.f32.vlgmr.msra.gmra.mrb[62].mxu1 %vm1382_vm7, %v6865_v44  ;;  %v4307_v44 = vld [vmem:[%s5240_s6] sm:$0xff]  ;;  %s7499_s6 = sld [smem:[%s7564_s0 + %s6474_s3]]  }
0x15e0   :  { %6256 = vmatpush3.bf16.msra.mxu1 %v6255_v50  ;;  %6024 = vmatprep.mubr.msk.f32.mxu1 %vm6443_vm0, %v7578_v0  ;;  %v6261_v7 = vpack.c.bf16 %v4308_v29, %v4307_v44 }
0x15e1   :  { %6257 = vmatprep.subr.bf16.mxu1 %v7577_v10 }
0x15e2   :  { %v7178_v36 = vpop.f32.mrb[76].mxu0 }
0x15e3   :  { %v7180_v35 = vpop.f32.mrb[77].mxu0 }
0x15e4   :  { %v7182_v13 = vpop.f32.mrb[78].mxu0  ;;  %6259 = vmatpush3.bf16.msra.mxu1 %v6258_v43 }
0x15e5   :  { %v7184_v28 = vpop.f32.mrb[79].mxu0  ;;  %6260 = vmatprep.subr.bf16.mxu1 %v7577_v10 }
0x16ae   :  { %v3776_v3 = vpop.f32.mrb[60].mxu1 }
0x16af   :  { %3781 = vst.msk [vmem:[#allocation3 + $0x78] sm:$0xff] %vm187_vm1, %v3776_v3  ;;  %v5990_v34 = vpop.f32.mrb[61].mxu1 }
0x16b2   :  { %v3855_v58 = vpop.f32.mrb[62].mxu1 }
0x16b3   :  { %v5995_v59 = vpop.f32.mrb[63].mxu1  ;;  %6025 = vmatmul.mubr.msk.f32.vlgmr.msra.gmra.mrb[64].mxu1 %vm187_vm1, %v3855_v58 }
0x16b4   :  { %6262 = vmatpush3.bf16.msra.mxu1 %v6261_v7  ;;  %6035 = vmatprep.mubr.msk.f32.mxu1 %vm6443_vm0, %v7578_v0 }
0x16b5   :  { %6263 = vmatprep.subr.bf16.mxu1 %v7577_v10  ;;  %v5269_v10 = vld [vmem:[%s5235_s10] ss:$0 sm:$0xff]  ;;  %s7522_s10 = sld [smem:[%s7564_s0 + %s6475_s7]]  }
0x16b6   :  { %v7199_v32 = vld [vmem:[#allocation3 + $0x78] sm:$0xff]  ;;  %v1021_v21 = vadd.f32 %v6710_v45, %v5269_v10  ;;  %v1013_v1 = vadd.f32 %v5269_v10, %v6717_v26  ;;  %v1016_v60 = vadd.f32 %v5269_v10, %v6721_v52  ;;  %v1037_v54 = vadd.f32 %v7579_v8, %v5269_v10 }
0x16b7   :  { %v3886_v25 = vpack.c.bf16 %v7199_v32, %v7197_v18  ;;  %v1029_v27 = vadd.f32 %v5269_v10, %v7580_v46  ;;  %v1040_v4 = vadd.f32 %v7581_v61, %v5269_v10  ;;  %v1032_v17 = vadd.f32 %v5269_v10, %v7582_v40 }
0x16b8   :  { %6265 = vmatpush3.bf16.msra.mxu1 %v6264_v41 }
0x16b9   :  { %6013 = vmatmul.mubr.msk.bf16.gmra.mrb[80].mxu0 %vm187_vm1, %v3886_v25  ;;  %6038 = vmatprep.subr.bf16.mxu1 %v7578_v0 }
0x16ba   :  { %6058 = vmatprep.mubr.msk.bf16.mxu0 %vm6443_vm0, %v7578_v0 }
0x16bb   :  { %6036 = vmatmul.mubr.msk.f32.vlgmr.msra.gmra.mrb[66].mxu1 %vm187_vm1, %v6804_v42  ;;  %v1024_v42 = vadd.f32 %v6719_v51, %v5269_v10  ;;  %v5323_v51 = vld [vmem:[%s5237_s14] ss:$0 sm:$0xff]  ;;  %s5250_s14 = sld [smem:[%s7564_s0 + %s6476_s11]]  }
0x16bc   :  { %6042 = vmatprep.mubr.msk.bf16.mxu1 %vm6443_vm0, %v7578_v0  ;;  %v3963_v15 = vadd.f32 %v7146_v31, %v5323_v51  ;;  %v3955_v5 = vadd.f32 %v5323_v51, %v7148_v24  ;;  %v3966_v11 = vadd.f32 %v7150_v63, %v5323_v51  ;;  %v3958_v49 = vadd.f32 %v5323_v51, %v7152_v22 }
0x16bd   :  { %v3979_v2 = vadd.f32 %v7159_v33, %v5323_v51  ;;  %v3971_v57 = vadd.f32 %v5323_v51, %v7164_v38  ;;  %v3982_v12 = vadd.f32 %v7166_v20, %v5323_v51  ;;  %v3974_v53 = vadd.f32 %v5323_v51, %v7170_v6 }
0x16be   :  { %v3995_v48 = vadd.f32 %v7178_v36, %v5323_v51  ;;  %v3987_v50 = vadd.f32 %v5323_v51, %v7180_v35  ;;  %v3998_v24 = vadd.f32 %v7182_v13, %v5323_v51  ;;  %v3990_v63 = vadd.f32 %v5323_v51, %v7184_v28 }
0x1786   :  { %v4092_v62 = vpop.f32.mrb[64].mxu1 }
0x1787   :  { %v6026_v9 = vpop.f32.mrb[65].mxu1  ;;  %v7225_v56 = vadd.f32 %v4092_v62, %v1016_v60  ;;  %v7227_v37 = vadd.f32 %v4092_v62, %v1013_v1  ;;  %v7229_v45 = vadd.f32 %v4092_v62, %v1024_v42  ;;  %v7231_v26 = vadd.f32 %v4092_v62, %v1021_v21  ;;  %v7256_v21 = vld [vmem:[%s5241_s18] ss:$0 sm:$0xff]  ;;  %s5252_s18 = sld [smem:[%s7564_s0 + %s6477_s15]]  }
0x1788   :  { %v7233_v52 = vadd.f32 %v4092_v62, %v1032_v17  ;;  %v7235_v14 = vadd.f32 %v4092_v62, %v1029_v27  ;;  %v7237_v19 = vadd.f32 %v4092_v62, %v1040_v4  ;;  %v7239_v30 = vadd.f32 %v4092_v62, %v1037_v54 }
0x178c   :  { %v6014_v23 = vpop.f32.mrb[80].mxu0 }
0x178d   :  { %v4002_v31 = vpop.f32.mrb[81].mxu0  ;;  %v4011_v55 = vadd.f32 %v6014_v23, %v5323_v51 }
0x178e   :  { %v4003_v22 = vadd.f32 %v5323_v51, %v4002_v31  ;;  %v4381_v39 = vpop.f32.mrb[66].mxu1  ;;  %v6015_v33 = vpop.f32.mrb[82].mxu0 }
0x178f   :  { %v4014_v43 = vadd.f32 %v6015_v33, %v5323_v51  ;;  %v6037_v38 = vpop.f32.mrb[67].mxu1  ;;  %v4005_v44 = vpop.f32.mrb[83].mxu0  ;;  %v4386_v29 = vadd.f32 %v4381_v39, %v3958_v49  ;;  %v4385_v20 = vadd.f32 %v4381_v39, %v3955_v5  ;;  %v4393_v3 = vadd.f32 %v4381_v39, %v3987_v50 }
0x1790   :  { %v4006_v6 = vadd.f32 %v5323_v51, %v4005_v44  ;;  %v4394_v34 = vadd.f32 %v4381_v39, %v3990_v63  ;;  %v4387_v36 = vadd.f32 %v4381_v39, %v3963_v15  ;;  %v4395_v7 = vadd.f32 %v4381_v39, %v3995_v48 }
0x1791   :  { %v4400_v35 = vadd.f32 %v4381_v39, %v4014_v43  ;;  %6356 = vtanh.f32 %v4386_v29  ;;  %v4388_v13 = vadd.f32 %v4381_v39, %v3966_v11  ;;  %v4396_v28 = vadd.f32 %v4381_v39, %v3998_v24 }
0x1792   :  { %v4398_v47 = vadd.f32 %v4381_v39, %v4006_v6  ;;  %6358 = vtanh.f32 %v4385_v20  ;;  %v4389_v16 = vadd.f32 %v4381_v39, %v3971_v57  ;;  %v4399_v58 = vadd.f32 %v4381_v39, %v4011_v55 }
0x1793   :  { %v4390_v59 = vadd.f32 %v4381_v39, %v3974_v53  ;;  %v4397_v41 = vadd.f32 %v4381_v39, %v4003_v22  ;;  %v4391_v25 = vadd.f32 %v4381_v39, %v3979_v2  ;;  %v4392_v10 = vadd.f32 %v4381_v39, %v3982_v12 }
0x1794   :  { %6360 = vtanh.f32 %v4393_v3 }
0x1795   :  { %6362 = vtanh.f32 %v4394_v34 }
0x1796   :  { %6364 = vtanh.f32 %v4387_v36 }
0x1797   :  { %6366 = vtanh.f32 %v4395_v7 }
0x1798   :  { %6368 = vtanh.f32 %v4388_v13  ;;  %v5333_v13 = vld [vmem:[%s5239_s22] ss:$0 sm:$0xff]  ;;  %s5254_s22 = sld [smem:[%s7564_s0 + %s6478_s19]]  }
0x1799   :  { %6370 = vtanh.f32 %v4396_v28 }
0x179a   :  { %6372 = vtanh.f32 %v4389_v16 }
0x179b   :  { %v6357_v1 = vpop.eup %6356  ;;  %6374 = vtanh.f32 %v4399_v58 }
0x179c   :  { %v6359_v42 = vpop.eup %6358  ;;  %v4424_v60 = vmul.f32 %v6357_v1, %v7256_v21  ;;  %6376 = vtanh.f32 %v4390_v59 }
0x179d   :  { %v4423_v8 = vmul.f32 %v6359_v42, %v7256_v21  ;;  %6378 = vtanh.f32 %v4397_v41 }
0x179e   :  { %v4442_v54 = vsel %vm187_vm1, %v4424_v60, 0.0  ;;  %v6361_v46 = vpop.eup %6360  ;;  %6380 = vtanh.f32 %v4391_v25 }
0x179f   :  { %4443 = vadd.xlane.f32.xlu0 %v4442_v54  ;;  %v4439_v27 = vsel %vm187_vm1, %v4423_v8, 0.0  ;;  %v6363_v61 = vpop.eup %6362  ;;  %v4431_v4 = vmul.f32 %v6361_v46, %v7256_v21  ;;  %6382 = vtanh.f32 %v4398_v47 }
0x17a0   :  { %4440 = vadd.xlane.f32.xlu1 %v4439_v27  ;;  %v6365_v40 = vpop.eup %6364  ;;  %v4432_v17 = vmul.f32 %v6363_v61, %v7256_v21  ;;  %6384 = vtanh.f32 %v4392_v10 }
0x17a1   :  { %v6367_v62 = vpop.eup %6366  ;;  %v4463_v9 = vsel %vm187_vm1, %v4431_v4, 0.0  ;;  %v4425_v51 = vmul.f32 %v6365_v40, %v7256_v21  ;;  %6386 = vtanh.f32 %v4400_v35 }
0x17a2   :  { %v6369_v15 = vpop.eup %6368  ;;  %v4466_v5 = vsel %vm187_vm1, %v4432_v17, 0.0  ;;  %v4433_v11 = vmul.f32 %v6367_v62, %v7256_v21  ;;  %6388 = vtanh.f32 %v7227_v37 }
0x17a3   :  { %4464 = vadd.xlane.f32.xlu0 %v4463_v9  ;;  %v6371_v49 = vpop.eup %6370  ;;  %v4445_v2 = vsel %vm187_vm1, %v4425_v51, 0.0  ;;  %v4426_v57 = vmul.f32 %v6369_v15, %v7256_v21  ;;  %6390 = vtanh.f32 %v7225_v56 }
0x17a4   :  { %4467 = vadd.xlane.f32.xlu1 %v4466_v5  ;;  %v6373_v23 = vpop.eup %6372  ;;  %v4469_v12 = vsel %vm187_vm1, %v4433_v11, 0.0  ;;  %v4434_v53 = vmul.f32 %v6371_v49, %v7256_v21  ;;  %6392 = vtanh.f32 %v7231_v26 }
0x17a5   :  { %v6375_v48 = vpop.eup %6374  ;;  %v4448_v50 = vsel %vm187_vm1, %v4426_v57, 0.0  ;;  %v4427_v31 = vmul.f32 %v6373_v23, %v7256_v21  ;;  %6394 = vtanh.f32 %v7229_v45  ;;  %v7583_v57 = vlaneseq }
0x17a6   :  { %v6377_v24 = vpop.eup %6376  ;;  %v4472_v63 = vsel %vm187_vm1, %v4434_v53, 0.0  ;;  %v4437_v55 = vmul.f32 %v6375_v48, %v7256_v21  ;;  %6396 = vtanh.f32 %v7235_v14  ;;  %v7584_v48 = vld [vmem:[#allocation8_spill] sm:$0xff] }
0x17a7   :  { %4446 = vadd.xlane.f32.xlu0 %v4445_v2  ;;  %v6379_v22 = vpop.eup %6378  ;;  %v4451_v39 = vsel %vm187_vm1, %v4427_v31, 0.0  ;;  %v4428_v33 = vmul.f32 %v6377_v24, %v7256_v21  ;;  %6398 = vtanh.f32 %v7233_v52  ;;  %v7310_v23 = vshrl.u32 %v7583_v57, 7 }
0x17a8   :  { %4470 = vadd.xlane.f32.xlu1 %v4469_v12  ;;  %v6381_v43 = vpop.eup %6380  ;;  %v4481_v38 = vsel %vm187_vm1, %v4437_v55, 0.0  ;;  %v4435_v44 = vmul.f32 %v6379_v22, %v7256_v21  ;;  %6400 = vtanh.f32 %v7239_v30 }
0x17a9   :  { %v6383_v29 = vpop.eup %6382  ;;  %v4454_v37 = vsel %vm187_vm1, %v4428_v33, 0.0  ;;  %v4429_v20 = vmul.f32 %v6381_v43, %v7256_v21  ;;  %6402 = vtanh.f32 %v7237_v19 }
0x17aa   :  { %v6385_v56 = vpop.eup %6384  ;;  %v4475_v3 = vsel %vm187_vm1, %v4435_v44, 0.0  ;;  %v4436_v6 = vmul.f32 %v6383_v29, %v7256_v21 }
0x17ab   :  { %4449 = vadd.xlane.f32.xlu0 %v4448_v50  ;;  %v6387_v34 = vpop.eup %6386  ;;  %v4457_v36 = vsel %vm187_vm1, %v4429_v20, 0.0  ;;  %v4430_v26 = vmul.f32 %v6385_v56, %v7256_v21  ;;  %v7314_v50 = vsub.s32 %v7584_v48, %v7310_v23 }
0x17ac   :  { %4473 = vadd.xlane.f32.xlu1 %v4472_v63  ;;  %v6389_v7 = vpop.eup %6388  ;;  %v4478_v45 = vsel %vm187_vm1, %v4436_v6, 0.0  ;;  %v4438_v35 = vmul.f32 %v6387_v34, %v7256_v21 }
0x17ad   :  { %v6391_v28 = vpop.eup %6390  ;;  %v4460_v47 = vsel %vm187_vm1, %v4430_v26, 0.0  ;;  %v4118_v14 = vmul.f32 %v6389_v7, %v5333_v13 }
0x17ae   :  { %v6393_v16 = vpop.eup %6392  ;;  %v4484_v52 = vsel %vm187_vm1, %v4438_v35, 0.0  ;;  %v4119_v58 = vmul.f32 %v6391_v28, %v5333_v13  ;;  %v4305_v28 = vld [vmem:[%s7319_s26] sm:$0xff] }
0x17af   :  { %4452 = vadd.xlane.f32.xlu0 %v4451_v39  ;;  %v6395_v59 = vpop.eup %6394  ;;  %v4126_v41 = vsel %vm187_vm1, %v4118_v14, 0.0  ;;  %v4120_v25 = vmul.f32 %v6393_v16, %v5333_v13  ;;  %v4306_v16 = vld [vmem:[%s7319_s26 + $0x8] sm:$0xff]  ;;  %vm4487_vm4 = vcmp.gt.f32.partialorder %v4305_v28, 0.5  ;;  %s6479_s26 = smov 36  }
0x17b0   :  { %4482 = vadd.xlane.f32.xlu1 %v4481_v38  ;;  %v6397_v10 = vpop.eup %6396  ;;  %v4129_v21 = vsel %vm187_vm1, %v4119_v58, 0.0  ;;  %v4121_v30 = vmul.f32 %v6395_v59, %v5333_v13  ;;  %vm4488_vm5 = vcmp.gt.f32.partialorder %v4306_v16, 0.5  ;;  %s5255_s29 = sld [smem:[%s7564_s0 + %s6479_s26]]  }
0x17b1   :  { %v6399_v1 = vpop.eup %6398  ;;  %v4132_v42 = vsel %vm187_vm1, %v4120_v25, 0.0  ;;  %v4122_v19 = vmul.f32 %v6397_v10, %v5333_v13 }
0x17b2   :  { %v6401_v60 = vpop.eup %6400  ;;  %v4135_v8 = vsel %vm187_vm1, %v4121_v30, 0.0  ;;  %v4123_v54 = vmul.f32 %v6399_v1, %v5333_v13 }
0x17b3   :  { %4455 = vadd.xlane.f32.xlu0 %v4454_v37  ;;  %v6403_v46 = vpop.eup %6402  ;;  %v4138_v27 = vsel %vm187_vm1, %v4122_v19, 0.0  ;;  %v4124_v61 = vmul.f32 %v6401_v60, %v5333_v13 }
0x17b4   :  { %4476 = vadd.xlane.f32.xlu1 %v4475_v3  ;;  %v4141_v4 = vsel %vm187_vm1, %v4123_v54, 0.0  ;;  %v4125_v40 = vmul.f32 %v6403_v46, %v5333_v13 }
0x17b5   :  { %v4144_v17 = vsel %vm187_vm1, %v4124_v61, 0.0 }
0x17b6   :  { %v4147_v62 = vsel %vm187_vm1, %v4125_v40, 0.0 }
0x17b7   :  { %4458 = vadd.xlane.f32.xlu0 %v4457_v36 }
0x17b8   :  { %4479 = vadd.xlane.f32.xlu1 %v4478_v45 }
0x17bb   :  { %4461 = vadd.xlane.f32.xlu0 %v4460_v47 }
0x17bc   :  { %4485 = vadd.xlane.f32.xlu1 %v4484_v52 }
0x17bf   :  { %4127 = vadd.xlane.f32.xlu0 %v4126_v41 }
0x17c0   :  { %4130 = vadd.xlane.f32.xlu1 %v4129_v21 }
0x17c3   :  { %4133 = vadd.xlane.f32.xlu0 %v4132_v42 }
0x17c4   :  { %4136 = vadd.xlane.f32.xlu1 %v4135_v8 }
0x17c7   :  { %4139 = vadd.xlane.f32.xlu0 %v4138_v27 }
0x17c8   :  { %4142 = vadd.xlane.f32.xlu1 %v4141_v4 }
0x17cb   :  { %4145 = vadd.xlane.f32.xlu0 %v4144_v17 }
0x17cc   :  { %4148 = vadd.xlane.f32.xlu1 %v4147_v62 }
0x182c   :  { %v4444_v9 = vpop.xlane.xlu0 %4443 }
0x182d   :  { %v4441_v51 = vpop.xlane.xlu1 %4440  ;;  %v4512_v22 = vrot.slane %v4444_v9, %v7314_v50 }
0x182e   :  { %v4508_v39 = vrot.slane %v4441_v51, %v7314_v50 }
0x1830   :  { %v4465_v15 = vpop.xlane.xlu0 %4464  ;;  %v4569_v6 = vsel %vm4191_vm11, %v4512_v22, %v4508_v39 }
0x1831   :  { %v4468_v5 = vpop.xlane.xlu1 %4467  ;;  %v4540_v24 = vrot.slane %v4465_v15, %v7314_v50 }
0x1832   :  { %v4544_v63 = vrot.slane %v4468_v5, %v7314_v50 }
0x1834   :  { %v4447_v11 = vpop.xlane.xlu0 %4446  ;;  %v4576_v20 = vsel %vm4191_vm11, %v4544_v63, %v4540_v24 }
0x1835   :  { %v4471_v49 = vpop.xlane.xlu1 %4470  ;;  %v4516_v38 = vrot.slane %v4447_v11, %v7314_v50 }
0x1836   :  { %v4548_v33 = vrot.slane %v4471_v49, %v7314_v50 }
0x1837   :  { %v4570_v7 = vsel %vm4193_vm12, %v4516_v38, %v4569_v6 }
0x1838   :  { %v4450_v2 = vpop.xlane.xlu0 %4449  ;;  %v4577_v34 = vsel %vm4193_vm12, %v4548_v33, %v4576_v20  ;;  %v4017_v33 = vld [vmem:[%s5222_s30] sm:$0xff] }
0x1839   :  { %v4474_v12 = vpop.xlane.xlu1 %4473  ;;  %v4520_v29 = vrot.slane %v4450_v2, %v7314_v50  ;;  %vm4150_vm6 = vcmp.gt.f32.partialorder %v4017_v33, 0.5 }
0x183a   :  { %v4552_v44 = vrot.slane %v4474_v12, %v7314_v50 }
0x183b   :  { %v4571_v47 = vsel %vm4195_vm13, %v4520_v29, %v4570_v7 }
0x183c   :  { %v4453_v53 = vpop.xlane.xlu0 %4452  ;;  %v4578_v45 = vsel %vm4195_vm13, %v4552_v44, %v4577_v34 }
0x183d   :  { %v4483_v31 = vpop.xlane.xlu1 %4482  ;;  %v4524_v56 = vrot.slane %v4453_v53, %v7314_v50 }
0x183e   :  { %v4564_v41 = vrot.slane %v4483_v31, %v7314_v50 }
0x183f   :  { %v4572_v52 = vsel %vm4197_vm14, %v4524_v56, %v4571_v47 }
0x1840   :  { %v4456_v55 = vpop.xlane.xlu0 %4455 }
0x1841   :  { %v4477_v43 = vpop.xlane.xlu1 %4476  ;;  %v4528_v36 = vrot.slane %v4456_v55, %v7314_v50 }
0x1842   :  { %v4556_v37 = vrot.slane %v4477_v43, %v7314_v50 }
0x1843   :  { %v4573_v25 = vsel %vm4199_vm15, %v4528_v36, %v4572_v52 }
0x1844   :  { %v4459_v3 = vpop.xlane.xlu0 %4458  ;;  %v4579_v14 = vsel %vm4197_vm14, %v4556_v37, %v4578_v45 }
0x1845   :  { %v4480_v26 = vpop.xlane.xlu1 %4479  ;;  %v4532_v35 = vrot.slane %v4459_v3, %v7314_v50 }
0x1846   :  { %v4560_v13 = vrot.slane %v4480_v26, %v7314_v50 }
0x1847   :  { %v4574_v30 = vsel %vm4201_vm2, %v4532_v35, %v4573_v25 }
0x1848   :  { %v4580_v58 = vsel %vm4199_vm15, %v4560_v13, %v4579_v14  ;;  %v4462_v59 = vpop.xlane.xlu0 %4461 }
0x1849   :  { %v4536_v10 = vrot.slane %v4462_v59, %v7314_v50  ;;  %v4486_v21 = vpop.xlane.xlu1 %4485  ;;  %v4581_v19 = vsel %vm4201_vm2, %v4564_v41, %v4580_v58 }
0x184a   :  { %v4568_v1 = vrot.slane %v4486_v21, %v7314_v50 }
0x184b   :  { %v4575_v42 = vsel %vm4203_vm3, %v4536_v10, %v4574_v30 }
0x184c   :  { %v4585_v60 = vsel %vm4487_vm4, %v4575_v42, -1e+30  ;;  %v4582_v8 = vsel %vm4203_vm3, %v4568_v1, %v4581_v19  ;;  %v4128_v54 = vpop.xlane.xlu0 %4127 }
0x184d   :  { %v4587_v46 = vsel %vm1382_vm7, %v4585_v60, -inf  ;;  %v4586_v27 = vsel %vm4488_vm5, %v4582_v8, -1e+30  ;;  %v4131_v61 = vpop.xlane.xlu1 %4130  ;;  %v4162_v17 = vrot.slane %v4128_v54, %v7314_v50 }
0x184e   :  { %v4588_v4 = vsel %vm1382_vm7, %v4586_v27, -inf  ;;  %v4166_v40 = vrot.slane %v4131_v61, %v7314_v50 }
0x184f   :  { %v4589_v62 = vmax.f32 %v4587_v46, %v4588_v4 }
0x1850   :  { %v4134_v9 = vpop.xlane.xlu0 %4133  ;;  %v4192_v11 = vsel %vm4191_vm11, %v4166_v40, %v4162_v17 }
0x1851   :  { %v4590_v51 = vrot.slane %v4589_v62, 4  ;;  %v4137_v15 = vpop.xlane.xlu1 %4136  ;;  %v4170_v5 = vrot.slane %v4134_v9, %v7314_v50 }
0x1852   :  { %v4174_v49 = vrot.slane %v4137_v15, %v7314_v50 }
0x1853   :  { %v4591_v2 = vmax.f32 %v4589_v62, %v4590_v51  ;;  %v4194_v57 = vsel %vm4193_vm12, %v4170_v5, %v4192_v11  ;;  %v7380_v5 = vsub.s32 1, %v7310_v23  ;;  %v7383_v11 = vsub.s32 0, %v7310_v23 }
0x1854   :  { %v4140_v12 = vpop.xlane.xlu0 %4139  ;;  %v4196_v55 = vsel %vm4195_vm13, %v4174_v49, %v4194_v57 }
0x1855   :  { %v4592_v53 = vrot.slane %v4591_v2, 2  ;;  %v4143_v31 = vpop.xlane.xlu1 %4142  ;;  %v4178_v24 = vrot.slane %v4140_v12, %v7314_v50  ;;  %v4242_v12 = vsub.s32 2, %v7310_v23 }
0x1856   :  { %v4182_v63 = vrot.slane %v4143_v31, %v7314_v50 }
0x1857   :  { %v4593_v22 = vmax.f32 %v4591_v2, %v4592_v53  ;;  %v4198_v39 = vsel %vm4197_vm14, %v4178_v24, %v4196_v55  ;;  %v4249_v24 = vsub.s32 3, %v7310_v23 }
0x1858   :  { %v4146_v43 = vpop.xlane.xlu0 %4145  ;;  %v4200_v20 = vsel %vm4199_vm15, %v4182_v63, %v4198_v39 }
0x1859   :  { %v4594_v38 = vrot.slane %v4593_v22, 1  ;;  %v4149_v44 = vpop.xlane.xlu1 %4148  ;;  %v4186_v29 = vrot.slane %v4146_v43, %v7314_v50  ;;  %v4256_v43 = vsub.s32 4, %v7310_v23 }
0x185a   :  { %v4190_v37 = vrot.slane %v4149_v44, %v7314_v50 }
0x185b   :  { %v4595_v56 = vmax.f32 %v4593_v22, %v4594_v38  ;;  %v4202_v3 = vsel %vm4201_vm2, %v4186_v29, %v4200_v20  ;;  %v4263_v22 = vsub.s32 5, %v7310_v23  ;;  %v4277_v38 = vsub.s32 7, %v7310_v23 }
0x185c   :  { %v4204_v6 = vsel %vm4203_vm3, %v4190_v37, %v4202_v3  ;;  %v4270_v20 = vsub.s32 6, %v7310_v23 }
0x185d   :  { %v4596_v34 = vsub.f32 %v4585_v60, %v4595_v56  ;;  %v4597_v36 = vsub.f32 %v4586_v27, %v4595_v56  ;;  %v4206_v26 = vsel %vm4150_vm6, %v4204_v6, -1e+30 }
0x185e   :  { %v4207_v7 = vsel %vm1382_vm7, %v4206_v26, -inf }
0x185f   :  { %v4598_v45 = vmul.f32 1.442695, %v4596_v34  ;;  %v4600_v35 = vmul.f32 1.442695, %v4597_v36  ;;  %v4208_v13 = vrot.slane %v4207_v7, 4 }
0x1861   :  { %6404 = vpow2.f32 %v4598_v45  ;;  %v4209_v28 = vmax.f32 %v4207_v7, %v4208_v13 }
0x1862   :  { %6406 = vpow2.f32 %v4600_v35 }
0x1863   :  { %v4210_v50 = vrot.slane %v4209_v28, 2 }
0x1865   :  { %v4211_v47 = vmax.f32 %v4209_v28, %v4210_v50  ;;  %v4802_v50 = vld [vmem:[%s5245_s4] sm:$0xff] }
0x1867   :  { %v4212_v14 = vrot.slane %v4211_v47, 1 }
0x1869   :  { %v4213_v16 = vmax.f32 %v4211_v47, %v4212_v14  ;;  %v4803_v47 = vld [vmem:[%s5245_s4 + $0x8] sm:$0xff] }
0x186a   :  { %v4807_v14 = vpack.c.bf16 %v4803_v47, %v4802_v50  ;;  %v6426_v50 = vld [vmem:[#allocation3 + $0x48] sm:$0xff] }
0x186b   :  { %v6405_v52 = vpop.eup %6404  ;;  %v4214_v58 = vsub.f32 %v4206_v26, %v4213_v16 }
0x186c   :  { %v6407_v59 = vpop.eup %6406  ;;  %v4602_v41 = vsel %vm1382_vm7, %v6405_v52, 0.0  ;;  %6039 = vmatpush3.bf16.msra.mxu1 %v4807_v14  ;;  %v6427_v14 = vld [vmem:[#allocation3 + $0x40] sm:$0xff] }
0x186d   :  { %v4603_v25 = vsel %vm1382_vm7, %v6407_v59, 0.0  ;;  %v4215_v10 = vmul.f32 1.442695, %v4214_v58  ;;  %6040 = vmatprep.subr.bf16.mxu1 %v7578_v0  ;;  %v4804_v58 = vld [vmem:[%s5245_s4 + $0x10] sm:$0xff] }
0x186e   :  { %v4604_v21 = vadd.f32 %v4603_v25, %v4602_v41  ;;  %v4911_v25 = vld [vmem:[%s5248_s8] sm:$0xff] }
0x186f   :  { %6408 = vpow2.f32 %v4215_v10  ;;  %v4912_v10 = vld [vmem:[%s5248_s8 + $0x8] sm:$0xff] }
0x1870   :  { %v4605_v30 = vrot.slane %v4604_v21, 4 }
0x1872   :  { %v4606_v1 = vadd.f32 %v4605_v30, %v4604_v21  ;;  %v4916_v21 = vpack.c.bf16 %v4912_v10, %v4911_v25  ;;  %v4913_v30 = vld [vmem:[%s5248_s8 + $0x10] sm:$0xff] }
0x1874   :  { %v4607_v42 = vrot.slane %v4606_v1, 2  ;;  %6055 = vmatpush3.bf16.msra.mxu0 %v4916_v21  ;;  %v6428_v21 = vld [vmem:[#allocation3 + $0x58] sm:$0xff] }
0x1875   :  { %6056 = vmatprep.subr.bf16.mxu0 %v7578_v0 }
0x1876   :  { %v4608_v60 = vadd.f32 %v4607_v42, %v4606_v1  ;;  %v4914_v1 = vld [vmem:[%s5248_s8 + $0x18] sm:$0xff] }
0x1877   :  { %v4917_v42 = vpack.c.bf16 %v4914_v1, %v4913_v30  ;;  %v6429_v1 = vld [vmem:[#allocation3 + $0x50] sm:$0xff] }
0x1878   :  { %v4609_v27 = vrot.slane %v4608_v60, 1 }
0x1879   :  { %v6409_v19 = vpop.eup %6408  ;;  %6057 = vmatpush3.bf16.msra.mxu0 %v4917_v42 }
0x187a   :  { %v4217_v8 = vsel %vm1382_vm7, %v6409_v19, 0.0  ;;  %v4610_v40 = vadd.f32 %v4609_v27, %v4608_v60  ;;  %6070 = vmatprep.subr.bf16.mxu0 %v7578_v0 }
0x187b   :  { %v4218_v54 = vrot.slane %v4217_v8, 4 }
0x187c   :  { %6410 = vrcp.f32 %v4610_v40  ;;  %v6419_v40 = vld [vmem:[#allocation3 + $0x8] sm:$0xff] }
0x187d   :  { %v4219_v46 = vadd.f32 %v4218_v54, %v4217_v8 }
0x187f   :  { %v4220_v61 = vrot.slane %v4219_v46, 2 }
0x1881   :  { %v4221_v4 = vadd.f32 %v4220_v61, %v4219_v46  ;;  %v6418_v61 = vld [vmem:[#allocation3] sm:$0xff] }
0x1883   :  { %v4222_v17 = vrot.slane %v4221_v4, 1 }
0x1885   :  { %v4223_v62 = vadd.f32 %v4222_v17, %v4221_v4 }
0x1886   :  { %v6411_v9 = vpop.eup %6410 }
0x1887   :  { %6412 = vrcp.f32 %v4223_v62  ;;  %v4612_v49 = vmul.f32 %v6411_v9, %v6405_v52  ;;  %v4613_v44 = vmul.f32 %v6411_v9, %v6407_v59  ;;  %v4805_v59 = vld [vmem:[%s5245_s4 + $0x18] sm:$0xff] }
0x1888   :  { %v4808_v41 = vpack.c.bf16 %v4805_v59, %v4804_v58 }
0x1889   :  { %v4617_v31 = vrot.slane %v4612_v49, %v7383_v11  ;;  %v4624_v63 = vrot.slane %v4612_v49, %v7380_v5  ;;  %v4638_v55 = vrot.slane %v4612_v49, %v4249_v24  ;;  %v4631_v39 = vrot.slane %v4612_v49, %v4242_v12 }
0x188a   :  { %v4652_v33 = vrot.slane %v4612_v49, %v4263_v22  ;;  %v4645_v29 = vrot.slane %v4612_v49, %v4256_v43  ;;  %v4666_v37 = vrot.slane %v4612_v49, %v4277_v38  ;;  %v4659_v56 = vrot.slane %v4612_v49, %v4270_v20  ;;  %6041 = vmatpush3.bf16.msra.mxu1 %v4808_v41  ;;  %v6420_v49 = vld [vmem:[#allocation3 + $0x18] sm:$0xff] }
0x188b   :  { %v4680_v3 = vrot.slane %v4613_v44, %v7380_v5  ;;  %v4673_v6 = vrot.slane %v4613_v44, %v7383_v11  ;;  %v4694_v34 = vrot.slane %v4613_v44, %v4249_v24  ;;  %v4687_v36 = vrot.slane %v4613_v44, %v4242_v12  ;;  %6046 = vmatprep.subr.bf16.mxu1 %v7578_v0 }
0x188c   :  { %v4708_v26 = vrot.slane %v4613_v44, %v4263_v22  ;;  %v4701_v7 = vrot.slane %v4613_v44, %v4256_v43  ;;  %v4715_v45 = vrot.slane %v4613_v44, %v4270_v20  ;;  %v4722_v35 = vrot.slane %v4613_v44, %v4277_v38 }
0x1891   :  { %v6413_v51 = vpop.eup %6412 }
0x1892   :  { %v7377_v15 = vmul.f32 %v6413_v51, %v6409_v19 }
0x1894   :  { %v4236_v2 = vrot.slane %v7377_v15, %v7380_v5  ;;  %v4229_v57 = vrot.slane %v7377_v15, %v7383_v11  ;;  %v4243_v53 = vrot.slane %v7377_v15, %v4242_v12  ;;  %v4250_v23 = vrot.slane %v7377_v15, %v4249_v24 }
0x1895   :  { %v4257_v13 = vrot.slane %v7377_v15, %v4256_v43  ;;  %v4264_v28 = vrot.slane %v7377_v15, %v4263_v22  ;;  %v4271_v16 = vrot.slane %v7377_v15, %v4270_v20  ;;  %v4278_v52 = vrot.slane %v7377_v15, %v4277_v38  ;;  %v6423_v43 = vld [vmem:[#allocation3 + $0x20] sm:$0xff] }
0x1896   :  { %4238 = vbcast.lane.b32.xlu1 %v4236_v2, 256  ;;  %4231 = vbcast.lane.b32.xlu0 %v4229_v57, 256  ;;  %v6421_v57 = vld [vmem:[#allocation3 + $0x10] sm:$0xff] }
0x189a   :  { %4245 = vbcast.lane.b32.xlu1 %v4243_v53, 256  ;;  %4619 = vbcast.lane.b32.xlu0 %v4617_v31, 256 }
0x189e   :  { %4626 = vbcast.lane.b32.xlu1 %v4624_v63, 256  ;;  %4640 = vbcast.lane.b32.xlu0 %v4638_v55, 256 }
0x18a2   :  { %4633 = vbcast.lane.b32.xlu1 %v4631_v39, 256  ;;  %4654 = vbcast.lane.b32.xlu0 %v4652_v33, 256  ;;  %v6422_v39 = vld [vmem:[#allocation3 + $0x28] sm:$0xff] }
0x18a6   :  { %4647 = vbcast.lane.b32.xlu1 %v4645_v29, 256  ;;  %4668 = vbcast.lane.b32.xlu0 %v4666_v37, 256 }
0x18aa   :  { %4661 = vbcast.lane.b32.xlu1 %v4659_v56, 256  ;;  %4682 = vbcast.lane.b32.xlu0 %v4680_v3, 256 }
0x18ae   :  { %4675 = vbcast.lane.b32.xlu1 %v4673_v6, 256  ;;  %4696 = vbcast.lane.b32.xlu0 %v4694_v34, 256  ;;  %v6424_v6 = vld [vmem:[#allocation3 + $0x38] sm:$0xff] }
0x18b2   :  { %4689 = vbcast.lane.b32.xlu1 %v4687_v36, 256  ;;  %4710 = vbcast.lane.b32.xlu0 %v4708_v26, 256  ;;  %v6425_v36 = vld [vmem:[#allocation3 + $0x30] sm:$0xff] }
0x18b6   :  { %4703 = vbcast.lane.b32.xlu1 %v4701_v7, 256  ;;  %4717 = vbcast.lane.b32.xlu0 %v4715_v45, 256 }
0x18ba   :  { %4252 = vbcast.lane.b32.xlu1 %v4250_v23, 256  ;;  %4724 = vbcast.lane.b32.xlu0 %v4722_v35, 256 }
0x18be   :  { %4259 = vbcast.lane.b32.xlu1 %v4257_v13, 256  ;;  %4266 = vbcast.lane.b32.xlu0 %v4264_v28, 256 }
0x18c2   :  { %4273 = vbcast.lane.b32.xlu1 %v4271_v16, 256  ;;  %4280 = vbcast.lane.b32.xlu0 %v4278_v52, 256 }
0x1908   :  { %v4239_v19 = vpop.permute.xlu1 %4238  ;;  %v7415_v60 = vpop.permute.xlu0 %4231 }
0x190c   :  { %v7417_v8 = vpop.permute.xlu1 %4245  ;;  %v4620_v54 = vpop.permute.xlu0 %4619 }
0x190d   :  { %v4726_v4 = vmul.f32 %v6418_v61, %v4620_v54  ;;  %v6431_v61 = vld [vmem:[#allocation2] sm:$0xff] }
0x190f   :  { %v4742_v15 = vsel %vm187_vm1, %v4726_v4, 0.0  ;;  %v4282_v4 = vmul.f32 %v6431_v61, %v7415_v60 }
0x1910   :  { %v4627_v46 = vpop.permute.xlu1 %4626  ;;  %v4641_v27 = vpop.permute.xlu0 %4640 }
0x1911   :  { %v4727_v17 = vmul.f32 %v6419_v40, %v4627_v46  ;;  %v4729_v2 = vmul.f32 %v6420_v49, %v4641_v27  ;;  %v6430_v46 = vld [vmem:[#allocation2 + $0x8] sm:$0xff]  ;;  %v4290_v60 = vsel %vm187_vm1, %v4282_v4, 0.0 }
0x1912   :  { %v4283_v27 = vmul.f32 %v6430_v46, %v4239_v19 }
0x1913   :  { %v4743_v62 = vsel %vm187_vm1, %v4727_v17, 0.0  ;;  %v4747_v22 = vsel %vm187_vm1, %v4729_v2, 0.0  ;;  %v6433_v2 = vld [vmem:[#allocation3 + $0x68] sm:$0xff] }
0x1914   :  { %v4634_v9 = vpop.permute.xlu1 %4633  ;;  %v4655_v51 = vpop.permute.xlu0 %4654  ;;  %v4744_v53 = vadd.f32 %v4743_v62, %v4742_v15  ;;  %v4291_v19 = vsel %vm187_vm1, %v4283_v27, 0.0 }
0x1915   :  { %v4728_v12 = vmul.f32 %v6421_v57, %v4634_v9  ;;  %v4731_v33 = vmul.f32 %v6422_v39, %v4655_v51  ;;  %v6432_v51 = vld [vmem:[#allocation2 + $0x10] sm:$0xff] }
0x1916   :  { %v4284_v15 = vmul.f32 %v6432_v51, %v7417_v8 }
0x1917   :  { %v4745_v31 = vsel %vm187_vm1, %v4728_v12, 0.0  ;;  %v4751_v3 = vsel %vm187_vm1, %v4731_v33, 0.0  ;;  %v6434_v12 = vld [vmem:[#allocation3 + $0x60] sm:$0xff] }
0x1918   :  { %v4746_v24 = vadd.f32 %v4745_v31, %v4744_v53  ;;  %v4648_v63 = vpop.permute.xlu1 %4647  ;;  %v4669_v55 = vpop.permute.xlu0 %4668  ;;  %v4293_v8 = vsel %vm187_vm1, %v4284_v15, 0.0 }
0x1919   :  { %v4730_v38 = vmul.f32 %v6423_v43, %v4648_v63  ;;  %v4733_v34 = vmul.f32 %v6424_v6, %v4669_v55  ;;  %v6435_v43 = vld [vmem:[#allocation2 + $0x18] sm:$0xff] }
0x191a   :  { %v4748_v44 = vadd.f32 %v4747_v22, %v4746_v24 }
0x191b   :  { %v4749_v29 = vsel %vm187_vm1, %v4730_v38, 0.0  ;;  %v4755_v28 = vsel %vm187_vm1, %v4733_v34, 0.0 }
0x191c   :  { %v4750_v37 = vadd.f32 %v4749_v29, %v4748_v44  ;;  %v4662_v20 = vpop.permute.xlu1 %4661  ;;  %v4683_v56 = vpop.permute.xlu0 %4682  ;;  %v4774_v44 = vld [vmem:[%s7432_s12] sm:$0x3] }
0x191d   :  { %v4732_v26 = vmul.f32 %v6425_v36, %v4662_v20  ;;  %v4735_v47 = vmul.f32 %v6426_v50, %v4683_v56  ;;  %v4788_v34 = vrot.slane %v4774_v44, %v7383_v11 }
0x191e   :  { %v4752_v7 = vadd.f32 %v4751_v3, %v4750_v37 }
0x191f   :  { %v4753_v45 = vsel %vm187_vm1, %v4732_v26, 0.0  ;;  %v4759_v10 = vsel %vm187_vm1, %v4735_v47, 0.0 }
0x1920   :  { %v4754_v23 = vadd.f32 %v4753_v45, %v4752_v7  ;;  %v4676_v35 = vpop.permute.xlu1 %4675  ;;  %v4697_v13 = vpop.permute.xlu0 %4696  ;;  %v6436_v7 = vld [vmem:[#allocation2 + $0x20] sm:$0xff] }
0x1921   :  { %v4734_v16 = vmul.f32 %v6427_v14, %v4676_v35  ;;  %v4737_v30 = vmul.f32 %v6428_v21, %v4697_v13 }
0x1922   :  { %v4756_v52 = vadd.f32 %v4755_v28, %v4754_v23  ;;  %v6437_v23 = vld [vmem:[#allocation2 + $0x28] sm:$0xff]  ;;  %v4793_v28 = vrot.slane %v4774_v44, %v7380_v5  ;;  %v4906_v44 = vld [vmem:[%s5247_s28 + $0x18] sm:$0xff] }
0x1923   :  { %v4757_v58 = vsel %vm187_vm1, %v4734_v16, 0.0  ;;  %v4763_v49 = vsel %vm187_vm1, %v4737_v30, 0.0  ;;  %v4773_v30 = vld [vmem:[%s5242_s20] sm:$0x3] }
0x1924   :  { %v4758_v59 = vadd.f32 %v4757_v58, %v4756_v52  ;;  %v4690_v41 = vpop.permute.xlu1 %4689  ;;  %v4711_v25 = vpop.permute.xlu0 %4710  ;;  %v4783_v15 = vrot.slane %v4773_v30, %v7380_v5 }
0x1925   :  { %v4736_v42 = vmul.f32 %v6429_v1, %v4690_v41  ;;  %v4739_v57 = vmul.f32 %v6433_v2, %v4711_v25  ;;  %v4796_v41 = vld [vmem:[%s7445_s16 + $0x8] sm:$0xff]  ;;  %v6439_v1 = vld [vmem:[#allocation2 + $0x38] sm:$0xff] }
0x1926   :  { %v4760_v54 = vadd.f32 %v4759_v10, %v4758_v59  ;;  %v4795_v59 = vld [vmem:[%s7445_s16] sm:$0xff]  ;;  %v6438_v10 = vld [vmem:[#allocation2 + $0x30] sm:$0xff] }
0x1927   :  { %v4761_v40 = vsel %vm187_vm1, %v4736_v42, 0.0  ;;  %v4767_v33 = vsel %vm187_vm1, %v4739_v57, 0.0  ;;  %v4800_v61 = vpack.c.bf16 %v4796_v41, %v4795_v59  ;;  %v5069_v59 = vld [vmem:[%s7499_s6 + $0x20] sm:$0xff]  ;;  %v5070_v41 = vld [vmem:[%s7499_s6 + $0x28] sm:$0xff] }
0x1928   :  { %v4762_v17 = vadd.f32 %v4761_v40, %v4760_v54  ;;  %v4704_v62 = vpop.permute.xlu1 %4703  ;;  %v4718_v9 = vpop.permute.xlu0 %4717  ;;  %v4778_v40 = vrot.slane %v4773_v30, %v7383_v11  ;;  %v5005_v11 = vld [vmem:[%s5249_s24] sm:$0xff]  ;;  %v5080_v30 = vpack.c.bf16 %v5070_v41, %v5069_v59 }
0x1929   :  { %v4738_v53 = vmul.f32 %v6434_v12, %v4704_v62  ;;  %v4740_v63 = vmul.f32 %v4718_v9, %v7197_v18  ;;  %v4292_v18 = vadd.f32 %v4291_v19, %v4290_v60  ;;  %v4797_v62 = vld [vmem:[%s7445_s16 + $0x10] sm:$0xff]  ;;  %v4798_v9 = vld [vmem:[%s7445_s16 + $0x18] sm:$0xff] }
0x192a   :  { %v4764_v31 = vadd.f32 %v4763_v49, %v4762_v17  ;;  %v4801_v2 = vpack.c.bf16 %v4798_v9, %v4797_v62  ;;  %v5136_v9 = vld [vmem:[%s7522_s10] sm:$0xff] }
0x192b   :  { %v4765_v24 = vsel %vm187_vm1, %v4738_v53, 0.0  ;;  %v4769_v20 = vsel %vm187_vm1, %v4740_v63, 0.0  ;;  %v4294_v3 = vadd.f32 %v4293_v8, %v4292_v18  ;;  %v5006_v53 = vld [vmem:[%s5249_s24 + $0x8] sm:$0xff]  ;;  %v5007_v63 = vld [vmem:[%s5249_s24 + $0x10] sm:$0xff]  ;;  %v4903_v8 = vld [vmem:[%s5247_s28] sm:$0xff] }
0x192c   :  { %v4766_v55 = vadd.f32 %v4765_v24, %v4764_v31  ;;  %v4253_v22 = vpop.permute.xlu1 %4252  ;;  %v4725_v39 = vpop.permute.xlu0 %4724  ;;  %v5010_v5 = vpack.c.bf16 %v5006_v53, %v5005_v11  ;;  %v5141_v11 = vld [vmem:[%s7522_s10 + $0x28] sm:$0xff] }
0x192d   :  { %v4285_v38 = vmul.f32 %v6435_v43, %v4253_v22  ;;  %v4741_v29 = vmul.f32 %v4725_v39, %v7199_v32  ;;  %v4905_v43 = vld [vmem:[%s5247_s28 + $0x10] sm:$0xff] }
0x192e   :  { %v4768_v37 = vadd.f32 %v4767_v33, %v4766_v55  ;;  %v5008_v55 = vld [vmem:[%s5249_s24 + $0x18] sm:$0xff]  ;;  %v4904_v33 = vld [vmem:[%s5247_s28 + $0x8] sm:$0xff] }
0x192f   :  { %v4295_v56 = vsel %vm187_vm1, %v4285_v38, 0.0  ;;  %v4771_v32 = vsel %vm187_vm1, %v4741_v29, 0.0  ;;  %v5011_v22 = vpack.c.bf16 %v5008_v55, %v5007_v63  ;;  %v4908_v38 = vpack.c.bf16 %v4904_v33, %v4903_v8  ;;  %v5342_v55 = vld [vmem:[%s5250_s14] ss:$0 sm:$0xff] }
0x1930   :  { %v4770_v6 = vadd.f32 %v4769_v20, %v4768_v37  ;;  %v4260_v36 = vpop.permute.xlu1 %4259  ;;  %v4267_v26 = vpop.permute.xlu0 %4266  ;;  %v4296_v13 = vadd.f32 %v4295_v56, %v4294_v3  ;;  %v4909_v29 = vpack.c.bf16 %v4906_v44, %v4905_v43  ;;  %v5144_v44 = vld [vmem:[%s7522_s10 + $0x40] sm:$0xff] }
0x1931   :  { %v4286_v45 = vmul.f32 %v6436_v7, %v4260_v36  ;;  %v4287_v35 = vmul.f32 %v6437_v23, %v4267_v26  ;;  %v5065_v26 = vld [vmem:[%s7499_s6] sm:$0xff] }
0x1932   :  { %v4772_v50 = vadd.f32 %v4771_v32, %v4770_v6  ;;  %v5338_v6 = vld [vmem:[%s5246_s2] ss:$0 sm:$0xff]  ;;  %v5066_v32 = vld [vmem:[%s7499_s6 + $0x8] sm:$0xff] }
0x1933   :  { %v4297_v47 = vsel %vm187_vm1, %v4286_v45, 0.0  ;;  %v4299_v25 = vsel %vm187_vm1, %v4287_v35, 0.0 }
0x1934   :  { %v4789_v14 = vmul.f32 %v4788_v34, %v4772_v50  ;;  %v4298_v16 = vadd.f32 %v4297_v47, %v4296_v13  ;;  %v4274_v52 = vpop.permute.xlu1 %4273  ;;  %v4281_v58 = vpop.permute.xlu0 %4280  ;;  %v5078_v50 = vpack.c.bf16 %v5066_v32, %v5065_v26 }
0x1935   :  { %v4288_v21 = vmul.f32 %v6438_v10, %v4274_v52  ;;  %v4289_v42 = vmul.f32 %v6439_v1, %v4281_v58  ;;  %v5068_v52 = vld [vmem:[%s7499_s6 + $0x18] sm:$0xff] }
0x1936   :  { %v4794_v54 = vadd.f32 %v4793_v28, %v4789_v14  ;;  %v4300_v46 = vadd.f32 %v4299_v25, %v4298_v16  ;;  %v5067_v16 = vld [vmem:[%s7499_s6 + $0x10] sm:$0xff] }
0x1937   :  { %v4301_v27 = vsel %vm187_vm1, %v4288_v21, 0.0  ;;  %v4303_v51 = vsel %vm187_vm1, %v4289_v42, 0.0  ;;  %v5079_v58 = vpack.c.bf16 %v5068_v52, %v5067_v16  ;;  %v5071_v42 = vld [vmem:[%s7499_s6 + $0x30] sm:$0xff]  ;;  %v5211_v52 = vstv %s1_s25 }
0x1938   :  { %v4302_v4 = vadd.f32 %v4301_v27, %v4300_v46  ;;  %v4806_v17 = vpack.c.bf16 %v4794_v54, %v4794_v54  ;;  %v5073_v46 = vld [vmem:[%s7499_s6 + $0x40] sm:$0xff] }
0x193a   :  { %v4304_v49 = vadd.f32 %v4303_v51, %v4302_v4  ;;  %6043 = vmatmul.mubr.msk.bf16.vlgmr.msra.gmra.mrb[68].mxu1 %vm187_vm1, %v4806_v17  ;;  %v5076_v17 = vld [vmem:[%s7499_s6 + $0x58] sm:$0xff]  ;;  %v5137_v51 = vld [vmem:[%s7522_s10 + $0x8] sm:$0xff] }
0x193b   :  { %6047 = vmatpush3.bf16.msra.mxu1 %v4800_v61  ;;  %6050 = vmatprep.mubr.msk.bf16.mxu1 %vm6443_vm0, %v7578_v0  ;;  %v5074_v61 = vld [vmem:[%s7499_s6 + $0x48] sm:$0xff] }
0x193c   :  { %v4779_v57 = vmul.f32 %v4778_v40, %v4304_v49  ;;  %6048 = vmatprep.subr.bf16.mxu1 %v7578_v0  ;;  %v5082_v4 = vpack.c.bf16 %v5074_v61, %v5073_v46  ;;  %v5075_v40 = vld [vmem:[%s7499_s6 + $0x50] sm:$0xff]  ;;  %v5149_v49 = vpack.c.bf16 %v5137_v51, %v5136_v9 }
0x193d   :  { %v5083_v62 = vpack.c.bf16 %v5076_v17, %v5075_v40 }
0x193e   :  { %v4784_v12 = vadd.f32 %v4783_v15, %v4779_v57  ;;  %v5138_v15 = vld [vmem:[%s7522_s10 + $0x10] sm:$0xff] }
0x193f   :  { %6049 = vmatpush3.bf16.msra.mxu1 %v4801_v2  ;;  %v5139_v2 = vld [vmem:[%s7522_s10 + $0x18] sm:$0xff] }
0x1940   :  { %v4910_v31 = vmul.f32 %v4794_v54, %v4784_v12  ;;  %v5004_v19 = vadd.f32 %v4794_v54, %v4784_v12  ;;  %v4799_v60 = vpack.c.bf16 %v4784_v12, %v4784_v12  ;;  %6062 = vmatprep.subr.bf16.mxu1 %v7578_v0  ;;  %v5072_v54 = vld [vmem:[%s7499_s6 + $0x38] sm:$0xff]  ;;  %v5150_v57 = vpack.c.bf16 %v5139_v2, %v5138_v15  ;;  %v5140_v12 = vld [vmem:[%s7522_s10 + $0x20] sm:$0xff] }
0x1941   :  { %v5081_v27 = vpack.c.bf16 %v5072_v54, %v5071_v42  ;;  %v5151_v53 = vpack.c.bf16 %v5141_v11, %v5140_v12 }
0x1942   :  { %v4915_v24 = vpack.c.bf16 %v4910_v31, %v4910_v31  ;;  %6051 = vmatmul.mubr.msk.bf16.vlgmr.msra.gmra.mrb[72].mxu1 %vm187_vm1, %v4799_v60  ;;  %v5009_v39 = vpack.c.bf16 %v5004_v19, %v5004_v19  ;;  %v5142_v31 = vld [vmem:[%s7522_s10 + $0x30] sm:$0xff]  ;;  %v5143_v19 = vld [vmem:[%s7522_s10 + $0x38] sm:$0xff] }
0x1943   :  { %6066 = vmatprep.mubr.msk.bf16.mxu1 %vm6443_vm0, %v7578_v0  ;;  %6063 = vmatpush3.bf16.msra.mxu1 %v4908_v38  ;;  %v5152_v60 = vpack.c.bf16 %v5143_v19, %v5142_v31 }
0x1944   :  { %6059 = vmatmul.mubr.msk.bf16.vlgmr.msra.gmra.mrb[84].mxu0 %vm187_vm1, %v4915_v24  ;;  %6064 = vmatprep.subr.bf16.mxu1 %v7578_v0 }
0x1945   :  { %6071 = vmatpush3.bf16.msra.mxu0 %v5010_v5  ;;  %6074 = vmatprep.mubr.msk.bf16.mxu0 %vm6443_vm0, %v7578_v0 }
0x1946   :  { %6072 = vmatprep.subr.bf16.mxu0 %v7578_v0 }
0x1947   :  { %6065 = vmatpush3.bf16.msra.mxu1 %v4909_v29  ;;  %v5145_v29 = vld [vmem:[%s7522_s10 + $0x48] sm:$0xff] }
0x1948   :  { %6078 = vmatprep.subr.bf16.mxu1 %v7578_v0 }
0x1949   :  { %6073 = vmatpush3.bf16.msra.mxu0 %v5011_v22 }
0x194a   :  { %6094 = vmatprep.subr.bf16.mxu0 %v7578_v0 }
0x194c   :  { %6075 = vmatmul.mubr.msk.bf16.vlgmr.msra.gmra.mrb[88].mxu0 %vm187_vm1, %v5009_v39 }
0x194d   :  { %6106 = vmatprep.mubr.msk.bf16.mxu0 %vm6443_vm0, %v7578_v0  ;;  %6095 = vmatpush3.bf16.msra.mxu0 %v5149_v49 }
0x194e   :  { %6096 = vmatprep.subr.bf16.mxu0 %v7578_v0 }
0x1951   :  { %6097 = vmatpush3.bf16.msra.mxu0 %v5150_v57 }
0x1952   :  { %6098 = vmatprep.subr.bf16.mxu0 %v7578_v0 }
0x1955   :  { %6099 = vmatpush3.bf16.msra.mxu0 %v5151_v53 }
0x1956   :  { %6100 = vmatprep.subr.bf16.mxu0 %v7578_v0 }
0x1959   :  { %6101 = vmatpush3.bf16.msra.mxu0 %v5152_v60 }
0x195a   :  { %6102 = vmatprep.subr.bf16.mxu0 %v7578_v0 }
0x1a0d   :  { %v4846_v18 = vpop.f32.mrb[68].mxu1 }
0x1a0e   :  { %v6044_v37 = vpop.f32.mrb[69].mxu1 }
0x1a0f   :  { %v4849_v20 = vpop.f32.mrb[70].mxu1  ;;  %v5153_v37 = vpack.c.bf16 %v5145_v29, %v5144_v44 }
0x1a10   :  { %v6045_v56 = vpop.f32.mrb[71].mxu1  ;;  %v5147_v20 = vld [vmem:[%s7522_s10 + $0x58] sm:$0xff] }
0x1a11   :  { %6103 = vmatpush3.bf16.msra.mxu0 %v5153_v37 }
0x1a12   :  { %6104 = vmatprep.subr.bf16.mxu0 %v7578_v0 }
0x1a15   :  { %v4889_v3 = vpop.f32.mrb[72].mxu1 }
0x1a16   :  { %v4890_v34 = vadd.f32 %v4889_v3, %v4846_v18  ;;  %v6052_v36 = vpop.f32.mrb[73].mxu1  ;;  %v5146_v18 = vld [vmem:[%s7522_s10 + $0x50] sm:$0xff]  ;;  %v5343_v3 = vld [vmem:[%s5252_s18] ss:$0 sm:$0xff] }
0x1a17   :  { %v4892_v7 = vpop.f32.mrb[74].mxu1  ;;  %v7503_v45 = vpop.f32.mrb[84].mxu0  ;;  %v5154_v56 = vpack.c.bf16 %v5147_v20, %v5146_v18 }
0x1a18   :  { %v4902_v23 = vadd.f32 %v5338_v6, %v4890_v34  ;;  %v6053_v35 = vpop.f32.mrb[75].mxu1  ;;  %v6060_v13 = vpop.f32.mrb[85].mxu0 }
0x1a19   :  { %v4958_v28 = vpop.f32.mrb[86].mxu0  ;;  %6105 = vmatpush3.bf16.msra.mxu0 %v5154_v56 }
0x1a1a   :  { %v4907_v47 = vpack.c.bf16 %v4902_v23, %v4902_v23  ;;  %v6061_v14 = vpop.f32.mrb[87].mxu0 }
0x1a1c   :  { %6067 = vmatmul.mubr.msk.bf16.vlgmr.msra.gmra.mrb[76].mxu1 %vm187_vm1, %v4907_v47  ;;  %vm5213_vm1 = vcmp.lt.s32.totalorder %v7584_v48, 15 }
0x1a1d   :  { %6079 = vmatpush3.bf16.msra.mxu1 %v5078_v50  ;;  %6090 = vmatprep.mubr.msk.bf16.mxu1 %vm6443_vm0, %v7578_v0  ;;  %vm5091_vm0 = vcmask 785408  }
0x1a1e   :  { %6080 = vmatprep.subr.bf16.mxu1 %v7578_v0 }
0x1a1f   :  { %v5049_v25 = vpop.f32.mrb[88].mxu0 }
0x1a20   :  { %v6076_v10 = vpop.f32.mrb[89].mxu0 }
0x1a21   :  { %v5052_v21 = vpop.f32.mrb[90].mxu0  ;;  %6081 = vmatpush3.bf16.msra.mxu1 %v5079_v58 }
0x1a22   :  { %v6077_v1 = vpop.f32.mrb[91].mxu0  ;;  %6082 = vmatprep.subr.bf16.mxu1 %v7578_v0 }
0x1a25   :  { %6083 = vmatpush3.bf16.msra.mxu1 %v5080_v30 }
0x1a26   :  { %6084 = vmatprep.subr.bf16.mxu1 %v7578_v0 }
0x1a29   :  { %6085 = vmatpush3.bf16.msra.mxu1 %v5081_v27 }
0x1a2a   :  { %6086 = vmatprep.subr.bf16.mxu1 %v7578_v0 }
0x1a2d   :  { %6087 = vmatpush3.bf16.msra.mxu1 %v5082_v4 }
0x1a2e   :  { %6088 = vmatprep.subr.bf16.mxu1 %v7578_v0  ;;  %v5345_v0 = vld [vmem:[%s5254_s22] ss:$0 sm:$0xff] }
0x1a31   :  { %6089 = vmatpush3.bf16.msra.mxu1 %v5083_v62 }
0x1aef   :  { %v4998_v5 = vpop.f32.mrb[76].mxu1 }
0x1af0   :  { %v4999_v24 = vadd.f32 %v4998_v5, %v7503_v45  ;;  %v6068_v63 = vpop.f32.mrb[77].mxu1 }
0x1af1   :  { %v5001_v22 = vpop.f32.mrb[78].mxu1 }
0x1af2   :  { %v5055_v39 = vadd.f32 %v5049_v25, %v4999_v24  ;;  %v6069_v8 = vpop.f32.mrb[79].mxu1 }
0x1af4   :  { %v5063_v33 = vadd.f32 %v5342_v55, %v5055_v39 }
0x1af6   :  { %v5064_v43 = vmax.f32 %v5063_v33, 0.0 }
0x1af8   :  { %v5077_v38 = vpack.c.bf16 %v5064_v43, %v5064_v43 }
0x1afa   :  { %6091 = vmatmul.mubr.msk.bf16.vlgmr.msra.gmra.mrb[80].mxu1 %vm5091_vm0, %v5077_v38 }
0x1bcd   :  { %v5129_v6 = vpop.f32.mrb[80].mxu1 }
0x1bce   :  { %v5130_v34 = vadd.f32 %v5343_v3, %v5129_v6  ;;  %v6092_v36 = vpop.f32.mrb[81].mxu1 }
0x1bcf   :  { %v5132_v26 = vpop.f32.mrb[82].mxu1 }
0x1bd0   :  { %v5135_v32 = vmax.f32 %v5130_v34, 0.0  ;;  %v6093_v7 = vpop.f32.mrb[83].mxu1 }
0x1bd2   :  { %v5148_v45 = vpack.c.bf16 %v5135_v32, %v5135_v32 }
0x1bd4   :  { %6107 = vmatmul.mubr.msk.bf16.vlgmr.msra.gmra.mrb[92].mxu0 %vm5091_vm0, %v5148_v45 }
0x1ca7   :  { %v5199_v23 = vpop.f32.mrb[92].mxu0 }
0x1ca8   :  { %v5200_v35 = vadd.f32 %v5345_v0, %v5199_v23  ;;  %v6108_v13 = vpop.f32.mrb[93].mxu0 }
0x1ca9   :  { %v5202_v28 = vpop.f32.mrb[94].mxu0 }
0x1caa   :  { %v5347_v50 = vmul.f32 -1.442695, %v5200_v35  ;;  %v6109_v47 = vpop.f32.mrb[95].mxu0 }
0x1cac   :  { %6414 = vpow2.f32 %v5347_v50 }
0x1cb6   :  { %v6415_v14 = vpop.eup %6414 }
0x1cb7   :  { %v5208_v16 = vadd.f32 1.0, %v6415_v14 }
0x1cb9   :  { %6416 = vrcp.f32 %v5208_v16 }
0x1cc3   :  { %v6417_v58 = vpop.eup %6416 }
0x1cc4   :  { %v5212_v59 = vmul.f32 %v6417_v58, %v5211_v52 }
0x1cc6   :  { %v5214_v41 = vsel %vm5213_vm1, %v5200_v35, %v5212_v59 }
0x1cc7   :  { %5215 = vst [vmem:[%s5255_s29] sm:$0xff] %v5214_v41 }

</bundles_post_ra>
